<compile_context>
chip_gen: v6e
topology: v6e:2x2x1
jax: 0.10.0
libtpu: 0.0.40
codegen_flags: <defaults>
</compile_context>

<pallas_src>
import functools

import jax
import jax.numpy as jnp
from jax.experimental import pallas as pl
from jax.experimental.pallas import tpu as pltpu

NUM_CLASSES = 23


def _round_up(x, m):
    return (x + m - 1) // m * m


# ----------------------------------------------------------------------------
# Pallas kernel: fused  out = act((A @ W) * scale + bias)
# ----------------------------------------------------------------------------
def _mm_scale_bias_kernel(a_ref, w_ref, s_ref, b_ref, o_ref, *, relu):
    # bf16 operands -> MXU, f32 accumulate; epilogue entirely in f32 (v5e-safe).
    acc = jnp.dot(a_ref[...], w_ref[...], preferred_element_type=jnp.float32)
    acc = acc * s_ref[...] + b_ref[...]
    if relu:
        acc = jnp.maximum(acc, 0.0)
    o_ref[...] = acc.astype(o_ref.dtype)


def _choose_tm(M):
    """Largest row tile <=512 dividing M, preferring >=2 grid steps (v7x TCs)."""
    for tm in (512, 256, 128, 64, 32, 16, 8):
        if M % tm == 0 and M // tm >= 2:
            return tm
    for tm in (512, 256, 128, 64, 32, 16, 8):
        if M % tm == 0:
            return tm
    return None


def matmul_scale_bias(a, w_bf, scale, bias, *, relu=False):
    """a: (M, K) f32/bf16, w_bf: (K, N) bf16, scale/bias: (N,) f32 -> (M, N) f32.

    No K/N padding copies: blocks use the full K and N extents (valid because a
    block dim equal to the full array dim is exempt from the (8,128) rule).
    """
    M, K = a.shape
    K2, N = w_bf.shape
    assert K == K2
    M_orig = M
    tm = _choose_tm(M)
    if tm is None:  # M not a multiple of 8 -> pad rows only (never hit here)
        Mp = _round_up(M, 8)
        a = jnp.pad(a, ((0, Mp - M), (0, 0)))
        M = Mp
        tm = _choose_tm(M)

    a_bf = a.astype(jnp.bfloat16)                       # halves HBM bytes for A
    s = scale.reshape(1, N).astype(jnp.float32)
    b = bias.reshape(1, N).astype(jnp.float32)

    out = pl.pallas_call(
        functools.partial(_mm_scale_bias_kernel, relu=relu),
        out_shape=jax.ShapeDtypeStruct((M, N), jnp.float32),
        grid=(M // tm,),
        in_specs=[
            pl.BlockSpec((tm, K), lambda i: (i, 0)),    # A: streamed over rows
            pl.BlockSpec((K, N), lambda i: (0, 0)),     # W: resident
            pl.BlockSpec((1, N), lambda i: (0, 0)),     # scale: resident
            pl.BlockSpec((1, N), lambda i: (0, 0)),     # bias: resident
        ],
        out_specs=pl.BlockSpec((tm, N), lambda i: (i, 0)),
        compiler_params=pltpu.CompilerParams(
            dimension_semantics=("parallel",)),
    )(a_bf, w_bf, s, b)
    return out[:M_orig]


# ----------------------------------------------------------------------------
# Conv helpers (im2col / gather glue in JAX, matmul in Pallas)
# ----------------------------------------------------------------------------
def _im2col_3x3(x):
    """x: (B, H, W, C) -> (B*H*W, 9*C), patch flat order = (u, v, c)."""
    B, H, W, C = x.shape
    xp = jnp.pad(x, ((0, 0), (1, 1), (1, 1), (0, 0)))
    cols = [xp[:, u:u + H, v:v + W, :] for u in range(3) for v in range(3)]
    patches = jnp.stack(cols, axis=3)  # (B, H, W, 9, C)
    return patches.reshape(B * H * W, 9 * C)
    # TODO(synk): at large H*W replace im2col (9x HBM blow-up) with an in-kernel
    # 9-tap accumulate; at 16x16 the slab is tiny so im2col is kept.


def _bilinear_sample(x, rr, cc):
    """x: (B, Hp, Wp, C); rr, cc: (B, H, W, N) float coords -> (B,H,W,N,C)."""
    B, Hp, Wp, C = x.shape
    rr = jnp.clip(rr, 0.0, Hp - 1.0)
    cc = jnp.clip(cc, 0.0, Wp - 1.0)
    r0 = jnp.floor(rr)
    c0 = jnp.floor(cc)
    r1 = jnp.clip(r0 + 1.0, 0.0, Hp - 1.0)
    c1 = jnp.clip(c0 + 1.0, 0.0, Wp - 1.0)
    wr = (rr - r0)[..., None]
    wc = (cc - c0)[..., None]
    flat = x.reshape(B, Hp * Wp, C)

    def gat(xf, ri, ci):
        return xf[(ri * Wp + ci).astype(jnp.int32)]

    g = jax.vmap(gat)
    v00 = g(flat, r0, c0)
    v01 = g(flat, r0, c1)
    v10 = g(flat, r1, c0)
    v11 = g(flat, r1, c1)
    return (v00 * (1 - wr) * (1 - wc) + v01 * (1 - wr) * wc
            + v10 * wr * (1 - wc) + v11 * wr * wc)
    # TODO(synk): data-dependent bilinear gather stays in plain JAX (XLA gather);
    # it has no clean rectangular-BlockSpec Pallas equivalent.


# ----------------------------------------------------------------------------
# DeformConv2d (modulated, kernel=3, padding=1, stride=1) + folded BN + ReLU
# ----------------------------------------------------------------------------
def deform_block(x, p):
    B, H, W, C = x.shape
    # One merged matmul for offsets (18) + modulation (9): shared im2col patches.
    patches = _im2col_3x3(x)                                     # (M, 9C)
    om = matmul_scale_bias(patches, p["pm_w"], p["pm_s"], p["pm_b"])
    om = om.reshape(B, H, W, 27)
    offs = om[..., :18]
    mod = jax.nn.sigmoid(om[..., 18:])                           # (B,H,W,9)
    off_r, off_c = offs[..., :9], offs[..., 9:]

    pn_r = jnp.array([-1, -1, -1, 0, 0, 0, 1, 1, 1], jnp.float32)
    pn_c = jnp.array([-1, 0, 1, -1, 0, 1, -1, 0, 1], jnp.float32)
    ii = (jnp.arange(H, dtype=jnp.float32) + 1.0)[None, :, None, None]
    jj = (jnp.arange(W, dtype=jnp.float32) + 1.0)[None, None, :, None]
    pr = ii + pn_r + off_r                                       # padded coords
    pc = jj + pn_c + off_c

    xp = jnp.pad(x, ((0, 0), (1, 1), (1, 1), (0, 0)))
    # Modulation multiply folded into the blend chain (fused by XLA).
    samp = _bilinear_sample(xp, pr, pc) * mod[..., None]         # (B,H,W,9,C)

    O = p["w"].shape[1]
    out = matmul_scale_bias(samp.reshape(B * H * W, 9 * C), p["w"],
                            p["scale"], p["bias"], relu=True)    # conv+BN+ReLU
    return out.reshape(B, H, W, O)


# ----------------------------------------------------------------------------
# DSConv_pro (dynamic snake conv)
# ----------------------------------------------------------------------------
def group_norm(x, gamma, beta, groups, eps=1e-5):
    B, H, W, C = x.shape
    xg = x.reshape(B, H, W, groups, C // groups)
    mean = xg.mean(axis=(1, 2, 4), keepdims=True)
    var = xg.var(axis=(1, 2, 4), keepdims=True)
    xg = (xg - mean) * jax.lax.rsqrt(var + eps)
    return xg.reshape(B, H, W, C) * gamma + beta


def _cum_from_center(off):
    """Accumulate snake offsets outward from the center tap, last axis = K."""
    K = off.shape[-1]
    c = K // 2
    outs = [None] * K
    outs[c] = jnp.zeros_like(off[..., 0])
    for d in range(1, c + 1):
        outs[c + d] = outs[c + d - 1] + off[..., c + d]
        outs[c - d] = outs[c - d + 1] + off[..., c - d]
    return jnp.stack(outs, axis=-1)


def dsconv_pro(x, p, *, kernel_size, extend_scope, morph):
    B, H, W, C = x.shape
    K = kernel_size
    ctr = K // 2
    patches = _im2col_3x3(x)
    offs = matmul_scale_bias(patches, p["off_w"], p["off_s"], p["off_b"])
    offs = offs.reshape(B, H, W, 2 * K)
    offs = group_norm(offs, p["gno_g"], p["gno_b"], groups=K)
    offs = jnp.tanh(offs)
    y_off, x_off = offs[..., :K], offs[..., K:]

    ii = jnp.arange(H, dtype=jnp.float32)[None, :, None, None]
    jj = jnp.arange(W, dtype=jnp.float32)[None, None, :, None]
    spread = jnp.arange(K, dtype=jnp.float32) - ctr
    # TODO(synk): coordinate map follows the canonical DSCNet "snake" formulation
    # (cumulative offsets from the center tap); exact reference source not provided.
    if morph == 0:          # kernel extends along H
        rr = ii + spread + _cum_from_center(y_off) * extend_scope
        cc = jj + x_off * extend_scope
    else:                   # kernel extends along W
        rr = ii + y_off * extend_scope
        cc = jj + spread + _cum_from_center(x_off) * extend_scope

    samp = _bilinear_sample(x, rr, cc)                           # (B,H,W,K,C)

    O = p["w"].shape[1]
    out = matmul_scale_bias(samp.reshape(B * H * W, K * C), p["w"],
                            p["w_s"], p["b"])
    out = out.reshape(B, H, W, O)
    out = group_norm(out, p["gn_g"], p["gn_b"], groups=O // 4)
    return jax.nn.relu(out)


# ----------------------------------------------------------------------------
# Full network
# ----------------------------------------------------------------------------
def max_pool2(x):
    B, H, W, C = x.shape
    return x.reshape(B, H // 2, 2, W // 2, 2, C).max(axis=(2, 4))


def hybrid_convnet_forward(params, x_nchw):
    x = jnp.transpose(x_nchw, (0, 2, 3, 1)).astype(jnp.float32)  # NCHW -> NHWC

    x = deform_block(x, params["conv1"])     # DeformConv2d + BN1 + ReLU (fused)
    x = max_pool2(x)
    x = deform_block(x, params["conv2"])     # DeformConv2d + BN2 + ReLU
    x = max_pool2(x)
    x = deform_block(x, params["conv3"])     # DeformConv2d + BN3 + ReLU

    x = dsconv_pro(x, params["conv4"], kernel_size=3, extend_scope=1.0, morph=0)
    x = dsconv_pro(x, params["conv5"], kernel_size=3, extend_scope=1.0, morph=1)
    x = dsconv_pro(x, params["conv6"], kernel_size=3, extend_scope=1.0, morph=0)

    x = x.mean(axis=(1, 2))                  # adaptive_avg_pool2d(1,1) + view
    # TODO(synk): nn.Dropout is identity at inference; training-mode RNG dropout
    # is not modeled.
    # Tiny GEMV (M=B, N=23): plain XLA dot beats a padded Pallas launch here.
    out = jnp.dot(x, params["fc_w"], preferred_element_type=jnp.float32)
    return out + params["fc_b"]              # (B, num_classes)


# ----------------------------------------------------------------------------
# Parameters: raw (PyTorch-like) init + one-time matmul-ready preparation
# ----------------------------------------------------------------------------
def init_params(key):
    keys = iter(jax.random.split(key, 80))

    def nrm(shape, scale=0.05):
        return scale * jax.random.normal(next(keys), shape, jnp.float32)

    def deform(ic, oc):
        return dict(p_w=nrm((18, ic, 3, 3), 0.01), p_b=nrm((18,), 0.01),
                    m_w=nrm((9, ic, 3, 3), 0.01), m_b=nrm((9,), 0.01),
                    w=nrm((oc, ic, 3, 3), 0.05))

    def bn(c):
        return dict(gamma=1.0 + nrm((c,), 0.1), beta=nrm((c,), 0.1),
                    mean=nrm((c,), 0.1), var=1.0 + jnp.abs(nrm((c,), 0.1)))

    def ds(ic, oc, K, morph):
        kshape = (oc, ic, K, 1) if morph == 0 else (oc, ic, 1, K)
        return dict(off_w=nrm((2 * K, ic, 3, 3), 0.01), off_b=nrm((2 * K,), 0.01),
                    gno_g=jnp.ones((2 * K,), jnp.float32),
                    gno_b=jnp.zeros((2 * K,), jnp.float32),
                    w=nrm(kshape, 0.05), b=nrm((oc,), 0.05),
                    gn_g=jnp.ones((oc,), jnp.float32),
                    gn_b=jnp.zeros((oc,), jnp.float32))

    return dict(
        conv1=deform(3, 32), conv2=deform(32, 64), conv3=deform(64, 128),
        bn1=bn(32), bn2=bn(64), bn3=bn(128),
        conv4=ds(128, 128, 3, 0), conv5=ds(128, 256, 3, 1),
        conv6=ds(256, 256, 3, 0),
        fc_w=nrm((NUM_CLASSES, 256), 0.05), fc_b=nrm((NUM_CLASSES,), 0.05),
    )


def _bn_fold(p, eps=1e-5):
    s = p["gamma"] * jax.lax.rsqrt(p["var"] + eps)
    return s, p["beta"] - p["mean"] * s


def _conv3x3_wmat(w_oihw):
    """(O, I, 3, 3) -> (9*I, O) bf16, row order (kh, kw, ic)."""
    O, I = w_oihw.shape[0], w_oihw.shape[1]
    return jnp.transpose(w_oihw, (2, 3, 1, 0)).reshape(9 * I, O).astype(jnp.bfloat16)


def _snake_wmat(w):
    """(O, I, kh, kw) -> (kh*kw*I, O) bf16."""
    O, I, kh, kw = w.shape
    return jnp.transpose(w, (2, 3, 1, 0)).reshape(kh * kw * I, O).astype(jnp.bfloat16)


def prepare_params(raw):
    """One-time prep: transpose/reshape/concat weights, cast to bf16, fold BN."""
    def deform(p, bn):
        pm_w = jnp.concatenate([_conv3x3_wmat(p["p_w"]),
                                _conv3x3_wmat(p["m_w"])], axis=1)   # (9ic, 27)
        pm_b = jnp.concatenate([p["p_b"], p["m_b"]])
        s, b = _bn_fold(bn)
        return dict(pm_w=pm_w, pm_b=pm_b, pm_s=jnp.ones_like(pm_b),
                    w=_conv3x3_wmat(p["w"]), scale=s, bias=b)

    def ds(p):
        return dict(off_w=_conv3x3_wmat(p["off_w"]), off_b=p["off_b"],
                    off_s=jnp.ones_like(p["off_b"]),
                    gno_g=p["gno_g"], gno_b=p["gno_b"],
                    w=_snake_wmat(p["w"]), b=p["b"], w_s=jnp.ones_like(p["b"]),
                    gn_g=p["gn_g"], gn_b=p["gn_b"])

    return dict(
        conv1=deform(raw["conv1"], raw["bn1"]),
        conv2=deform(raw["conv2"], raw["bn2"]),
        conv3=deform(raw["conv3"], raw["bn3"]),
        conv4=ds(raw["conv4"]), conv5=ds(raw["conv5"]), conv6=ds(raw["conv6"]),
        fc_w=raw["fc_w"].T, fc_b=raw["fc_b"],
    )


if __name__ == "__main__":
    key = jax.random.PRNGKey(0)
    pk, xk = jax.random.split(key)
    params = prepare_params(init_params(pk))     # one-time weight prep (bf16)
    x = jax.random.normal(xk, (2, 3, 16, 16), jnp.float32)   # NCHW, like PyTorch
    fwd = jax.jit(hybrid_convnet_forward)
    out = fwd(params, x)
    jax.block_until_ready(out)
    assert out.shape == (2, NUM_CLASSES)
    print("KERNEL_OK")
</pallas_src>

<mosaic_0001>
module attributes {stable_mosaic.version = 11 : i64} {
  func.func @_mm_scale_bias_kernel(%arg0: i32, %arg1: memref<256x27xbf16, #tpu.memory_space<vmem>>, %arg2: memref<27x27xbf16, #tpu.memory_space<vmem>>, %arg3: memref<1x27xf32, #tpu.memory_space<vmem>>, %arg4: memref<1x27xf32, #tpu.memory_space<vmem>>, %arg5: memref<256x27xf32, #tpu.memory_space<vmem>>) attributes {dimension_semantics = [#tpu.dimension_semantics<parallel>], iteration_bounds = array<i64: 2>, scalar_prefetch = 0 : i64, scratch_operands = 0 : i64, tpu.core_type = #tpu.core_type<tc>, window_params = [{transform_indices = @transform_0, window_bounds = array<i64: 256, 27>}, {pipeline_mode = #tpu.pipeline_mode<synchronous>, transform_indices = @transform_1, window_bounds = array<i64: 27, 27>}, {pipeline_mode = #tpu.pipeline_mode<synchronous>, transform_indices = @transform_2, window_bounds = array<i64: 1, 27>}, {pipeline_mode = #tpu.pipeline_mode<synchronous>, transform_indices = @transform_3, window_bounds = array<i64: 1, 27>}, {transform_indices = @transform_4, window_bounds = array<i64: 256, 27>}]} {
    %c0 = arith.constant 0 : index
    %c0_0 = arith.constant 0 : index
    %0 = vector.load %arg1[%c0, %c0_0] : memref<256x27xbf16, #tpu.memory_space<vmem>>, vector<256x27xbf16>
    %c0_1 = arith.constant 0 : index
    %c0_2 = arith.constant 0 : index
    %1 = vector.load %arg2[%c0_1, %c0_2] : memref<27x27xbf16, #tpu.memory_space<vmem>>, vector<27x27xbf16>
    %cst = arith.constant dense<0.000000e+00> : vector<256x27xf32>
    %2 = tpu.matmul %0, %1, %cst {dimension_numbers = #tpu.dot_dimension_numbers<[1], [0], [0], [1], [0, 0, 1, 1], [], []>} : vector<256x27xbf16>, vector<27x27xbf16>, vector<256x27xf32> -> vector<256x27xf32>
    %c0_3 = arith.constant 0 : index
    %c0_4 = arith.constant 0 : index
    %3 = vector.load %arg3[%c0_3, %c0_4] : memref<1x27xf32, #tpu.memory_space<vmem>>, vector<1x27xf32>
    %4 = vector.broadcast %3 : vector<1x27xf32> to vector<256x27xf32>
    %5 = arith.mulf %2, %4 : vector<256x27xf32>
    %c0_5 = arith.constant 0 : index
    %c0_6 = arith.constant 0 : index
    %6 = vector.load %arg4[%c0_5, %c0_6] : memref<1x27xf32, #tpu.memory_space<vmem>>, vector<1x27xf32>
    %7 = vector.broadcast %6 : vector<1x27xf32> to vector<256x27xf32>
    %8 = arith.addf %5, %7 : vector<256x27xf32>
    %c0_7 = arith.constant 0 : index
    %c0_8 = arith.constant 0 : index
    %9 = vector.load %arg5[%c0_7, %c0_8] : memref<256x27xf32, #tpu.memory_space<vmem>>, vector<256x27xf32>
    tpu.vector_store %arg5[%c0_7, %c0_8], %8 {strides = array<i32>} : memref<256x27xf32, #tpu.memory_space<vmem>>, vector<256x27xf32>,
    return
  }
  func.func @transform_0(%arg0: i32) -> (i32, i32) {
    %c0_i32 = arith.constant 0 : i32
    %c0_i32_0 = arith.constant 0 : i32
    return %arg0, %c0_i32 : i32, i32
  }
  func.func @transform_1(%arg0: i32) -> (i32, i32) {
    %c0_i32 = arith.constant 0 : i32
    %c0_i32_0 = arith.constant 0 : i32
    %c0_i32_1 = arith.constant 0 : i32
    return %c0_i32, %c0_i32_0 : i32, i32
  }
  func.func @transform_2(%arg0: i32) -> (i32, i32) {
    %c0_i32 = arith.constant 0 : i32
    %c0_i32_0 = arith.constant 0 : i32
    %c0_i32_1 = arith.constant 0 : i32
    return %c0_i32, %c0_i32_0 : i32, i32
  }
  func.func @transform_3(%arg0: i32) -> (i32, i32) {
    %c0_i32 = arith.constant 0 : i32
    %c0_i32_0 = arith.constant 0 : i32
    %c0_i32_1 = arith.constant 0 : i32
    return %c0_i32, %c0_i32_0 : i32, i32
  }
  func.func @transform_4(%arg0: i32) -> (i32, i32) {
    %c0_i32 = arith.constant 0 : i32
    %c0_i32_0 = arith.constant 0 : i32
    return %arg0, %c0_i32 : i32, i32
  }
}

module attributes {stable_mosaic.version = 11 : i64} {
  func.func @_mm_scale_bias_kernel(%arg0: i32, %arg1: memref<256x27xbf16, #tpu.memory_space<vmem>>, %arg2: memref<27x32xbf16, #tpu.memory_space<vmem>>, %arg3: memref<1x32xf32, #tpu.memory_space<vmem>>, %arg4: memref<1x32xf32, #tpu.memory_space<vmem>>, %arg5: memref<256x32xf32, #tpu.memory_space<vmem>>) attributes {dimension_semantics = [#tpu.dimension_semantics<parallel>], iteration_bounds = array<i64: 2>, scalar_prefetch = 0 : i64, scratch_operands = 0 : i64, tpu.core_type = #tpu.core_type<tc>, window_params = [{transform_indices = @transform_0, window_bounds = array<i64: 256, 27>}, {pipeline_mode = #tpu.pipeline_mode<synchronous>, transform_indices = @transform_1, window_bounds = array<i64: 27, 32>}, {pipeline_mode = #tpu.pipeline_mode<synchronous>, transform_indices = @transform_2, window_bounds = array<i64: 1, 32>}, {pipeline_mode = #tpu.pipeline_mode<synchronous>, transform_indices = @transform_3, window_bounds = array<i64: 1, 32>}, {transform_indices = @transform_4, window_bounds = array<i64: 256, 32>}]} {
    %c0 = arith.constant 0 : index
    %c0_0 = arith.constant 0 : index
    %0 = vector.load %arg1[%c0, %c0_0] : memref<256x27xbf16, #tpu.memory_space<vmem>>, vector<256x27xbf16>
    %c0_1 = arith.constant 0 : index
    %c0_2 = arith.constant 0 : index
    %1 = vector.load %arg2[%c0_1, %c0_2] : memref<27x32xbf16, #tpu.memory_space<vmem>>, vector<27x32xbf16>
    %cst = arith.constant dense<0.000000e+00> : vector<256x32xf32>
    %2 = tpu.matmul %0, %1, %cst {dimension_numbers = #tpu.dot_dimension_numbers<[1], [0], [0], [1], [0, 0, 1, 1], [], []>} : vector<256x27xbf16>, vector<27x32xbf16>, vector<256x32xf32> -> vector<256x32xf32>
    %c0_3 = arith.constant 0 : index
    %c0_4 = arith.constant 0 : index
    %3 = vector.load %arg3[%c0_3, %c0_4] : memref<1x32xf32, #tpu.memory_space<vmem>>, vector<1x32xf32>
    %4 = vector.broadcast %3 : vector<1x32xf32> to vector<256x32xf32>
    %5 = arith.mulf %2, %4 : vector<256x32xf32>
    %c0_5 = arith.constant 0 : index
    %c0_6 = arith.constant 0 : index
    %6 = vector.load %arg4[%c0_5, %c0_6] : memref<1x32xf32, #tpu.memory_space<vmem>>, vector<1x32xf32>
    %7 = vector.broadcast %6 : vector<1x32xf32> to vector<256x32xf32>
    %8 = arith.addf %5, %7 : vector<256x32xf32>
    %cst_7 = arith.constant 0.000000e+00 : f32
    %9 = vector.broadcast %cst_7 : f32 to vector<256x32xf32>
    %10 = arith.maximumf %8, %9 : vector<256x32xf32>
    %c0_8 = arith.constant 0 : index
    %c0_9 = arith.constant 0 : index
    %11 = vector.load %arg5[%c0_8, %c0_9] : memref<256x32xf32, #tpu.memory_space<vmem>>, vector<256x32xf32>
    tpu.vector_store %arg5[%c0_8, %c0_9], %10 {strides = array<i32>} : memref<256x32xf32, #tpu.memory_space<vmem>>, vector<256x32xf32>,
    return
  }
  func.func @transform_0(%arg0: i32) -> (i32, i32) {
    %c0_i32 = arith.constant 0 : i32
    %c0_i32_0 = arith.constant 0 : i32
    return %arg0, %c0_i32 : i32, i32
  }
  func.func @transform_1(%arg0: i32) -> (i32, i32) {
    %c0_i32 = arith.constant 0 : i32
    %c0_i32_0 = arith.constant 0 : i32
    %c0_i32_1 = arith.constant 0 : i32
    return %c0_i32, %c0_i32_0 : i32, i32
  }
  func.func @transform_2(%arg0: i32) -> (i32, i32) {
    %c0_i32 = arith.constant 0 : i32
    %c0_i32_0 = arith.constant 0 : i32
    %c0_i32_1 = arith.constant 0 : i32
    return %c0_i32, %c0_i32_0 : i32, i32
  }
  func.func @transform_3(%arg0: i32) -> (i32, i32) {
    %c0_i32 = arith.constant 0 : i32
    %c0_i32_0 = arith.constant 0 : i32
    %c0_i32_1 = arith.constant 0 : i32
    return %c0_i32, %c0_i32_0 : i32, i32
  }
  func.func @transform_4(%arg0: i32) -> (i32, i32) {
    %c0_i32 = arith.constant 0 : i32
    %c0_i32_0 = arith.constant 0 : i32
    return %arg0, %c0_i32 : i32, i32
  }
}

module attributes {stable_mosaic.version = 11 : i64} {
  func.func @_mm_scale_bias_kernel(%arg0: i32, %arg1: memref<64x288xbf16, #tpu.memory_space<vmem>>, %arg2: memref<288x27xbf16, #tpu.memory_space<vmem>>, %arg3: memref<1x27xf32, #tpu.memory_space<vmem>>, %arg4: memref<1x27xf32, #tpu.memory_space<vmem>>, %arg5: memref<64x27xf32, #tpu.memory_space<vmem>>) attributes {dimension_semantics = [#tpu.dimension_semantics<parallel>], iteration_bounds = array<i64: 2>, scalar_prefetch = 0 : i64, scratch_operands = 0 : i64, tpu.core_type = #tpu.core_type<tc>, window_params = [{transform_indices = @transform_0, window_bounds = array<i64: 64, 288>}, {pipeline_mode = #tpu.pipeline_mode<synchronous>, transform_indices = @transform_1, window_bounds = array<i64: 288, 27>}, {pipeline_mode = #tpu.pipeline_mode<synchronous>, transform_indices = @transform_2, window_bounds = array<i64: 1, 27>}, {pipeline_mode = #tpu.pipeline_mode<synchronous>, transform_indices = @transform_3, window_bounds = array<i64: 1, 27>}, {transform_indices = @transform_4, window_bounds = array<i64: 64, 27>}]} {
    %c0 = arith.constant 0 : index
    %c0_0 = arith.constant 0 : index
    %0 = vector.load %arg1[%c0, %c0_0] : memref<64x288xbf16, #tpu.memory_space<vmem>>, vector<64x288xbf16>
    %c0_1 = arith.constant 0 : index
    %c0_2 = arith.constant 0 : index
    %1 = vector.load %arg2[%c0_1, %c0_2] : memref<288x27xbf16, #tpu.memory_space<vmem>>, vector<288x27xbf16>
    %cst = arith.constant dense<0.000000e+00> : vector<64x27xf32>
    %2 = tpu.matmul %0, %1, %cst {dimension_numbers = #tpu.dot_dimension_numbers<[1], [0], [0], [1], [0, 0, 1, 1], [], []>} : vector<64x288xbf16>, vector<288x27xbf16>, vector<64x27xf32> -> vector<64x27xf32>
    %c0_3 = arith.constant 0 : index
    %c0_4 = arith.constant 0 : index
    %3 = vector.load %arg3[%c0_3, %c0_4] : memref<1x27xf32, #tpu.memory_space<vmem>>, vector<1x27xf32>
    %4 = vector.broadcast %3 : vector<1x27xf32> to vector<64x27xf32>
    %5 = arith.mulf %2, %4 : vector<64x27xf32>
    %c0_5 = arith.constant 0 : index
    %c0_6 = arith.constant 0 : index
    %6 = vector.load %arg4[%c0_5, %c0_6] : memref<1x27xf32, #tpu.memory_space<vmem>>, vector<1x27xf32>
    %7 = vector.broadcast %6 : vector<1x27xf32> to vector<64x27xf32>
    %8 = arith.addf %5, %7 : vector<64x27xf32>
    %c0_7 = arith.constant 0 : index
    %c0_8 = arith.constant 0 : index
    %9 = vector.load %arg5[%c0_7, %c0_8] : memref<64x27xf32, #tpu.memory_space<vmem>>, vector<64x27xf32>
    tpu.vector_store %arg5[%c0_7, %c0_8], %8 {strides = array<i32>} : memref<64x27xf32, #tpu.memory_space<vmem>>, vector<64x27xf32>,
    return
  }
  func.func @transform_0(%arg0: i32) -> (i32, i32) {
    %c0_i32 = arith.constant 0 : i32
    %c0_i32_0 = arith.constant 0 : i32
    return %arg0, %c0_i32 : i32, i32
  }
  func.func @transform_1(%arg0: i32) -> (i32, i32) {
    %c0_i32 = arith.constant 0 : i32
    %c0_i32_0 = arith.constant 0 : i32
    %c0_i32_1 = arith.constant 0 : i32
    return %c0_i32, %c0_i32_0 : i32, i32
  }
  func.func @transform_2(%arg0: i32) -> (i32, i32) {
    %c0_i32 = arith.constant 0 : i32
    %c0_i32_0 = arith.constant 0 : i32
    %c0_i32_1 = arith.constant 0 : i32
    return %c0_i32, %c0_i32_0 : i32, i32
  }
  func.func @transform_3(%arg0: i32) -> (i32, i32) {
    %c0_i32 = arith.constant 0 : i32
    %c0_i32_0 = arith.constant 0 : i32
    %c0_i32_1 = arith.constant 0 : i32
    return %c0_i32, %c0_i32_0 : i32, i32
  }
  func.func @transform_4(%arg0: i32) -> (i32, i32) {
    %c0_i32 = arith.constant 0 : i32
    %c0_i32_0 = arith.constant 0 : i32
    return %arg0, %c0_i32 : i32, i32
  }
}

module attributes {stable_mosaic.version = 11 : i64} {
  func.func @_mm_scale_bias_kernel(%arg0: i32, %arg1: memref<64x288xbf16, #tpu.memory_space<vmem>>, %arg2: memref<288x64xbf16, #tpu.memory_space<vmem>>, %arg3: memref<1x64xf32, #tpu.memory_space<vmem>>, %arg4: memref<1x64xf32, #tpu.memory_space<vmem>>, %arg5: memref<64x64xf32, #tpu.memory_space<vmem>>) attributes {dimension_semantics = [#tpu.dimension_semantics<parallel>], iteration_bounds = array<i64: 2>, scalar_prefetch = 0 : i64, scratch_operands = 0 : i64, tpu.core_type = #tpu.core_type<tc>, window_params = [{transform_indices = @transform_0, window_bounds = array<i64: 64, 288>}, {pipeline_mode = #tpu.pipeline_mode<synchronous>, transform_indices = @transform_1, window_bounds = array<i64: 288, 64>}, {pipeline_mode = #tpu.pipeline_mode<synchronous>, transform_indices = @transform_2, window_bounds = array<i64: 1, 64>}, {pipeline_mode = #tpu.pipeline_mode<synchronous>, transform_indices = @transform_3, window_bounds = array<i64: 1, 64>}, {transform_indices = @transform_4, window_bounds = array<i64: 64, 64>}]} {
    %c0 = arith.constant 0 : index
    %c0_0 = arith.constant 0 : index
    %0 = vector.load %arg1[%c0, %c0_0] : memref<64x288xbf16, #tpu.memory_space<vmem>>, vector<64x288xbf16>
    %c0_1 = arith.constant 0 : index
    %c0_2 = arith.constant 0 : index
    %1 = vector.load %arg2[%c0_1, %c0_2] : memref<288x64xbf16, #tpu.memory_space<vmem>>, vector<288x64xbf16>
    %cst = arith.constant dense<0.000000e+00> : vector<64x64xf32>
    %2 = tpu.matmul %0, %1, %cst {dimension_numbers = #tpu.dot_dimension_numbers<[1], [0], [0], [1], [0, 0, 1, 1], [], []>} : vector<64x288xbf16>, vector<288x64xbf16>, vector<64x64xf32> -> vector<64x64xf32>
    %c0_3 = arith.constant 0 : index
    %c0_4 = arith.constant 0 : index
    %3 = vector.load %arg3[%c0_3, %c0_4] : memref<1x64xf32, #tpu.memory_space<vmem>>, vector<1x64xf32>
    %4 = vector.broadcast %3 : vector<1x64xf32> to vector<64x64xf32>
    %5 = arith.mulf %2, %4 : vector<64x64xf32>
    %c0_5 = arith.constant 0 : index
    %c0_6 = arith.constant 0 : index
    %6 = vector.load %arg4[%c0_5, %c0_6] : memref<1x64xf32, #tpu.memory_space<vmem>>, vector<1x64xf32>
    %7 = vector.broadcast %6 : vector<1x64xf32> to vector<64x64xf32>
    %8 = arith.addf %5, %7 : vector<64x64xf32>
    %cst_7 = arith.constant 0.000000e+00 : f32
    %9 = vector.broadcast %cst_7 : f32 to vector<64x64xf32>
    %10 = arith.maximumf %8, %9 : vector<64x64xf32>
    %c0_8 = arith.constant 0 : index
    %c0_9 = arith.constant 0 : index
    %11 = vector.load %arg5[%c0_8, %c0_9] : memref<64x64xf32, #tpu.memory_space<vmem>>, vector<64x64xf32>
    tpu.vector_store %arg5[%c0_8, %c0_9], %10 {strides = array<i32>} : memref<64x64xf32, #tpu.memory_space<vmem>>, vector<64x64xf32>,
    return
  }
  func.func @transform_0(%arg0: i32) -> (i32, i32) {
    %c0_i32 = arith.constant 0 : i32
    %c0_i32_0 = arith.constant 0 : i32
    return %arg0, %c0_i32 : i32, i32
  }
  func.func @transform_1(%arg0: i32) -> (i32, i32) {
    %c0_i32 = arith.constant 0 : i32
    %c0_i32_0 = arith.constant 0 : i32
    %c0_i32_1 = arith.constant 0 : i32
    return %c0_i32, %c0_i32_0 : i32, i32
  }
  func.func @transform_2(%arg0: i32) -> (i32, i32) {
    %c0_i32 = arith.constant 0 : i32
    %c0_i32_0 = arith.constant 0 : i32
    %c0_i32_1 = arith.constant 0 : i32
    return %c0_i32, %c0_i32_0 : i32, i32
  }
  func.func @transform_3(%arg0: i32) -> (i32, i32) {
    %c0_i32 = arith.constant 0 : i32
    %c0_i32_0 = arith.constant 0 : i32
    %c0_i32_1 = arith.constant 0 : i32
    return %c0_i32, %c0_i32_0 : i32, i32
  }
  func.func @transform_4(%arg0: i32) -> (i32, i32) {
    %c0_i32 = arith.constant 0 : i32
    %c0_i32_0 = arith.constant 0 : i32
    return %arg0, %c0_i32 : i32, i32
  }
}

module attributes {stable_mosaic.version = 11 : i64} {
  func.func @_mm_scale_bias_kernel(%arg0: i32, %arg1: memref<16x576xbf16, #tpu.memory_space<vmem>>, %arg2: memref<576x27xbf16, #tpu.memory_space<vmem>>, %arg3: memref<1x27xf32, #tpu.memory_space<vmem>>, %arg4: memref<1x27xf32, #tpu.memory_space<vmem>>, %arg5: memref<16x27xf32, #tpu.memory_space<vmem>>) attributes {dimension_semantics = [#tpu.dimension_semantics<parallel>], iteration_bounds = array<i64: 2>, scalar_prefetch = 0 : i64, scratch_operands = 0 : i64, tpu.core_type = #tpu.core_type<tc>, window_params = [{transform_indices = @transform_0, window_bounds = array<i64: 16, 576>}, {pipeline_mode = #tpu.pipeline_mode<synchronous>, transform_indices = @transform_1, window_bounds = array<i64: 576, 27>}, {pipeline_mode = #tpu.pipeline_mode<synchronous>, transform_indices = @transform_2, window_bounds = array<i64: 1, 27>}, {pipeline_mode = #tpu.pipeline_mode<synchronous>, transform_indices = @transform_3, window_bounds = array<i64: 1, 27>}, {transform_indices = @transform_4, window_bounds = array<i64: 16, 27>}]} {
    %c0 = arith.constant 0 : index
    %c0_0 = arith.constant 0 : index
    %0 = vector.load %arg1[%c0, %c0_0] : memref<16x576xbf16, #tpu.memory_space<vmem>>, vector<16x576xbf16>
    %c0_1 = arith.constant 0 : index
    %c0_2 = arith.constant 0 : index
    %1 = vector.load %arg2[%c0_1, %c0_2] : memref<576x27xbf16, #tpu.memory_space<vmem>>, vector<576x27xbf16>
    %cst = arith.constant dense<0.000000e+00> : vector<16x27xf32>
    %2 = tpu.matmul %0, %1, %cst {dimension_numbers = #tpu.dot_dimension_numbers<[1], [0], [0], [1], [0, 0, 1, 1], [], []>} : vector<16x576xbf16>, vector<576x27xbf16>, vector<16x27xf32> -> vector<16x27xf32>
    %c0_3 = arith.constant 0 : index
    %c0_4 = arith.constant 0 : index
    %3 = vector.load %arg3[%c0_3, %c0_4] : memref<1x27xf32, #tpu.memory_space<vmem>>, vector<1x27xf32>
    %4 = vector.broadcast %3 : vector<1x27xf32> to vector<16x27xf32>
    %5 = arith.mulf %2, %4 : vector<16x27xf32>
    %c0_5 = arith.constant 0 : index
    %c0_6 = arith.constant 0 : index
    %6 = vector.load %arg4[%c0_5, %c0_6] : memref<1x27xf32, #tpu.memory_space<vmem>>, vector<1x27xf32>
    %7 = vector.broadcast %6 : vector<1x27xf32> to vector<16x27xf32>
    %8 = arith.addf %5, %7 : vector<16x27xf32>
    %c0_7 = arith.constant 0 : index
    %c0_8 = arith.constant 0 : index
    %9 = vector.load %arg5[%c0_7, %c0_8] : memref<16x27xf32, #tpu.memory_space<vmem>>, vector<16x27xf32>
    tpu.vector_store %arg5[%c0_7, %c0_8], %8 {strides = array<i32>} : memref<16x27xf32, #tpu.memory_space<vmem>>, vector<16x27xf32>,
    return
  }
  func.func @transform_0(%arg0: i32) -> (i32, i32) {
    %c0_i32 = arith.constant 0 : i32
    %c0_i32_0 = arith.constant 0 : i32
    return %arg0, %c0_i32 : i32, i32
  }
  func.func @transform_1(%arg0: i32) -> (i32, i32) {
    %c0_i32 = arith.constant 0 : i32
    %c0_i32_0 = arith.constant 0 : i32
    %c0_i32_1 = arith.constant 0 : i32
    return %c0_i32, %c0_i32_0 : i32, i32
  }
  func.func @transform_2(%arg0: i32) -> (i32, i32) {
    %c0_i32 = arith.constant 0 : i32
    %c0_i32_0 = arith.constant 0 : i32
    %c0_i32_1 = arith.constant 0 : i32
    return %c0_i32, %c0_i32_0 : i32, i32
  }
  func.func @transform_3(%arg0: i32) -> (i32, i32) {
    %c0_i32 = arith.constant 0 : i32
    %c0_i32_0 = arith.constant 0 : i32
    %c0_i32_1 = arith.constant 0 : i32
    return %c0_i32, %c0_i32_0 : i32, i32
  }
  func.func @transform_4(%arg0: i32) -> (i32, i32) {
    %c0_i32 = arith.constant 0 : i32
    %c0_i32_0 = arith.constant 0 : i32
    return %arg0, %c0_i32 : i32, i32
  }
}

module attributes {stable_mosaic.version = 11 : i64} {
  func.func @_mm_scale_bias_kernel(%arg0: i32, %arg1: memref<16x576xbf16, #tpu.memory_space<vmem>>, %arg2: memref<576x128xbf16, #tpu.memory_space<vmem>>, %arg3: memref<1x128xf32, #tpu.memory_space<vmem>>, %arg4: memref<1x128xf32, #tpu.memory_space<vmem>>, %arg5: memref<16x128xf32, #tpu.memory_space<vmem>>) attributes {dimension_semantics = [#tpu.dimension_semantics<parallel>], iteration_bounds = array<i64: 2>, scalar_prefetch = 0 : i64, scratch_operands = 0 : i64, tpu.core_type = #tpu.core_type<tc>, window_params = [{transform_indices = @transform_0, window_bounds = array<i64: 16, 576>}, {pipeline_mode = #tpu.pipeline_mode<synchronous>, transform_indices = @transform_1, window_bounds = array<i64: 576, 128>}, {pipeline_mode = #tpu.pipeline_mode<synchronous>, transform_indices = @transform_2, window_bounds = array<i64: 1, 128>}, {pipeline_mode = #tpu.pipeline_mode<synchronous>, transform_indices = @transform_3, window_bounds = array<i64: 1, 128>}, {transform_indices = @transform_4, window_bounds = array<i64: 16, 128>}]} {
    %c0 = arith.constant 0 : index
    %c0_0 = arith.constant 0 : index
    %0 = vector.load %arg1[%c0, %c0_0] : memref<16x576xbf16, #tpu.memory_space<vmem>>, vector<16x576xbf16>
    %c0_1 = arith.constant 0 : index
    %c0_2 = arith.constant 0 : index
    %1 = vector.load %arg2[%c0_1, %c0_2] : memref<576x128xbf16, #tpu.memory_space<vmem>>, vector<576x128xbf16>
    %cst = arith.constant dense<0.000000e+00> : vector<16x128xf32>
    %2 = tpu.matmul %0, %1, %cst {dimension_numbers = #tpu.dot_dimension_numbers<[1], [0], [0], [1], [0, 0, 1, 1], [], []>} : vector<16x576xbf16>, vector<576x128xbf16>, vector<16x128xf32> -> vector<16x128xf32>
    %c0_3 = arith.constant 0 : index
    %c0_4 = arith.constant 0 : index
    %3 = vector.load %arg3[%c0_3, %c0_4] : memref<1x128xf32, #tpu.memory_space<vmem>>, vector<1x128xf32>
    %4 = vector.broadcast %3 : vector<1x128xf32> to vector<16x128xf32>
    %5 = arith.mulf %2, %4 : vector<16x128xf32>
    %c0_5 = arith.constant 0 : index
    %c0_6 = arith.constant 0 : index
    %6 = vector.load %arg4[%c0_5, %c0_6] : memref<1x128xf32, #tpu.memory_space<vmem>>, vector<1x128xf32>
    %7 = vector.broadcast %6 : vector<1x128xf32> to vector<16x128xf32>
    %8 = arith.addf %5, %7 : vector<16x128xf32>
    %cst_7 = arith.constant 0.000000e+00 : f32
    %9 = vector.broadcast %cst_7 : f32 to vector<16x128xf32>
    %10 = arith.maximumf %8, %9 : vector<16x128xf32>
    %c0_8 = arith.constant 0 : index
    %c0_9 = arith.constant 0 : index
    %11 = vector.load %arg5[%c0_8, %c0_9] : memref<16x128xf32, #tpu.memory_space<vmem>>, vector<16x128xf32>
    tpu.vector_store %arg5[%c0_8, %c0_9], %10 {strides = array<i32>} : memref<16x128xf32, #tpu.memory_space<vmem>>, vector<16x128xf32>,
    return
  }
  func.func @transform_0(%arg0: i32) -> (i32, i32) {
    %c0_i32 = arith.constant 0 : i32
    %c0_i32_0 = arith.constant 0 : i32
    return %arg0, %c0_i32 : i32, i32
  }
  func.func @transform_1(%arg0: i32) -> (i32, i32) {
    %c0_i32 = arith.constant 0 : i32
    %c0_i32_0 = arith.constant 0 : i32
    %c0_i32_1 = arith.constant 0 : i32
    return %c0_i32, %c0_i32_0 : i32, i32
  }
  func.func @transform_2(%arg0: i32) -> (i32, i32) {
    %c0_i32 = arith.constant 0 : i32
    %c0_i32_0 = arith.constant 0 : i32
    %c0_i32_1 = arith.constant 0 : i32
    return %c0_i32, %c0_i32_0 : i32, i32
  }
  func.func @transform_3(%arg0: i32) -> (i32, i32) {
    %c0_i32 = arith.constant 0 : i32
    %c0_i32_0 = arith.constant 0 : i32
    %c0_i32_1 = arith.constant 0 : i32
    return %c0_i32, %c0_i32_0 : i32, i32
  }
  func.func @transform_4(%arg0: i32) -> (i32, i32) {
    %c0_i32 = arith.constant 0 : i32
    %c0_i32_0 = arith.constant 0 : i32
    return %arg0, %c0_i32 : i32, i32
  }
}

module attributes {stable_mosaic.version = 11 : i64} {
  func.func @_mm_scale_bias_kernel(%arg0: i32, %arg1: memref<16x1152xbf16, #tpu.memory_space<vmem>>, %arg2: memref<1152x6xbf16, #tpu.memory_space<vmem>>, %arg3: memref<1x6xf32, #tpu.memory_space<vmem>>, %arg4: memref<1x6xf32, #tpu.memory_space<vmem>>, %arg5: memref<16x6xf32, #tpu.memory_space<vmem>>) attributes {dimension_semantics = [#tpu.dimension_semantics<parallel>], iteration_bounds = array<i64: 2>, scalar_prefetch = 0 : i64, scratch_operands = 0 : i64, tpu.core_type = #tpu.core_type<tc>, window_params = [{transform_indices = @transform_0, window_bounds = array<i64: 16, 1152>}, {pipeline_mode = #tpu.pipeline_mode<synchronous>, transform_indices = @transform_1, window_bounds = array<i64: 1152, 6>}, {pipeline_mode = #tpu.pipeline_mode<synchronous>, transform_indices = @transform_2, window_bounds = array<i64: 1, 6>}, {pipeline_mode = #tpu.pipeline_mode<synchronous>, transform_indices = @transform_3, window_bounds = array<i64: 1, 6>}, {transform_indices = @transform_4, window_bounds = array<i64: 16, 6>}]} {
    %c0 = arith.constant 0 : index
    %c0_0 = arith.constant 0 : index
    %0 = vector.load %arg1[%c0, %c0_0] : memref<16x1152xbf16, #tpu.memory_space<vmem>>, vector<16x1152xbf16>
    %c0_1 = arith.constant 0 : index
    %c0_2 = arith.constant 0 : index
    %1 = vector.load %arg2[%c0_1, %c0_2] : memref<1152x6xbf16, #tpu.memory_space<vmem>>, vector<1152x6xbf16>
    %cst = arith.constant dense<0.000000e+00> : vector<16x6xf32>
    %2 = tpu.matmul %0, %1, %cst {dimension_numbers = #tpu.dot_dimension_numbers<[1], [0], [0], [1], [0, 0, 1, 1], [], []>} : vector<16x1152xbf16>, vector<1152x6xbf16>, vector<16x6xf32> -> vector<16x6xf32>
    %c0_3 = arith.constant 0 : index
    %c0_4 = arith.constant 0 : index
    %3 = vector.load %arg3[%c0_3, %c0_4] : memref<1x6xf32, #tpu.memory_space<vmem>>, vector<1x6xf32>
    %4 = vector.broadcast %3 : vector<1x6xf32> to vector<16x6xf32>
    %5 = arith.mulf %2, %4 : vector<16x6xf32>
    %c0_5 = arith.constant 0 : index
    %c0_6 = arith.constant 0 : index
    %6 = vector.load %arg4[%c0_5, %c0_6] : memref<1x6xf32, #tpu.memory_space<vmem>>, vector<1x6xf32>
    %7 = vector.broadcast %6 : vector<1x6xf32> to vector<16x6xf32>
    %8 = arith.addf %5, %7 : vector<16x6xf32>
    %c0_7 = arith.constant 0 : index
    %c0_8 = arith.constant 0 : index
    %9 = vector.load %arg5[%c0_7, %c0_8] : memref<16x6xf32, #tpu.memory_space<vmem>>, vector<16x6xf32>
    tpu.vector_store %arg5[%c0_7, %c0_8], %8 {strides = array<i32>} : memref<16x6xf32, #tpu.memory_space<vmem>>, vector<16x6xf32>,
    return
  }
  func.func @transform_0(%arg0: i32) -> (i32, i32) {
    %c0_i32 = arith.constant 0 : i32
    %c0_i32_0 = arith.constant 0 : i32
    return %arg0, %c0_i32 : i32, i32
  }
  func.func @transform_1(%arg0: i32) -> (i32, i32) {
    %c0_i32 = arith.constant 0 : i32
    %c0_i32_0 = arith.constant 0 : i32
    %c0_i32_1 = arith.constant 0 : i32
    return %c0_i32, %c0_i32_0 : i32, i32
  }
  func.func @transform_2(%arg0: i32) -> (i32, i32) {
    %c0_i32 = arith.constant 0 : i32
    %c0_i32_0 = arith.constant 0 : i32
    %c0_i32_1 = arith.constant 0 : i32
    return %c0_i32, %c0_i32_0 : i32, i32
  }
  func.func @transform_3(%arg0: i32) -> (i32, i32) {
    %c0_i32 = arith.constant 0 : i32
    %c0_i32_0 = arith.constant 0 : i32
    %c0_i32_1 = arith.constant 0 : i32
    return %c0_i32, %c0_i32_0 : i32, i32
  }
  func.func @transform_4(%arg0: i32) -> (i32, i32) {
    %c0_i32 = arith.constant 0 : i32
    %c0_i32_0 = arith.constant 0 : i32
    return %arg0, %c0_i32 : i32, i32
  }
}

module attributes {stable_mosaic.version = 11 : i64} {
  func.func @_mm_scale_bias_kernel(%arg0: i32, %arg1: memref<16x384xbf16, #tpu.memory_space<vmem>>, %arg2: memref<384x128xbf16, #tpu.memory_space<vmem>>, %arg3: memref<1x128xf32, #tpu.memory_space<vmem>>, %arg4: memref<1x128xf32, #tpu.memory_space<vmem>>, %arg5: memref<16x128xf32, #tpu.memory_space<vmem>>) attributes {dimension_semantics = [#tpu.dimension_semantics<parallel>], iteration_bounds = array<i64: 2>, scalar_prefetch = 0 : i64, scratch_operands = 0 : i64, tpu.core_type = #tpu.core_type<tc>, window_params = [{transform_indices = @transform_0, window_bounds = array<i64: 16, 384>}, {pipeline_mode = #tpu.pipeline_mode<synchronous>, transform_indices = @transform_1, window_bounds = array<i64: 384, 128>}, {pipeline_mode = #tpu.pipeline_mode<synchronous>, transform_indices = @transform_2, window_bounds = array<i64: 1, 128>}, {pipeline_mode = #tpu.pipeline_mode<synchronous>, transform_indices = @transform_3, window_bounds = array<i64: 1, 128>}, {transform_indices = @transform_4, window_bounds = array<i64: 16, 128>}]} {
    %c0 = arith.constant 0 : index
    %c0_0 = arith.constant 0 : index
    %0 = vector.load %arg1[%c0, %c0_0] : memref<16x384xbf16, #tpu.memory_space<vmem>>, vector<16x384xbf16>
    %c0_1 = arith.constant 0 : index
    %c0_2 = arith.constant 0 : index
    %1 = vector.load %arg2[%c0_1, %c0_2] : memref<384x128xbf16, #tpu.memory_space<vmem>>, vector<384x128xbf16>
    %cst = arith.constant dense<0.000000e+00> : vector<16x128xf32>
    %2 = tpu.matmul %0, %1, %cst {dimension_numbers = #tpu.dot_dimension_numbers<[1], [0], [0], [1], [0, 0, 1, 1], [], []>} : vector<16x384xbf16>, vector<384x128xbf16>, vector<16x128xf32> -> vector<16x128xf32>
    %c0_3 = arith.constant 0 : index
    %c0_4 = arith.constant 0 : index
    %3 = vector.load %arg3[%c0_3, %c0_4] : memref<1x128xf32, #tpu.memory_space<vmem>>, vector<1x128xf32>
    %4 = vector.broadcast %3 : vector<1x128xf32> to vector<16x128xf32>
    %5 = arith.mulf %2, %4 : vector<16x128xf32>
    %c0_5 = arith.constant 0 : index
    %c0_6 = arith.constant 0 : index
    %6 = vector.load %arg4[%c0_5, %c0_6] : memref<1x128xf32, #tpu.memory_space<vmem>>, vector<1x128xf32>
    %7 = vector.broadcast %6 : vector<1x128xf32> to vector<16x128xf32>
    %8 = arith.addf %5, %7 : vector<16x128xf32>
    %c0_7 = arith.constant 0 : index
    %c0_8 = arith.constant 0 : index
    %9 = vector.load %arg5[%c0_7, %c0_8] : memref<16x128xf32, #tpu.memory_space<vmem>>, vector<16x128xf32>
    tpu.vector_store %arg5[%c0_7, %c0_8], %8 {strides = array<i32>} : memref<16x128xf32, #tpu.memory_space<vmem>>, vector<16x128xf32>,
    return
  }
  func.func @transform_0(%arg0: i32) -> (i32, i32) {
    %c0_i32 = arith.constant 0 : i32
    %c0_i32_0 = arith.constant 0 : i32
    return %arg0, %c0_i32 : i32, i32
  }
  func.func @transform_1(%arg0: i32) -> (i32, i32) {
    %c0_i32 = arith.constant 0 : i32
    %c0_i32_0 = arith.constant 0 : i32
    %c0_i32_1 = arith.constant 0 : i32
    return %c0_i32, %c0_i32_0 : i32, i32
  }
  func.func @transform_2(%arg0: i32) -> (i32, i32) {
    %c0_i32 = arith.constant 0 : i32
    %c0_i32_0 = arith.constant 0 : i32
    %c0_i32_1 = arith.constant 0 : i32
    return %c0_i32, %c0_i32_0 : i32, i32
  }
  func.func @transform_3(%arg0: i32) -> (i32, i32) {
    %c0_i32 = arith.constant 0 : i32
    %c0_i32_0 = arith.constant 0 : i32
    %c0_i32_1 = arith.constant 0 : i32
    return %c0_i32, %c0_i32_0 : i32, i32
  }
  func.func @transform_4(%arg0: i32) -> (i32, i32) {
    %c0_i32 = arith.constant 0 : i32
    %c0_i32_0 = arith.constant 0 : i32
    return %arg0, %c0_i32 : i32, i32
  }
}

module attributes {stable_mosaic.version = 11 : i64} {
  func.func @_mm_scale_bias_kernel(%arg0: i32, %arg1: memref<16x384xbf16, #tpu.memory_space<vmem>>, %arg2: memref<384x256xbf16, #tpu.memory_space<vmem>>, %arg3: memref<1x256xf32, #tpu.memory_space<vmem>>, %arg4: memref<1x256xf32, #tpu.memory_space<vmem>>, %arg5: memref<16x256xf32, #tpu.memory_space<vmem>>) attributes {dimension_semantics = [#tpu.dimension_semantics<parallel>], iteration_bounds = array<i64: 2>, scalar_prefetch = 0 : i64, scratch_operands = 0 : i64, tpu.core_type = #tpu.core_type<tc>, window_params = [{transform_indices = @transform_0, window_bounds = array<i64: 16, 384>}, {pipeline_mode = #tpu.pipeline_mode<synchronous>, transform_indices = @transform_1, window_bounds = array<i64: 384, 256>}, {pipeline_mode = #tpu.pipeline_mode<synchronous>, transform_indices = @transform_2, window_bounds = array<i64: 1, 256>}, {pipeline_mode = #tpu.pipeline_mode<synchronous>, transform_indices = @transform_3, window_bounds = array<i64: 1, 256>}, {transform_indices = @transform_4, window_bounds = array<i64: 16, 256>}]} {
    %c0 = arith.constant 0 : index
    %c0_0 = arith.constant 0 : index
    %0 = vector.load %arg1[%c0, %c0_0] : memref<16x384xbf16, #tpu.memory_space<vmem>>, vector<16x384xbf16>
    %c0_1 = arith.constant 0 : index
    %c0_2 = arith.constant 0 : index
    %1 = vector.load %arg2[%c0_1, %c0_2] : memref<384x256xbf16, #tpu.memory_space<vmem>>, vector<384x256xbf16>
    %cst = arith.constant dense<0.000000e+00> : vector<16x256xf32>
    %2 = tpu.matmul %0, %1, %cst {dimension_numbers = #tpu.dot_dimension_numbers<[1], [0], [0], [1], [0, 0, 1, 1], [], []>} : vector<16x384xbf16>, vector<384x256xbf16>, vector<16x256xf32> -> vector<16x256xf32>
    %c0_3 = arith.constant 0 : index
    %c0_4 = arith.constant 0 : index
    %3 = vector.load %arg3[%c0_3, %c0_4] : memref<1x256xf32, #tpu.memory_space<vmem>>, vector<1x256xf32>
    %4 = vector.broadcast %3 : vector<1x256xf32> to vector<16x256xf32>
    %5 = arith.mulf %2, %4 : vector<16x256xf32>
    %c0_5 = arith.constant 0 : index
    %c0_6 = arith.constant 0 : index
    %6 = vector.load %arg4[%c0_5, %c0_6] : memref<1x256xf32, #tpu.memory_space<vmem>>, vector<1x256xf32>
    %7 = vector.broadcast %6 : vector<1x256xf32> to vector<16x256xf32>
    %8 = arith.addf %5, %7 : vector<16x256xf32>
    %c0_7 = arith.constant 0 : index
    %c0_8 = arith.constant 0 : index
    %9 = vector.load %arg5[%c0_7, %c0_8] : memref<16x256xf32, #tpu.memory_space<vmem>>, vector<16x256xf32>
    tpu.vector_store %arg5[%c0_7, %c0_8], %8 {strides = array<i32>} : memref<16x256xf32, #tpu.memory_space<vmem>>, vector<16x256xf32>,
    return
  }
  func.func @transform_0(%arg0: i32) -> (i32, i32) {
    %c0_i32 = arith.constant 0 : i32
    %c0_i32_0 = arith.constant 0 : i32
    return %arg0, %c0_i32 : i32, i32
  }
  func.func @transform_1(%arg0: i32) -> (i32, i32) {
    %c0_i32 = arith.constant 0 : i32
    %c0_i32_0 = arith.constant 0 : i32
    %c0_i32_1 = arith.constant 0 : i32
    return %c0_i32, %c0_i32_0 : i32, i32
  }
  func.func @transform_2(%arg0: i32) -> (i32, i32) {
    %c0_i32 = arith.constant 0 : i32
    %c0_i32_0 = arith.constant 0 : i32
    %c0_i32_1 = arith.constant 0 : i32
    return %c0_i32, %c0_i32_0 : i32, i32
  }
  func.func @transform_3(%arg0: i32) -> (i32, i32) {
    %c0_i32 = arith.constant 0 : i32
    %c0_i32_0 = arith.constant 0 : i32
    %c0_i32_1 = arith.constant 0 : i32
    return %c0_i32, %c0_i32_0 : i32, i32
  }
  func.func @transform_4(%arg0: i32) -> (i32, i32) {
    %c0_i32 = arith.constant 0 : i32
    %c0_i32_0 = arith.constant 0 : i32
    return %arg0, %c0_i32 : i32, i32
  }
}

module attributes {stable_mosaic.version = 11 : i64} {
  func.func @_mm_scale_bias_kernel(%arg0: i32, %arg1: memref<16x2304xbf16, #tpu.memory_space<vmem>>, %arg2: memref<2304x6xbf16, #tpu.memory_space<vmem>>, %arg3: memref<1x6xf32, #tpu.memory_space<vmem>>, %arg4: memref<1x6xf32, #tpu.memory_space<vmem>>, %arg5: memref<16x6xf32, #tpu.memory_space<vmem>>) attributes {dimension_semantics = [#tpu.dimension_semantics<parallel>], iteration_bounds = array<i64: 2>, scalar_prefetch = 0 : i64, scratch_operands = 0 : i64, tpu.core_type = #tpu.core_type<tc>, window_params = [{transform_indices = @transform_0, window_bounds = array<i64: 16, 2304>}, {pipeline_mode = #tpu.pipeline_mode<synchronous>, transform_indices = @transform_1, window_bounds = array<i64: 2304, 6>}, {pipeline_mode = #tpu.pipeline_mode<synchronous>, transform_indices = @transform_2, window_bounds = array<i64: 1, 6>}, {pipeline_mode = #tpu.pipeline_mode<synchronous>, transform_indices = @transform_3, window_bounds = array<i64: 1, 6>}, {transform_indices = @transform_4, window_bounds = array<i64: 16, 6>}]} {
    %c0 = arith.constant 0 : index
    %c0_0 = arith.constant 0 : index
    %0 = vector.load %arg1[%c0, %c0_0] : memref<16x2304xbf16, #tpu.memory_space<vmem>>, vector<16x2304xbf16>
    %c0_1 = arith.constant 0 : index
    %c0_2 = arith.constant 0 : index
    %1 = vector.load %arg2[%c0_1, %c0_2] : memref<2304x6xbf16, #tpu.memory_space<vmem>>, vector<2304x6xbf16>
    %cst = arith.constant dense<0.000000e+00> : vector<16x6xf32>
    %2 = tpu.matmul %0, %1, %cst {dimension_numbers = #tpu.dot_dimension_numbers<[1], [0], [0], [1], [0, 0, 1, 1], [], []>} : vector<16x2304xbf16>, vector<2304x6xbf16>, vector<16x6xf32> -> vector<16x6xf32>
    %c0_3 = arith.constant 0 : index
    %c0_4 = arith.constant 0 : index
    %3 = vector.load %arg3[%c0_3, %c0_4] : memref<1x6xf32, #tpu.memory_space<vmem>>, vector<1x6xf32>
    %4 = vector.broadcast %3 : vector<1x6xf32> to vector<16x6xf32>
    %5 = arith.mulf %2, %4 : vector<16x6xf32>
    %c0_5 = arith.constant 0 : index
    %c0_6 = arith.constant 0 : index
    %6 = vector.load %arg4[%c0_5, %c0_6] : memref<1x6xf32, #tpu.memory_space<vmem>>, vector<1x6xf32>
    %7 = vector.broadcast %6 : vector<1x6xf32> to vector<16x6xf32>
    %8 = arith.addf %5, %7 : vector<16x6xf32>
    %c0_7 = arith.constant 0 : index
    %c0_8 = arith.constant 0 : index
    %9 = vector.load %arg5[%c0_7, %c0_8] : memref<16x6xf32, #tpu.memory_space<vmem>>, vector<16x6xf32>
    tpu.vector_store %arg5[%c0_7, %c0_8], %8 {strides = array<i32>} : memref<16x6xf32, #tpu.memory_space<vmem>>, vector<16x6xf32>,
    return
  }
  func.func @transform_0(%arg0: i32) -> (i32, i32) {
    %c0_i32 = arith.constant 0 : i32
    %c0_i32_0 = arith.constant 0 : i32
    return %arg0, %c0_i32 : i32, i32
  }
  func.func @transform_1(%arg0: i32) -> (i32, i32) {
    %c0_i32 = arith.constant 0 : i32
    %c0_i32_0 = arith.constant 0 : i32
    %c0_i32_1 = arith.constant 0 : i32
    return %c0_i32, %c0_i32_0 : i32, i32
  }
  func.func @transform_2(%arg0: i32) -> (i32, i32) {
    %c0_i32 = arith.constant 0 : i32
    %c0_i32_0 = arith.constant 0 : i32
    %c0_i32_1 = arith.constant 0 : i32
    return %c0_i32, %c0_i32_0 : i32, i32
  }
  func.func @transform_3(%arg0: i32) -> (i32, i32) {
    %c0_i32 = arith.constant 0 : i32
    %c0_i32_0 = arith.constant 0 : i32
    %c0_i32_1 = arith.constant 0 : i32
    return %c0_i32, %c0_i32_0 : i32, i32
  }
  func.func @transform_4(%arg0: i32) -> (i32, i32) {
    %c0_i32 = arith.constant 0 : i32
    %c0_i32_0 = arith.constant 0 : i32
    return %arg0, %c0_i32 : i32, i32
  }
}

module attributes {stable_mosaic.version = 11 : i64} {
  func.func @_mm_scale_bias_kernel(%arg0: i32, %arg1: memref<16x768xbf16, #tpu.memory_space<vmem>>, %arg2: memref<768x256xbf16, #tpu.memory_space<vmem>>, %arg3: memref<1x256xf32, #tpu.memory_space<vmem>>, %arg4: memref<1x256xf32, #tpu.memory_space<vmem>>, %arg5: memref<16x256xf32, #tpu.memory_space<vmem>>) attributes {dimension_semantics = [#tpu.dimension_semantics<parallel>], iteration_bounds = array<i64: 2>, scalar_prefetch = 0 : i64, scratch_operands = 0 : i64, tpu.core_type = #tpu.core_type<tc>, window_params = [{transform_indices = @transform_0, window_bounds = array<i64: 16, 768>}, {pipeline_mode = #tpu.pipeline_mode<synchronous>, transform_indices = @transform_1, window_bounds = array<i64: 768, 256>}, {pipeline_mode = #tpu.pipeline_mode<synchronous>, transform_indices = @transform_2, window_bounds = array<i64: 1, 256>}, {pipeline_mode = #tpu.pipeline_mode<synchronous>, transform_indices = @transform_3, window_bounds = array<i64: 1, 256>}, {transform_indices = @transform_4, window_bounds = array<i64: 16, 256>}]} {
    %c0 = arith.constant 0 : index
    %c0_0 = arith.constant 0 : index
    %0 = vector.load %arg1[%c0, %c0_0] : memref<16x768xbf16, #tpu.memory_space<vmem>>, vector<16x768xbf16>
    %c0_1 = arith.constant 0 : index
    %c0_2 = arith.constant 0 : index
    %1 = vector.load %arg2[%c0_1, %c0_2] : memref<768x256xbf16, #tpu.memory_space<vmem>>, vector<768x256xbf16>
    %cst = arith.constant dense<0.000000e+00> : vector<16x256xf32>
    %2 = tpu.matmul %0, %1, %cst {dimension_numbers = #tpu.dot_dimension_numbers<[1], [0], [0], [1], [0, 0, 1, 1], [], []>} : vector<16x768xbf16>, vector<768x256xbf16>, vector<16x256xf32> -> vector<16x256xf32>
    %c0_3 = arith.constant 0 : index
    %c0_4 = arith.constant 0 : index
    %3 = vector.load %arg3[%c0_3, %c0_4] : memref<1x256xf32, #tpu.memory_space<vmem>>, vector<1x256xf32>
    %4 = vector.broadcast %3 : vector<1x256xf32> to vector<16x256xf32>
    %5 = arith.mulf %2, %4 : vector<16x256xf32>
    %c0_5 = arith.constant 0 : index
    %c0_6 = arith.constant 0 : index
    %6 = vector.load %arg4[%c0_5, %c0_6] : memref<1x256xf32, #tpu.memory_space<vmem>>, vector<1x256xf32>
    %7 = vector.broadcast %6 : vector<1x256xf32> to vector<16x256xf32>
    %8 = arith.addf %5, %7 : vector<16x256xf32>
    %c0_7 = arith.constant 0 : index
    %c0_8 = arith.constant 0 : index
    %9 = vector.load %arg5[%c0_7, %c0_8] : memref<16x256xf32, #tpu.memory_space<vmem>>, vector<16x256xf32>
    tpu.vector_store %arg5[%c0_7, %c0_8], %8 {strides = array<i32>} : memref<16x256xf32, #tpu.memory_space<vmem>>, vector<16x256xf32>,
    return
  }
  func.func @transform_0(%arg0: i32) -> (i32, i32) {
    %c0_i32 = arith.constant 0 : i32
    %c0_i32_0 = arith.constant 0 : i32
    return %arg0, %c0_i32 : i32, i32
  }
  func.func @transform_1(%arg0: i32) -> (i32, i32) {
    %c0_i32 = arith.constant 0 : i32
    %c0_i32_0 = arith.constant 0 : i32
    %c0_i32_1 = arith.constant 0 : i32
    return %c0_i32, %c0_i32_0 : i32, i32
  }
  func.func @transform_2(%arg0: i32) -> (i32, i32) {
    %c0_i32 = arith.constant 0 : i32
    %c0_i32_0 = arith.constant 0 : i32
    %c0_i32_1 = arith.constant 0 : i32
    return %c0_i32, %c0_i32_0 : i32, i32
  }
  func.func @transform_3(%arg0: i32) -> (i32, i32) {
    %c0_i32 = arith.constant 0 : i32
    %c0_i32_0 = arith.constant 0 : i32
    %c0_i32_1 = arith.constant 0 : i32
    return %c0_i32, %c0_i32_0 : i32, i32
  }
  func.func @transform_4(%arg0: i32) -> (i32, i32) {
    %c0_i32 = arith.constant 0 : i32
    %c0_i32_0 = arith.constant 0 : i32
    return %arg0, %c0_i32 : i32, i32
  }
}

</mosaic_0001>

<bundles_post_ra>
// kernel: hybrid_convnet_forward.12
= control target key start
LH: loop header
LB: loop body
LE: loop exit
PB: predicated region body
PF: predicated region fallthrough
CT: control target
= control target key end

     0   :  { %9 = vsyncpa [#allocation3], 0  ;;  %s1332_s0 = inlined_call_operand.vmem [shape: bf16[512,27], index: 0, kind: input, shape index: {}]   ;;  %s1333_s1 = inlined_call_operand.hbm [shape: bf16[27,27], index: 1, kind: input, shape index: {}]   ;;  %s1334_s2 = inlined_call_operand.hbm [shape: f32[1,27], index: 2, kind: input, shape index: {}]   ;;  %s1335_s3 = inlined_call_operand.hbm [shape: f32[1,27], index: 3, kind: input, shape index: {}]   ;;  %s1336_s4 = inlined_call_operand.vmem [shape: f32[512,27], index: 4, kind: output, shape index: {}]  }
   0x1   :  { %10 = vsyncpa [#allocation5], 0  ;;  %s1079_s15 = smov 0  }
   0x2 LB: > { %s1048_s16 = smov [#allocation4]   ;;  %s783_s18 = sadd.s32 4294967295, %s1046_s15   ;;  %s1046_s15 = sphi %s1079_s15, %s16_s15  }
   0x3   : > { %s162_s17 = sshll.u32 %s1048_s16, 4  ;;  %p785_p0 = scmp.ge.s32.totalorder %s1046_s15, 1  ;;  %s163_s17 = int_to_ptr.vmem [resolvable:$true] %s162_s17 }
   0x4   : > { %p136_p1 = scmp.lt.s32.totalorder %s1046_s15, 3  ;;  %p1089_p2 = scmp.eq.s32.totalorder %s783_s18, 0 }
   0x5   : > { %s1049_s21 = smov [#allocation2]   ;;  %s1050_s24 = smov [#allocation6]  }
   0x6   : > { %s1340_s19 = scalar_select %p1089_p2, 1, 0 }
   0x7   : > { %p1093_p3 = pnand %p785_p0, %p136_p1  ;;  %s148_s22 = sshll.u32 %s1049_s21, 4  ;;  %s149_s22 = int_to_ptr.vmem [resolvable:$true] %s148_s22 }
   0x8   : > { %s173_s25 = sshll.u32 %s1050_s24, 4  ;;  %s965_s26 = scalar_lea.vmem %s163_s17, 16  ;;  %s1105_s25 = int_to_ptr.vmem [resolvable:$true] %s173_s25 }
   0x9   : > { %s1341_s20 = scalar_select %p1093_p3, 1, 0 }
   0xa   : > { %p906_p4 = pneg %p1093_p3  ;;  %p966_p7 = scmp.ne.s32.totalorder %s163_s17, %s965_s26 }
   0xb   : > { %s972_s27 = scalar_lea.vmem %s163_s17, 32  ;;  %p973_p10 = scmp.lt.s32.totalorder %s163_s17, %s163_s17 }
   0xc   : > { %p1101_p5 = pnand %p1089_p2, %p906_p4  ;;  %p974_p11 = scmp.lt.s32.totalorder %s972_s27, %s965_s26 }
   0xe   : > { %p956_p6 = pneg %p1101_p5  ;;  %p975_p12 = por %p974_p11, %p973_p10 }
  0x10   : > { %p968_p8 = pnand %p966_p7, %p956_p6 }
  0x12   : > { %p969_p9 = pneg %p968_p8 }
  0x14   : > { %p976_p13 = pnand %p975_p12, %p969_p9 }
  0x16   : > { %979 = shalt.err (!%p976_p13)
}
  0x17   : > { %912 = dma.hbm_to_vmem [thread:$0]  (!%p1101_p5), %s1334_s2, 16, %s163_s17, [#allocation5]  }
  0x18   : > { %s991_s30 = scalar_lea.vmem %s149_s22, 256  ;;  %p999_p7 = scmp.lt.s32.totalorder %s149_s22, %s149_s22 }
  0x19   : > { %p992_p0 = scmp.ne.s32.totalorder %s149_s22, %s991_s30  ;;  %p1000_p8 = scmp.lt.s32.totalorder %s991_s30, %s991_s30 }
  0x1b   : > { %p994_p1 = pnand %p992_p0, %p956_p6  ;;  %p1001_p2 = por %p1000_p8, %p999_p7 }
  0x1d   : > { %p995_p4 = pneg %p994_p1 }
  0x1f   : > { %p1002_p3 = pnand %p1001_p2, %p995_p4 }
  0x21   : > { %1005 = shalt.err (!%p1002_p3)
}
  0x22   : > { %s1051_s5 = smov 64   ;;  %s1052_s6 = smov 4  }
  0x23   : > { %909 = dma.hbm_to_vmem [thread:$0]  (!%p1101_p5), %s1333_s1, 256, %s149_s22, [#allocation3], %s1051_s5, %s1051_s5, %s1052_s6  }
  0x24   : > { %s1017_s9 = scalar_lea.vmem %s1105_s25, 16  ;;  %s1024_s10 = scalar_lea.vmem %s1105_s25, 32 }
  0x25   : > { %p1018_p9 = scmp.ne.s32.totalorder %s1105_s25, %s1017_s9  ;;  %p1025_p3 = scmp.lt.s32.totalorder %s1105_s25, %s1105_s25 }
  0x26   : > { %p1026_p11 = scmp.lt.s32.totalorder %s1024_s10, %s1017_s9 }
  0x27   : > { %p1020_p10 = pnand %p1018_p9, %p956_p6 }
  0x28   : > { %p1027_p12 = por %p1026_p11, %p1025_p3 }
  0x29   : > { %p1021_p2 = pneg %p1020_p10 }
  0x2b   : > { %p1028_p13 = pnand %p1027_p12, %p1021_p2 }
  0x2d   : > { %1031 = shalt.err (!%p1028_p13)
}
  0x2e   : > { %915 = dma.hbm_to_vmem [thread:$0]  (!%p1101_p5), %s1335_s3, 16, %s1105_s25, [#allocation5]  }
  0x2f   : > { %p1343_p0 = scmp.ne.s32.totalorder %s1341_s20, 0 }
  0x30   : > { %p1344_p6 = scmp.ne.s32.totalorder (!%p1343_p0), %s1340_s19, 0 }
  0x31   : > { %195 = sbr.rel (%p1343_p0) target bundleno = 298 (0x12a), region = 36 }
  0x36   : > { %1037 = dma.done.wait (%p1344_p6), [#allocation3], 256  }
  0x37   : > { %1039 = vsyncadd (%p1344_p6), [#allocation3], 4294967040 }
  0x38   : > { %1041 = dma.done.wait (%p1344_p6), [#allocation5], 32  }
  0x39   : > { %1043 = vsyncadd (%p1344_p6), [#allocation5], 4294967264  ;;  %vm418_vm0 = vcmask 1044480   ;;  %s794_s13 = sshll.u32 %s783_s18, 5  ;;  %vm419_vm1 = vcmask 1045504   ;;  %v1053_v0 = vmov 65535  }
  0x3a   : > { %p230_p5 = scmp.lt.s32.totalorder %s794_s13, 63  ;;  %v420_v1 = vsel %vm418_vm0, 4294967295, %v1053_v0  ;;  %v936_v3 = vld [vmem:[#allocation2 + $0x8] sm:$0x3f]   ;;  %v937_v4 = vld [vmem:[#allocation2] sm:$0xff]   ;;  %vm369_vm2 = vcmask 220160  }
  0x3b   : > { %v421_v2 = vsel %vm419_vm1, %v420_v1, 0  ;;  %v1191_v22 = vld [vmem:[#allocation4] ss:$0 sm:$0xff]  ;;  %v1194_v24 = vld [vmem:[#allocation6] ss:$0 sm:$0xff] }
  0x3c   : > { %s1346_s13 = smov (!%p230_p5, %s794_s13), 63  ;;  %v423_v5 = vand.u32 %v936_v3, %v421_v2 }
  0x3d   : > { %s795_s14 = sshll.u32 %s1346_s13, 2  ;;  %s797_s18 = sshll.u32 %s1346_s13, 3 }
  0x3e   : > { %s1157_s20 = scalar_lea.vmem %s1332_s0, %s795_s14  ;;  %854 = vmatprep.subr.bf16.mxu0 %v423_v5  ;;  %890 = vmatprep.subr.bf16.mxu1 %v423_v5  ;;  %s1201_s22 = scalar_lea.vmem %s1336_s4, %s797_s18 }
  0x3f   : > { %v938_v6 = vld [vmem:[%s1157_s20] sm:$0xff]   ;;  %855 = vmatpush3.bf16.msra.mxu0 %v423_v5  ;;  %892 = vmatpush3.bf16.msra.mxu1 %v423_v5  ;;  %v940_v8 = vld [vmem:[%s1157_s20 + $0x8] sm:$0xff]   ;;  %v942_v10 = vld [vmem:[%s1157_s20 + $0x10] sm:$0xff]  }
  0x40   : > { %v939_v7 = vld [vmem:[%s1157_s20 + $0x40] sm:$0xff]   ;;  %856 = vmatprep.subr.bf16.mxu0 %v937_v4  ;;  %891 = vmatprep.subr.bf16.mxu1 %v937_v4  ;;  %v941_v9 = vld [vmem:[%s1157_s20 + $0x48] sm:$0xff]   ;;  %v943_v11 = vld [vmem:[%s1157_s20 + $0x50] sm:$0xff]  }
  0x41   : > { %858 = vmatprep.mubr.msk.bf16.mxu0 %vm369_vm2, %v938_v6  ;;  %874 = vmatprep.mubr.msk.bf16.mxu1 %vm369_vm2, %v939_v7  ;;  %v944_v12 = vld [vmem:[%s1157_s20 + $0x18] sm:$0xff]   ;;  %v946_v14 = vld [vmem:[%s1157_s20 + $0x20] sm:$0xff]   ;;  %v948_v16 = vld [vmem:[%s1157_s20 + $0x28] sm:$0xff]  }
  0x42   : > { %v945_v13 = vld [vmem:[%s1157_s20 + $0x58] sm:$0xff]   ;;  %v947_v15 = vld [vmem:[%s1157_s20 + $0x60] sm:$0xff]   ;;  %v949_v17 = vld [vmem:[%s1157_s20 + $0x68] sm:$0xff]  }
  0x43   : > { %857 = vmatpush3.bf16.msra.mxu0 %v937_v4  ;;  %893 = vmatpush3.bf16.msra.mxu1 %v937_v4  ;;  %v950_v18 = vld [vmem:[%s1157_s20 + $0x30] sm:$0xff]   ;;  %v952_v20 = vld [vmem:[%s1157_s20 + $0x38] sm:$0xff]  }
  0x44   : > { %v951_v19 = vld [vmem:[%s1157_s20 + $0x70] sm:$0xff]   ;;  %v953_v21 = vld [vmem:[%s1157_s20 + $0x78] sm:$0xff]  }
  0x46   : > { %859 = vmatmul.mubr.msk.bf16.vlgmr.msra.gmra.mxu0 %vm369_vm2, %v940_v8  ;;  %875 = vmatmul.mubr.msk.bf16.vlgmr.msra.gmra.mxu1 %vm369_vm2, %v941_v9 }
  0x47   : > { %862 = vmatprep.mubr.msk.bf16.mxu0 %vm369_vm2, %v942_v10  ;;  %878 = vmatprep.mubr.msk.bf16.mxu1 %vm369_vm2, %v943_v11 }
  0x4e   : > { %863 = vmatmul.mubr.msk.bf16.gmra.mxu0 %vm369_vm2, %v944_v12  ;;  %879 = vmatmul.mubr.msk.bf16.gmra.mxu1 %vm369_vm2, %v945_v13 }
  0x4f   : > { %866 = vmatprep.mubr.msk.bf16.mxu0 %vm369_vm2, %v946_v14  ;;  %882 = vmatprep.mubr.msk.bf16.mxu1 %vm369_vm2, %v947_v15 }
  0x56   : > { %867 = vmatmul.mubr.msk.bf16.gmra.mxu0 %vm369_vm2, %v948_v16  ;;  %883 = vmatmul.mubr.msk.bf16.gmra.mxu1 %vm369_vm2, %v949_v17 }
  0x57   : > { %870 = vmatprep.mubr.msk.bf16.mxu0 %vm369_vm2, %v950_v18  ;;  %886 = vmatprep.mubr.msk.bf16.mxu1 %vm369_vm2, %v951_v19 }
  0x5e   : > { %871 = vmatmul.mubr.msk.bf16.gmra.mxu0 %vm369_vm2, %v952_v20  ;;  %887 = vmatmul.mubr.msk.bf16.gmra.mxu1 %vm369_vm2, %v953_v21 }
 0x106   : > { %v860_v23 = vpop.f32.mrf.mxu0  ;;  %v876_v25 = vpop.f32.mrf.mxu1 }
 0x107   : > { %v595_v26 = vmul.f32 %v860_v23, %v1191_v22  ;;  %v611_v27 = vmul.f32 %v876_v25, %v1191_v22 }
 0x108   : > { %v459_v28 = vpop.f32.mrf.mxu0  ;;  %v523_v29 = vpop.f32.mrf.mxu1 }
 0x109   : > { %v634_v30 = vadd.f32 %v1194_v24, %v595_v26  ;;  %v650_v31 = vadd.f32 %v1194_v24, %v611_v27  ;;  %v593_v32 = vmul.f32 %v1191_v22, %v459_v28  ;;  %v609_v33 = vmul.f32 %v1191_v22, %v523_v29 }
 0x10a   : > { %v861_v34 = vpop.f32.mrf.mxu0  ;;  %v877_v35 = vpop.f32.mrf.mxu1 }
 0x10b   : > { %666 = vst.msk [vmem:[%s1201_s22 + $0x10] sm:$0xff] %vm369_vm2, %v634_v30  ;;  %682 = vst.msk [vmem:[%s1201_s22 + $0x90] sm:$0xff] %vm369_vm2, %v650_v31  ;;  %v632_v36 = vadd.f32 %v1194_v24, %v593_v32  ;;  %v648_v37 = vadd.f32 %v1194_v24, %v609_v33  ;;  %v596_v38 = vmul.f32 %v861_v34, %v1191_v22 }
 0x10c   : > { %v612_v39 = vmul.f32 %v877_v35, %v1191_v22  ;;  %v462_v40 = vpop.f32.mrf.mxu0  ;;  %v526_v41 = vpop.f32.mrf.mxu1 }
 0x10d   : > { %664 = vst.msk [vmem:[%s1201_s22] sm:$0xff] %vm369_vm2, %v632_v36  ;;  %680 = vst.msk [vmem:[%s1201_s22 + $0x80] sm:$0xff] %vm369_vm2, %v648_v37  ;;  %v635_v42 = vadd.f32 %v1194_v24, %v596_v38  ;;  %v594_v44 = vmul.f32 %v1191_v22, %v462_v40  ;;  %v610_v45 = vmul.f32 %v1191_v22, %v526_v41 }
 0x10e   : > { %v651_v43 = vadd.f32 %v1194_v24, %v612_v39  ;;  %v864_v46 = vpop.f32.mrf.mxu0  ;;  %v880_v47 = vpop.f32.mrf.mxu1 }
 0x10f   : > { %667 = vst.msk [vmem:[%s1201_s22 + $0x18] sm:$0xff] %vm369_vm2, %v635_v42  ;;  %v633_v48 = vadd.f32 %v1194_v24, %v594_v44  ;;  %v649_v49 = vadd.f32 %v1194_v24, %v610_v45  ;;  %v599_v50 = vmul.f32 %v864_v46, %v1191_v22  ;;  %v615_v51 = vmul.f32 %v880_v47, %v1191_v22 }
 0x110   : > { %683 = vst.msk [vmem:[%s1201_s22 + $0x98] sm:$0xff] %vm369_vm2, %v651_v43  ;;  %v475_v52 = vpop.f32.mrf.mxu0  ;;  %v539_v53 = vpop.f32.mrf.mxu1 }
 0x111   : > { %665 = vst.msk [vmem:[%s1201_s22 + $0x8] sm:$0xff] %vm369_vm2, %v633_v48  ;;  %681 = vst.msk [vmem:[%s1201_s22 + $0x88] sm:$0xff] %vm369_vm2, %v649_v49  ;;  %v638_v54 = vadd.f32 %v1194_v24, %v599_v50  ;;  %v654_v55 = vadd.f32 %v1194_v24, %v615_v51  ;;  %v597_v56 = vmul.f32 %v1191_v22, %v475_v52 }
 0x112   : > { %v613_v57 = vmul.f32 %v1191_v22, %v539_v53  ;;  %v865_v58 = vpop.f32.mrf.mxu0  ;;  %v881_v59 = vpop.f32.mrf.mxu1 }
 0x113   : > { %670 = vst.msk [vmem:[%s1201_s22 + $0x30] sm:$0xff] %vm369_vm2, %v638_v54  ;;  %686 = vst.msk [vmem:[%s1201_s22 + $0xb0] sm:$0xff] %vm369_vm2, %v654_v55  ;;  %v636_v60 = vadd.f32 %v1194_v24, %v597_v56  ;;  %v600_v62 = vmul.f32 %v865_v58, %v1191_v22  ;;  %v616_v63 = vmul.f32 %v881_v59, %v1191_v22 }
 0x114   : > { %v652_v61 = vadd.f32 %v1194_v24, %v613_v57  ;;  %v478_v0 = vpop.f32.mrf.mxu0  ;;  %v542_v1 = vpop.f32.mrf.mxu1 }
 0x115   : > { %668 = vst.msk [vmem:[%s1201_s22 + $0x20] sm:$0xff] %vm369_vm2, %v636_v60  ;;  %v639_v2 = vadd.f32 %v1194_v24, %v600_v62  ;;  %v655_v3 = vadd.f32 %v1194_v24, %v616_v63  ;;  %v598_v4 = vmul.f32 %v1191_v22, %v478_v0  ;;  %v614_v5 = vmul.f32 %v1191_v22, %v542_v1 }
 0x116   : > { %684 = vst.msk [vmem:[%s1201_s22 + $0xa0] sm:$0xff] %vm369_vm2, %v652_v61  ;;  %v868_v6 = vpop.f32.mrf.mxu0  ;;  %v884_v7 = vpop.f32.mrf.mxu1 }
 0x117   : > { %671 = vst.msk [vmem:[%s1201_s22 + $0x38] sm:$0xff] %vm369_vm2, %v639_v2  ;;  %687 = vst.msk [vmem:[%s1201_s22 + $0xb8] sm:$0xff] %vm369_vm2, %v655_v3  ;;  %v637_v8 = vadd.f32 %v1194_v24, %v598_v4  ;;  %v653_v9 = vadd.f32 %v1194_v24, %v614_v5  ;;  %v603_v10 = vmul.f32 %v868_v6, %v1191_v22 }
 0x118   : > { %v619_v11 = vmul.f32 %v884_v7, %v1191_v22  ;;  %v491_v12 = vpop.f32.mrf.mxu0  ;;  %v555_v13 = vpop.f32.mrf.mxu1 }
 0x119   : > { %669 = vst.msk [vmem:[%s1201_s22 + $0x28] sm:$0xff] %vm369_vm2, %v637_v8  ;;  %685 = vst.msk [vmem:[%s1201_s22 + $0xa8] sm:$0xff] %vm369_vm2, %v653_v9  ;;  %v642_v14 = vadd.f32 %v1194_v24, %v603_v10  ;;  %v601_v16 = vmul.f32 %v1191_v22, %v491_v12  ;;  %v617_v17 = vmul.f32 %v1191_v22, %v555_v13 }
 0x11a   : > { %v658_v15 = vadd.f32 %v1194_v24, %v619_v11  ;;  %v869_v18 = vpop.f32.mrf.mxu0  ;;  %v885_v19 = vpop.f32.mrf.mxu1 }
 0x11b   : > { %674 = vst.msk [vmem:[%s1201_s22 + $0x50] sm:$0xff] %vm369_vm2, %v642_v14  ;;  %v640_v20 = vadd.f32 %v1194_v24, %v601_v16  ;;  %v656_v21 = vadd.f32 %v1194_v24, %v617_v17  ;;  %v604_v23 = vmul.f32 %v869_v18, %v1191_v22  ;;  %v620_v25 = vmul.f32 %v885_v19, %v1191_v22 }
 0x11c   : > { %690 = vst.msk [vmem:[%s1201_s22 + $0xd0] sm:$0xff] %vm369_vm2, %v658_v15  ;;  %v494_v26 = vpop.f32.mrf.mxu0  ;;  %v558_v27 = vpop.f32.mrf.mxu1 }
 0x11d   : > { %672 = vst.msk [vmem:[%s1201_s22 + $0x40] sm:$0xff] %vm369_vm2, %v640_v20  ;;  %688 = vst.msk [vmem:[%s1201_s22 + $0xc0] sm:$0xff] %vm369_vm2, %v656_v21  ;;  %v643_v28 = vadd.f32 %v1194_v24, %v604_v23  ;;  %v659_v29 = vadd.f32 %v1194_v24, %v620_v25  ;;  %v602_v30 = vmul.f32 %v1191_v22, %v494_v26 }
 0x11e   : > { %v618_v31 = vmul.f32 %v1191_v22, %v558_v27  ;;  %v872_v32 = vpop.f32.mrf.mxu0  ;;  %v888_v33 = vpop.f32.mrf.mxu1 }
 0x11f   : > { %675 = vst.msk [vmem:[%s1201_s22 + $0x58] sm:$0xff] %vm369_vm2, %v643_v28  ;;  %691 = vst.msk [vmem:[%s1201_s22 + $0xd8] sm:$0xff] %vm369_vm2, %v659_v29  ;;  %v641_v34 = vadd.f32 %v1194_v24, %v602_v30  ;;  %v607_v36 = vmul.f32 %v872_v32, %v1191_v22  ;;  %v623_v37 = vmul.f32 %v888_v33, %v1191_v22 }
 0x120   : > { %v657_v35 = vadd.f32 %v1194_v24, %v618_v31  ;;  %v507_v38 = vpop.f32.mrf.mxu0  ;;  %v571_v39 = vpop.f32.mrf.mxu1 }
 0x121   : > { %673 = vst.msk [vmem:[%s1201_s22 + $0x48] sm:$0xff] %vm369_vm2, %v641_v34  ;;  %v646_v40 = vadd.f32 %v1194_v24, %v607_v36  ;;  %v662_v41 = vadd.f32 %v1194_v24, %v623_v37  ;;  %v605_v42 = vmul.f32 %v1191_v22, %v507_v38  ;;  %v621_v43 = vmul.f32 %v1191_v22, %v571_v39 }
 0x122   : > { %689 = vst.msk [vmem:[%s1201_s22 + $0xc8] sm:$0xff] %vm369_vm2, %v657_v35  ;;  %v873_v44 = vpop.f32.mrf.mxu0  ;;  %v889_v45 = vpop.f32.mrf.mxu1 }
 0x123   : > { %678 = vst.msk [vmem:[%s1201_s22 + $0x70] sm:$0xff] %vm369_vm2, %v646_v40  ;;  %694 = vst.msk [vmem:[%s1201_s22 + $0xf0] sm:$0xff] %vm369_vm2, %v662_v41  ;;  %v644_v46 = vadd.f32 %v1194_v24, %v605_v42  ;;  %v660_v47 = vadd.f32 %v1194_v24, %v621_v43  ;;  %v608_v48 = vmul.f32 %v873_v44, %v1191_v22 }
 0x124   : > { %v624_v49 = vmul.f32 %v889_v45, %v1191_v22  ;;  %v510_v50 = vpop.f32.mrf.mxu0  ;;  %v574_v51 = vpop.f32.mrf.mxu1 }
 0x125   : > { %676 = vst.msk [vmem:[%s1201_s22 + $0x60] sm:$0xff] %vm369_vm2, %v644_v46  ;;  %692 = vst.msk [vmem:[%s1201_s22 + $0xe0] sm:$0xff] %vm369_vm2, %v660_v47  ;;  %v647_v52 = vadd.f32 %v1194_v24, %v608_v48  ;;  %v606_v54 = vmul.f32 %v1191_v22, %v510_v50  ;;  %v622_v55 = vmul.f32 %v1191_v22, %v574_v51 }
 0x126   : > { %v663_v53 = vadd.f32 %v1194_v24, %v624_v49 }
 0x127   : > { %679 = vst.msk [vmem:[%s1201_s22 + $0x78] sm:$0xff] %vm369_vm2, %v647_v52  ;;  %v645_v56 = vadd.f32 %v1194_v24, %v606_v54  ;;  %v661_v57 = vadd.f32 %v1194_v24, %v622_v55 }
 0x128   : > { %695 = vst.msk [vmem:[%s1201_s22 + $0xf8] sm:$0xff] %vm369_vm2, %v663_v53 }
 0x129   : > { %677 = vst.msk [vmem:[%s1201_s22 + $0x68] sm:$0xff] %vm369_vm2, %v645_v56  ;;  %693 = vst.msk [vmem:[%s1201_s22 + $0xe8] sm:$0xff] %vm369_vm2, %v661_v57 }
 0x12a PF: > { %s16_s15 = sadd.s32 1, %s1046_s15  }
 0x12b   : > { %p13_p1 = scmp.ge.s32.totalorder %s16_s15, 4  }
 0x12d   :  { %15 = sbr.rel (!%p13_p1) target bundleno = 2 (0x2), region = 79 }
 0x132   :  { %718 = vsyncpa [#allocation3], 1 }
 0x133   :  { %720 = vsyncpa [#allocation3 + $0x1], 1 }
 0x134   :  { %721 = vsyncpa [#allocation5], 1 }

// kernel: hybrid_convnet_forward.13
= control target key start
LH: loop header
LB: loop body
LE: loop exit
PB: predicated region body
PF: predicated region fallthrough
CT: control target
= control target key end

     0   :  { %s911_s15 = smov 0   ;;  %s1112_s0 = inlined_call_operand.vmem [shape: bf16[512,27], index: 0, kind: input, shape index: {}]   ;;  %s1113_s1 = inlined_call_operand.vmem [shape: bf16[27,32], index: 1, kind: input, shape index: {}]   ;;  %s1114_s2 = inlined_call_operand.vmem [shape: f32[1,32], index: 2, kind: input, shape index: {}]   ;;  %s1115_s3 = inlined_call_operand.vmem [shape: f32[1,32], index: 3, kind: input, shape index: {}]   ;;  %s1116_s4 = inlined_call_operand.vmem [shape: f32[512,32], index: 4, kind: output, shape index: {}]  }
   0x1 LB: > { %s745_s16 = sadd.s32 4294967295, %s883_s15   ;;  %p749_p0 = scmp.ge.s32.totalorder %s883_s15, 1  ;;  %s883_s15 = sphi %s911_s15, %s14_s15  }
   0x2   : > { %p163_p1 = scmp.lt.s32.totalorder %s883_s15, 3 }
   0x4   : > { %p164_p2 = pnand %p749_p0, %p163_p1 }
   0x5   : > { %s750_s19 = sshll.u32 (!%p164_p2), %s745_s16, 5 }
   0x6   : > { %167 = sbr.rel (%p164_p2) target bundleno = 254 (0xfe), region = 36  ;;  %p190_p3 = scmp.lt.s32.totalorder (!%p164_p2), %s750_s19, 63 }
   0xb   : > { %v859_v0 = vld [vmem:[%s1113_s1 + $0x8] sm:$0x3f]   ;;  %vm378_vm0 = vcmask 1044480   ;;  %vm379_vm1 = vcmask 1045504   ;;  %v885_v1 = vmov 65535   ;;  %v860_v5 = vld [vmem:[%s1113_s1] sm:$0xff]  }
   0xc   : > { %v380_v2 = vsel %vm378_vm0, 4294967295, %v885_v1  ;;  %s1118_s19 = smov (!%p190_p3, %s750_s19), 63  ;;  %vm329_vm2 = vcmask 220160   ;;  %v968_v22 = vld [vmem:[%s1114_s2] ss:$0 sm:$0xff]  ;;  %vm656_vm3 = vcmask 261120  }
   0xd   : > { %v381_v3 = vsel %vm379_vm1, %v380_v2, 0  ;;  %s751_s22 = sshll.u32 %s1118_s19, 2  ;;  %v973_v24 = vld [vmem:[%s1115_s3] ss:$0 sm:$0xff]  ;;  %s753_s30 = sshll.u32 %s1118_s19, 3 }
   0xe   : > { %v383_v4 = vand.u32 %v859_v0, %v381_v3  ;;  %s931_s25 = scalar_lea.vmem %s1112_s0, %s751_s22  ;;  %s985_s7 = scalar_lea.vmem %s1116_s4, %s753_s30 }
   0xf   : > { %v861_v6 = vld [vmem:[%s931_s25] sm:$0xff]   ;;  %v863_v8 = vld [vmem:[%s931_s25 + $0x8] sm:$0xff]   ;;  %v865_v10 = vld [vmem:[%s931_s25 + $0x10] sm:$0xff]  }
  0x10   : > { %810 = vmatprep.subr.bf16.mxu0 %v383_v4  ;;  %846 = vmatprep.subr.bf16.mxu1 %v383_v4  ;;  %v862_v7 = vld [vmem:[%s931_s25 + $0x40] sm:$0xff]   ;;  %v864_v9 = vld [vmem:[%s931_s25 + $0x48] sm:$0xff]   ;;  %v866_v11 = vld [vmem:[%s931_s25 + $0x50] sm:$0xff]  }
  0x11   : > { %811 = vmatpush3.bf16.msra.mxu0 %v383_v4  ;;  %848 = vmatpush3.bf16.msra.mxu1 %v383_v4  ;;  %v867_v12 = vld [vmem:[%s931_s25 + $0x18] sm:$0xff]   ;;  %v869_v14 = vld [vmem:[%s931_s25 + $0x20] sm:$0xff]   ;;  %v871_v16 = vld [vmem:[%s931_s25 + $0x28] sm:$0xff]  }
  0x12   : > { %812 = vmatprep.subr.bf16.mxu0 %v860_v5  ;;  %847 = vmatprep.subr.bf16.mxu1 %v860_v5  ;;  %v868_v13 = vld [vmem:[%s931_s25 + $0x58] sm:$0xff]   ;;  %v870_v15 = vld [vmem:[%s931_s25 + $0x60] sm:$0xff]   ;;  %v872_v17 = vld [vmem:[%s931_s25 + $0x68] sm:$0xff]  }
  0x13   : > { %814 = vmatprep.mubr.msk.bf16.mxu0 %vm329_vm2, %v861_v6  ;;  %830 = vmatprep.mubr.msk.bf16.mxu1 %vm329_vm2, %v862_v7  ;;  %v873_v18 = vld [vmem:[%s931_s25 + $0x30] sm:$0xff]   ;;  %v875_v20 = vld [vmem:[%s931_s25 + $0x38] sm:$0xff]  }
  0x14   : > { %v874_v19 = vld [vmem:[%s931_s25 + $0x70] sm:$0xff]   ;;  %v876_v21 = vld [vmem:[%s931_s25 + $0x78] sm:$0xff]  }
  0x15   : > { %813 = vmatpush3.bf16.msra.mxu0 %v860_v5  ;;  %849 = vmatpush3.bf16.msra.mxu1 %v860_v5 }
  0x18   : > { %815 = vmatmul.mubr.msk.bf16.vlgmr.msra.gmra.mxu0 %vm329_vm2, %v863_v8  ;;  %831 = vmatmul.mubr.msk.bf16.vlgmr.msra.gmra.mxu1 %vm329_vm2, %v864_v9 }
  0x19   : > { %818 = vmatprep.mubr.msk.bf16.mxu0 %vm329_vm2, %v865_v10  ;;  %834 = vmatprep.mubr.msk.bf16.mxu1 %vm329_vm2, %v866_v11 }
  0x20   : > { %819 = vmatmul.mubr.msk.bf16.gmra.mxu0 %vm329_vm2, %v867_v12  ;;  %835 = vmatmul.mubr.msk.bf16.gmra.mxu1 %vm329_vm2, %v868_v13 }
  0x21   : > { %822 = vmatprep.mubr.msk.bf16.mxu0 %vm329_vm2, %v869_v14  ;;  %838 = vmatprep.mubr.msk.bf16.mxu1 %vm329_vm2, %v870_v15 }
  0x28   : > { %823 = vmatmul.mubr.msk.bf16.gmra.mxu0 %vm329_vm2, %v871_v16  ;;  %839 = vmatmul.mubr.msk.bf16.gmra.mxu1 %vm329_vm2, %v872_v17 }
  0x29   : > { %826 = vmatprep.mubr.msk.bf16.mxu0 %vm329_vm2, %v873_v18  ;;  %842 = vmatprep.mubr.msk.bf16.mxu1 %vm329_vm2, %v874_v19 }
  0x30   : > { %827 = vmatmul.mubr.msk.bf16.gmra.mxu0 %vm329_vm2, %v875_v20  ;;  %843 = vmatmul.mubr.msk.bf16.gmra.mxu1 %vm329_vm2, %v876_v21 }
  0xd8   : > { %v816_v23 = vpop.f32.mrf.mxu0  ;;  %v832_v25 = vpop.f32.mrf.mxu1 }
  0xd9   : > { %v555_v26 = vmul.f32 %v816_v23, %v968_v22  ;;  %v571_v27 = vmul.f32 %v832_v25, %v968_v22 }
  0xda   : > { %v419_v28 = vpop.f32.mrf.mxu0  ;;  %v483_v29 = vpop.f32.mrf.mxu1 }
  0xdb   : > { %v594_v30 = vadd.f32 %v973_v24, %v555_v26  ;;  %v610_v31 = vadd.f32 %v973_v24, %v571_v27  ;;  %v553_v32 = vmul.f32 %v968_v22, %v419_v28  ;;  %v569_v33 = vmul.f32 %v968_v22, %v483_v29 }
  0xdc   : > { %v817_v34 = vpop.f32.mrf.mxu0  ;;  %v833_v35 = vpop.f32.mrf.mxu1 }
  0xdd   : > { %v626_v36 = vmax.f32 %v594_v30, 0.0  ;;  %v642_v37 = vmax.f32 %v610_v31, 0.0  ;;  %v592_v38 = vadd.f32 %v973_v24, %v553_v32  ;;  %v608_v39 = vadd.f32 %v973_v24, %v569_v33 }
  0xde   : > { %v556_v40 = vmul.f32 %v817_v34, %v968_v22  ;;  %v572_v41 = vmul.f32 %v833_v35, %v968_v22  ;;  %v422_v42 = vpop.f32.mrf.mxu0  ;;  %v486_v43 = vpop.f32.mrf.mxu1 }
  0xdf   : > { %659 = vst.msk [vmem:[%s985_s7 + $0x10] sm:$0xff] %vm656_vm3, %v626_v36  ;;  %675 = vst.msk [vmem:[%s985_s7 + $0x90] sm:$0xff] %vm656_vm3, %v642_v37  ;;  %v624_v44 = vmax.f32 %v592_v38, 0.0  ;;  %v640_v45 = vmax.f32 %v608_v39, 0.0  ;;  %v554_v46 = vmul.f32 %v968_v22, %v422_v42  ;;  %v570_v47 = vmul.f32 %v968_v22, %v486_v43 }
  0xe0   : > { %v595_v48 = vadd.f32 %v973_v24, %v556_v40  ;;  %v611_v49 = vadd.f32 %v973_v24, %v572_v41  ;;  %v820_v50 = vpop.f32.mrf.mxu0  ;;  %v836_v51 = vpop.f32.mrf.mxu1 }
  0xe1   : > { %657 = vst.msk [vmem:[%s985_s7] sm:$0xff] %vm656_vm3, %v624_v44  ;;  %673 = vst.msk [vmem:[%s985_s7 + $0x80] sm:$0xff] %vm656_vm3, %v640_v45  ;;  %v593_v52 = vadd.f32 %v973_v24, %v554_v46  ;;  %v609_v53 = vadd.f32 %v973_v24, %v570_v47  ;;  %v559_v54 = vmul.f32 %v820_v50, %v968_v22 }
  0xe2   : > { %v575_v55 = vmul.f32 %v836_v51, %v968_v22  ;;  %v627_v56 = vmax.f32 %v595_v48, 0.0  ;;  %v643_v57 = vmax.f32 %v611_v49, 0.0  ;;  %v435_v58 = vpop.f32.mrf.mxu0  ;;  %v499_v59 = vpop.f32.mrf.mxu1 }
  0xe3   : > { %v625_v60 = vmax.f32 %v593_v52, 0.0  ;;  %v641_v61 = vmax.f32 %v609_v53, 0.0  ;;  %v598_v62 = vadd.f32 %v973_v24, %v559_v54  ;;  %v557_v0 = vmul.f32 %v968_v22, %v435_v58 }
  0xe4   : > { %v614_v63 = vadd.f32 %v973_v24, %v575_v55  ;;  %660 = vst.msk [vmem:[%s985_s7 + $0x18] sm:$0xff] %vm656_vm3, %v627_v56  ;;  %676 = vst.msk [vmem:[%s985_s7 + $0x98] sm:$0xff] %vm656_vm3, %v643_v57  ;;  %v573_v1 = vmul.f32 %v968_v22, %v499_v59  ;;  %v821_v2 = vpop.f32.mrf.mxu0  ;;  %v837_v3 = vpop.f32.mrf.mxu1 }
  0xe5   : > { %658 = vst.msk [vmem:[%s985_s7 + $0x8] sm:$0xff] %vm656_vm3, %v625_v60  ;;  %674 = vst.msk [vmem:[%s985_s7 + $0x88] sm:$0xff] %vm656_vm3, %v641_v61  ;;  %v630_v4 = vmax.f32 %v598_v62, 0.0  ;;  %v560_v6 = vmul.f32 %v821_v2, %v968_v22  ;;  %v576_v7 = vmul.f32 %v837_v3, %v968_v22  ;;  %v596_v8 = vadd.f32 %v973_v24, %v557_v0 }
  0xe6   : > { %v646_v5 = vmax.f32 %v614_v63, 0.0  ;;  %v612_v9 = vadd.f32 %v973_v24, %v573_v1  ;;  %v438_v10 = vpop.f32.mrf.mxu0  ;;  %v502_v11 = vpop.f32.mrf.mxu1 }
  0xe7   : > { %663 = vst.msk [vmem:[%s985_s7 + $0x30] sm:$0xff] %vm656_vm3, %v630_v4  ;;  %v599_v12 = vadd.f32 %v973_v24, %v560_v6  ;;  %v615_v13 = vadd.f32 %v973_v24, %v576_v7  ;;  %v558_v14 = vmul.f32 %v968_v22, %v438_v10  ;;  %v574_v15 = vmul.f32 %v968_v22, %v502_v11 }
  0xe8   : > { %679 = vst.msk [vmem:[%s985_s7 + $0xb0] sm:$0xff] %vm656_vm3, %v646_v5  ;;  %v628_v16 = vmax.f32 %v596_v8, 0.0  ;;  %v644_v17 = vmax.f32 %v612_v9, 0.0  ;;  %v824_v18 = vpop.f32.mrf.mxu0  ;;  %v840_v19 = vpop.f32.mrf.mxu1 }
  0xe9   : > { %v631_v20 = vmax.f32 %v599_v12, 0.0  ;;  %v647_v21 = vmax.f32 %v615_v13, 0.0  ;;  %v597_v23 = vadd.f32 %v973_v24, %v558_v14  ;;  %v613_v25 = vadd.f32 %v973_v24, %v574_v15 }
  0xea   : > { %661 = vst.msk [vmem:[%s985_s7 + $0x20] sm:$0xff] %vm656_vm3, %v628_v16  ;;  %677 = vst.msk [vmem:[%s985_s7 + $0xa0] sm:$0xff] %vm656_vm3, %v644_v17  ;;  %v563_v26 = vmul.f32 %v824_v18, %v968_v22  ;;  %v579_v27 = vmul.f32 %v840_v19, %v968_v22  ;;  %v451_v28 = vpop.f32.mrf.mxu0  ;;  %v515_v29 = vpop.f32.mrf.mxu1 }
  0xeb   : > { %664 = vst.msk [vmem:[%s985_s7 + $0x38] sm:$0xff] %vm656_vm3, %v631_v20  ;;  %680 = vst.msk [vmem:[%s985_s7 + $0xb8] sm:$0xff] %vm656_vm3, %v647_v21  ;;  %v629_v30 = vmax.f32 %v597_v23, 0.0  ;;  %v645_v31 = vmax.f32 %v613_v25, 0.0  ;;  %v561_v32 = vmul.f32 %v968_v22, %v451_v28  ;;  %v577_v33 = vmul.f32 %v968_v22, %v515_v29 }
  0xec   : > { %v602_v34 = vadd.f32 %v973_v24, %v563_v26  ;;  %v618_v35 = vadd.f32 %v973_v24, %v579_v27  ;;  %v825_v36 = vpop.f32.mrf.mxu0  ;;  %v841_v37 = vpop.f32.mrf.mxu1 }
  0xed   : > { %662 = vst.msk [vmem:[%s985_s7 + $0x28] sm:$0xff] %vm656_vm3, %v629_v30  ;;  %678 = vst.msk [vmem:[%s985_s7 + $0xa8] sm:$0xff] %vm656_vm3, %v645_v31  ;;  %v600_v38 = vadd.f32 %v973_v24, %v561_v32  ;;  %v616_v39 = vadd.f32 %v973_v24, %v577_v33  ;;  %v564_v40 = vmul.f32 %v825_v36, %v968_v22 }
  0xee   : > { %v580_v41 = vmul.f32 %v841_v37, %v968_v22  ;;  %v634_v42 = vmax.f32 %v602_v34, 0.0  ;;  %v650_v43 = vmax.f32 %v618_v35, 0.0  ;;  %v454_v44 = vpop.f32.mrf.mxu0  ;;  %v518_v45 = vpop.f32.mrf.mxu1 }
  0xef   : > { %v632_v46 = vmax.f32 %v600_v38, 0.0  ;;  %v648_v47 = vmax.f32 %v616_v39, 0.0  ;;  %v603_v48 = vadd.f32 %v973_v24, %v564_v40  ;;  %v562_v50 = vmul.f32 %v968_v22, %v454_v44 }
  0xf0   : > { %v619_v49 = vadd.f32 %v973_v24, %v580_v41  ;;  %667 = vst.msk [vmem:[%s985_s7 + $0x50] sm:$0xff] %vm656_vm3, %v634_v42  ;;  %683 = vst.msk [vmem:[%s985_s7 + $0xd0] sm:$0xff] %vm656_vm3, %v650_v43  ;;  %v578_v51 = vmul.f32 %v968_v22, %v518_v45  ;;  %v828_v52 = vpop.f32.mrf.mxu0  ;;  %v844_v53 = vpop.f32.mrf.mxu1 }
  0xf1   : > { %665 = vst.msk [vmem:[%s985_s7 + $0x40] sm:$0xff] %vm656_vm3, %v632_v46  ;;  %681 = vst.msk [vmem:[%s985_s7 + $0xc0] sm:$0xff] %vm656_vm3, %v648_v47  ;;  %v635_v54 = vmax.f32 %v603_v48, 0.0  ;;  %v567_v56 = vmul.f32 %v828_v52, %v968_v22  ;;  %v583_v57 = vmul.f32 %v844_v53, %v968_v22  ;;  %v601_v58 = vadd.f32 %v973_v24, %v562_v50 }
  0xf2   : > { %v651_v55 = vmax.f32 %v619_v49, 0.0  ;;  %v617_v59 = vadd.f32 %v973_v24, %v578_v51  ;;  %v467_v60 = vpop.f32.mrf.mxu0  ;;  %v531_v61 = vpop.f32.mrf.mxu1 }
  0xf3   : > { %668 = vst.msk [vmem:[%s985_s7 + $0x58] sm:$0xff] %vm656_vm3, %v635_v54  ;;  %v606_v62 = vadd.f32 %v973_v24, %v567_v56  ;;  %v622_v63 = vadd.f32 %v973_v24, %v583_v57  ;;  %v565_v0 = vmul.f32 %v968_v22, %v467_v60  ;;  %v581_v1 = vmul.f32 %v968_v22, %v531_v61 }
  0xf4   : > { %684 = vst.msk [vmem:[%s985_s7 + $0xd8] sm:$0xff] %vm656_vm3, %v651_v55  ;;  %v633_v2 = vmax.f32 %v601_v58, 0.0  ;;  %v649_v3 = vmax.f32 %v617_v59, 0.0  ;;  %v829_v4 = vpop.f32.mrf.mxu0  ;;  %v845_v5 = vpop.f32.mrf.mxu1 }
  0xf5   : > { %v638_v6 = vmax.f32 %v606_v62, 0.0  ;;  %v654_v7 = vmax.f32 %v622_v63, 0.0  ;;  %v604_v8 = vadd.f32 %v973_v24, %v565_v0  ;;  %v620_v9 = vadd.f32 %v973_v24, %v581_v1 }
  0xf6   : > { %666 = vst.msk [vmem:[%s985_s7 + $0x48] sm:$0xff] %vm656_vm3, %v633_v2  ;;  %682 = vst.msk [vmem:[%s985_s7 + $0xc8] sm:$0xff] %vm656_vm3, %v649_v3  ;;  %v568_v10 = vmul.f32 %v829_v4, %v968_v22  ;;  %v584_v11 = vmul.f32 %v845_v5, %v968_v22  ;;  %v470_v12 = vpop.f32.mrf.mxu0  ;;  %v534_v13 = vpop.f32.mrf.mxu1 }
  0xf7   : > { %671 = vst.msk [vmem:[%s985_s7 + $0x70] sm:$0xff] %vm656_vm3, %v638_v6  ;;  %687 = vst.msk [vmem:[%s985_s7 + $0xf0] sm:$0xff] %vm656_vm3, %v654_v7  ;;  %v636_v14 = vmax.f32 %v604_v8, 0.0  ;;  %v652_v15 = vmax.f32 %v620_v9, 0.0  ;;  %v566_v16 = vmul.f32 %v968_v22, %v470_v12  ;;  %v582_v17 = vmul.f32 %v968_v22, %v534_v13 }
  0xf8   : > { %v607_v18 = vadd.f32 %v973_v24, %v568_v10  ;;  %v623_v19 = vadd.f32 %v973_v24, %v584_v11 }
  0xf9   : > { %669 = vst.msk [vmem:[%s985_s7 + $0x60] sm:$0xff] %vm656_vm3, %v636_v14  ;;  %685 = vst.msk [vmem:[%s985_s7 + $0xe0] sm:$0xff] %vm656_vm3, %v652_v15  ;;  %v605_v20 = vadd.f32 %v973_v24, %v566_v16  ;;  %v621_v21 = vadd.f32 %v973_v24, %v582_v17 }
  0xfa   : > { %v639_v23 = vmax.f32 %v607_v18, 0.0  ;;  %v655_v25 = vmax.f32 %v623_v19, 0.0 }
  0xfb   : > { %v637_v26 = vmax.f32 %v605_v20, 0.0  ;;  %v653_v27 = vmax.f32 %v621_v21, 0.0 }
  0xfc   : > { %672 = vst.msk [vmem:[%s985_s7 + $0x78] sm:$0xff] %vm656_vm3, %v639_v23  ;;  %688 = vst.msk [vmem:[%s985_s7 + $0xf8] sm:$0xff] %vm656_vm3, %v655_v25 }
  0xfd   : > { %670 = vst.msk [vmem:[%s985_s7 + $0x68] sm:$0xff] %vm656_vm3, %v637_v26  ;;  %686 = vst.msk [vmem:[%s985_s7 + $0xe8] sm:$0xff] %vm656_vm3, %v653_v27 }
  0xfe PF: > { %s14_s15 = sadd.s32 1, %s883_s15  }
  0xff   : > { %p11_p4 = scmp.ge.s32.totalorder %s14_s15, 4  }
 0x101   :  { %13 = sbr.rel (!%p11_p4) target bundleno = 1 (0x1), region = 66 }

// kernel: hybrid_convnet_forward.14
= control target key start
LH: loop header
LB: loop body
LE: loop exit
PB: predicated region body
PF: predicated region fallthrough
CT: control target
= control target key end

     0   :  { %s860_s15 = smov 0   ;;  %s977_s0 = inlined_call_operand.vmem [shape: bf16[128,288], index: 0, kind: input, shape index: {}]   ;;  %s978_s1 = inlined_call_operand.vmem [shape: bf16[288,27], index: 1, kind: input, shape index: {}]   ;;  %s979_s2 = inlined_call_operand.vmem [shape: f32[1,27], index: 2, kind: input, shape index: {}]   ;;  %s980_s3 = inlined_call_operand.vmem [shape: f32[1,27], index: 3, kind: input, shape index: {}]   ;;  %s981_s4 = inlined_call_operand.vmem [shape: f32[128,27], index: 4, kind: output, shape index: {}]  }
   0x1 LB: > { %s663_s16 = sadd.s32 4294967295, %s833_s15   ;;  %p667_p0 = scmp.ge.s32.totalorder %s833_s15, 1  ;;  %s833_s15 = sphi %s860_s15, %s14_s15  }
   0x2   : > { %p164_p1 = scmp.lt.s32.totalorder %s833_s15, 3 }
   0x4   : > { %p165_p2 = pnand %p667_p0, %p164_p1 }
   0x5   : > { %s668_s19 = sshll.u32 (!%p165_p2), %s663_s16, 3 }
   0x6   : > { %168 = sbr.rel (%p165_p2) target bundleno = 268 (0x10c), region = 36  ;;  %p192_p3 = scmp.lt.s32.totalorder (!%p165_p2), %s668_s19, 15 }
   0xb   : > { %v793_v0 = vld [vmem:[%s978_s1 + $0x78] sm:$0xff]   ;;  %v795_v2 = vld [vmem:[%s978_s1 + $0x70] sm:$0xff]   ;;  %v797_v4 = vld [vmem:[%s978_s1 + $0x68] sm:$0xff]   ;;  %s983_s19 = smov (!%p192_p3, %s668_s19), 15  ;;  %vm425_vm0 = vcmask 261120   ;;  %vm598_vm1 = vcmask 220160  }
   0xc   : > { %v794_v1 = vld [vmem:[%s978_s1 + $0x38] sm:$0xff]   ;;  %710 = vmatprep.subr.bf16.mxu0 %v793_v0  ;;  %768 = vmatprep.subr.bf16.mxu1 %v793_v0  ;;  %v796_v3 = vld [vmem:[%s978_s1 + $0x30] sm:$0xff]   ;;  %v798_v5 = vld [vmem:[%s978_s1 + $0x28] sm:$0xff]   ;;  %s784_s6 = smul.u32 12, %s983_s19  ;;  %s671_s10 = sshll.u32 %s983_s19, 3 }
   0xd   : > { %711 = vmatpush3.bf16.msra.mxu0 %v794_v1  ;;  %776 = vmatpush3.bf16.msra.mxu1 %v794_v1  ;;  %v799_v6 = vld [vmem:[%s978_s1 + $0x60] sm:$0xff]   ;;  %v801_v8 = vld [vmem:[%s978_s1 + $0x58] sm:$0xff]   ;;  %v803_v10 = vld [vmem:[%s978_s1 + $0x50] sm:$0xff]   ;;  %s956_s16 = scalar_lea.vmem %s981_s4, %s671_s10 }
   0xe   : > { %712 = vmatprep.subr.bf16.mxu0 %v795_v2  ;;  %769 = vmatprep.subr.bf16.mxu1 %v795_v2  ;;  %v800_v7 = vld [vmem:[%s978_s1 + $0x20] sm:$0xff]   ;;  %s901_s13 = scalar_lea.vmem %s977_s0, %s784_s6  ;;  %v802_v9 = vld [vmem:[%s978_s1 + $0x18] sm:$0xff]   ;;  %v804_v13 = vld [vmem:[%s978_s1 + $0x10] sm:$0xff]  }
   0xf   : > { %v811_v11 = vld [vmem:[%s901_s13 + $0x4] ss:$12 sps:$4 sm:$0xff]   ;;  %v814_v12 = vld [vmem:[%s901_s13 + $0x4c] ss:$12 sps:$4 sm:$0xff]   ;;  %v812_v20 = vld [vmem:[%s901_s13 + $0x48] ss:$12 sps:$4 sm:$0xff]  }
  0x10   : > { %v805_v14 = vld [vmem:[%s978_s1 + $0x48] sm:$0xff]   ;;  %470 = vmatprep.mubr.bf16.mxu0 %v811_v11  ;;  %494 = vmatprep.mubr.bf16.mxu1 %v814_v12  ;;  %v807_v16 = vld [vmem:[%s978_s1 + $0x40] sm:$0xff]   ;;  %v825_v28 = vld [vmem:[%s901_s13 + $0x30] ss:$12 sps:$4 sm:$0xff]  }
  0x11   : > { %713 = vmatpush3.bf16.msra.mxu0 %v796_v3  ;;  %777 = vmatpush3.bf16.msra.mxu1 %v796_v3  ;;  %v806_v15 = vld [vmem:[%s978_s1 + $0x8] sm:$0xff]   ;;  %v808_v17 = vld [vmem:[%s978_s1] sm:$0xff]   ;;  %v826_v29 = vld [vmem:[%s901_s13 + $0x50] ss:$12 sps:$4 sm:$0xff]  }
  0x12   : > { %714 = vmatprep.subr.bf16.mxu0 %v797_v4  ;;  %770 = vmatprep.subr.bf16.mxu1 %v797_v4  ;;  %v815_v18 = vld [vmem:[%s978_s1 + $0x88] sm:$0xff]   ;;  %v816_v22 = vld [vmem:[%s978_s1 + $0x80] sm:$0xff]  }
  0x13   : > { %v809_v19 = vld [vmem:[%s901_s13] ss:$12 sps:$4 sm:$0xff]   ;;  %v817_v21 = vld [vmem:[%s901_s13 + $0x1c] ss:$12 sps:$4 sm:$0xff]   ;;  %v820_v24 = vld [vmem:[%s901_s13 + $0x18] ss:$12 sps:$4 sm:$0xff]  }
  0x14   : > { %v819_v23 = vld [vmem:[%s901_s13 + $0x8] ss:$12 sps:$4 sm:$0xff]   ;;  %v821_v25 = vld [vmem:[%s901_s13 + $0x20] ss:$12 sps:$4 sm:$0xff]   ;;  %v824_v27 = vld [vmem:[%s901_s13 + $0x38] ss:$12 sps:$4 sm:$0xff]  }
  0x15   : > { %715 = vmatpush3.bf16.msra.mxu0 %v798_v5  ;;  %778 = vmatpush3.bf16.msra.mxu1 %v798_v5  ;;  %v822_v26 = vld [vmem:[%s901_s13 + $0x34] ss:$12 sps:$4 sm:$0xff]  }
  0x16   : > { %716 = vmatprep.subr.bf16.mxu0 %v799_v6  ;;  %771 = vmatprep.subr.bf16.mxu1 %v799_v6  ;;  %v706_v42 = vld [vmem:[%s979_s2] ss:$0 sm:$0xff] }
  0x17   : > { %v707_v46 = vld [vmem:[%s980_s3] ss:$0 sm:$0xff] }
  0x19   : > { %717 = vmatpush3.bf16.msra.mxu0 %v800_v7  ;;  %779 = vmatpush3.bf16.msra.mxu1 %v800_v7 }
  0x1a   : > { %718 = vmatprep.subr.bf16.mxu0 %v801_v8  ;;  %772 = vmatprep.subr.bf16.mxu1 %v801_v8 }
  0x1d   : > { %719 = vmatpush3.bf16.msra.mxu0 %v802_v9  ;;  %780 = vmatpush3.bf16.msra.mxu1 %v802_v9 }
  0x1e   : > { %720 = vmatprep.subr.bf16.mxu0 %v803_v10  ;;  %773 = vmatprep.subr.bf16.mxu1 %v803_v10 }
  0x21   : > { %721 = vmatpush3.bf16.msra.mxu0 %v804_v13  ;;  %781 = vmatpush3.bf16.msra.mxu1 %v804_v13 }
  0x22   : > { %722 = vmatprep.subr.bf16.mxu0 %v805_v14  ;;  %774 = vmatprep.subr.bf16.mxu1 %v805_v14 }
  0x25   : > { %723 = vmatpush3.bf16.msra.mxu0 %v806_v15  ;;  %782 = vmatpush3.bf16.msra.mxu1 %v806_v15 }
  0x26   : > { %724 = vmatprep.subr.bf16.mxu0 %v807_v16  ;;  %775 = vmatprep.subr.bf16.mxu1 %v807_v16 }
  0x29   : > { %725 = vmatpush3.bf16.msra.mxu0 %v808_v17  ;;  %783 = vmatpush3.bf16.msra.mxu1 %v808_v17 }
  0x2a   : > { %756 = vmatprep.subr.bf16.mxu1 %v815_v18 }
  0x2c   : > { %471 = vmatmul.mubr.bf16.vlgmr.msra.gmra.mxu0 %v809_v19  ;;  %495 = vmatmul.mubr.bf16.vlgmr.msra.gmra.mxu1 %v812_v20 }
  0x2d   : > { %757 = vmatpush3.bf16.msra.mxu1 %v815_v18  ;;  %478 = vmatprep.mubr.bf16.mxu0 %v817_v21 }
  0x2e   : > { %758 = vmatprep.subr.bf16.mxu1 %v816_v22  ;;  %760 = vmatprep.mubr.msk.bf16.mxu1 %vm425_vm0, %v819_v23 }
  0x31   : > { %759 = vmatpush3.bf16.msra.mxu1 %v816_v22 }
  0x34   : > { %479 = vmatmul.mubr.bf16.gmra.mxu0 %v820_v24  ;;  %761 = vmatmul.mubr.msk.bf16.vlgmr.msra.gmra.mxu1 %vm425_vm0, %v821_v25 }
  0x35   : > { %486 = vmatprep.mubr.bf16.mxu0 %v822_v26  ;;  %764 = vmatprep.mubr.msk.bf16.mxu1 %vm425_vm0, %v824_v27 }
  0x3c   : > { %487 = vmatmul.mubr.bf16.gmra.mxu0 %v825_v28  ;;  %765 = vmatmul.mubr.msk.bf16.gmra.mxu1 %vm425_vm0, %v826_v29 }
  0xec   : > { %v726_v30 = vpop.f32.mrf.mxu0  ;;  %v744_v31 = vpop.f32.mrf.mxu1 }
  0xee   : > { %v727_v32 = vpop.f32.mrf.mxu0  ;;  %v745_v33 = vpop.f32.mrf.mxu1 }
  0xef   : > { %v728_v40 = vadd.f32 %v727_v32, %v726_v30  ;;  %v746_v52 = vadd.f32 %v745_v33, %v744_v31 }
  0xf0   : > { %v729_v34 = vpop.f32.mrf.mxu0  ;;  %v747_v35 = vpop.f32.mrf.mxu1 }
  0xf2   : > { %v730_v36 = vpop.f32.mrf.mxu0  ;;  %v748_v37 = vpop.f32.mrf.mxu1 }
  0xf3   : > { %v731_v49 = vadd.f32 %v730_v36, %v729_v34  ;;  %v749_v1 = vadd.f32 %v748_v37, %v747_v35 }
  0xf4   : > { %v732_v38 = vpop.f32.mrf.mxu0  ;;  %v762_v39 = vpop.f32.mrf.mxu1 }
  0xf6   : > { %v733_v41 = vpop.f32.mrf.mxu0  ;;  %v537_v43 = vpop.f32.mrf.mxu1 }
  0xf7   : > { %v734_v44 = vadd.f32 %v733_v41, %v732_v38  ;;  %v538_v45 = vadd.f32 %v728_v40, %v537_v43 }
  0xf8   : > { %v735_v47 = vpop.f32.mrf.mxu0  ;;  %v763_v48 = vpop.f32.mrf.mxu1 }
  0xf9   : > { %v546_v50 = vadd.f32 %v762_v39, %v734_v44  ;;  %v575_v51 = vmul.f32 %v706_v42, %v538_v45 }
  0xfa   : > { %v736_v53 = vpop.f32.mrf.mxu0  ;;  %v540_v54 = vpop.f32.mrf.mxu1 }
  0xfb   : > { %v577_v55 = vmul.f32 %v706_v42, %v546_v50  ;;  %v590_v56 = vadd.f32 %v707_v46, %v575_v51  ;;  %v737_v57 = vadd.f32 %v736_v53, %v735_v47  ;;  %v541_v58 = vadd.f32 %v731_v49, %v540_v54 }
  0xfc   : > { %v738_v59 = vpop.f32.mrf.mxu0  ;;  %v766_v60 = vpop.f32.mrf.mxu1 }
  0xfd   : > { %v592_v61 = vadd.f32 %v707_v46, %v577_v55  ;;  %599 = vst.msk [vmem:[%s956_s16] sm:$0xff] %vm598_vm1, %v590_v56  ;;  %v549_v62 = vadd.f32 %v763_v48, %v737_v57  ;;  %v576_v63 = vmul.f32 %v706_v42, %v541_v58  ;;  %v562_v0 = vadd.f32 %v766_v60, %v746_v52 }
  0xfe   : > { %v739_v2 = vpop.f32.mrf.mxu0  ;;  %v553_v3 = vpop.f32.mrf.mxu1 }
  0xff   : > { %601 = vst.msk [vmem:[%s956_s16 + $0x10] sm:$0xff] %vm598_vm1, %v592_v61  ;;  %v578_v4 = vmul.f32 %v706_v42, %v549_v62  ;;  %v591_v5 = vadd.f32 %v707_v46, %v576_v63  ;;  %v581_v6 = vmul.f32 %v706_v42, %v562_v0  ;;  %v740_v7 = vadd.f32 %v739_v2, %v738_v59 }
 0x100   : > { %v741_v8 = vpop.f32.mrf.mxu0  ;;  %v767_v9 = vpop.f32.mrf.mxu1 }
 0x101   : > { %v593_v10 = vadd.f32 %v707_v46, %v578_v4  ;;  %600 = vst.msk [vmem:[%s956_s16 + $0x8] sm:$0xff] %vm598_vm1, %v591_v5  ;;  %v596_v11 = vadd.f32 %v707_v46, %v581_v6  ;;  %v554_v12 = vadd.f32 %v740_v7, %v553_v3  ;;  %v565_v13 = vadd.f32 %v767_v9, %v749_v1 }
 0x102   : > { %v742_v14 = vpop.f32.mrf.mxu0  ;;  %v556_v18 = vpop.f32.mrf.mxu1 }
 0x103   : > { %602 = vst.msk [vmem:[%s956_s16 + $0x18] sm:$0xff] %vm598_vm1, %v593_v10  ;;  %605 = vst.msk [vmem:[%s956_s16 + $0x30] sm:$0xff] %vm598_vm1, %v596_v11  ;;  %v579_v15 = vmul.f32 %v706_v42, %v554_v12  ;;  %v582_v16 = vmul.f32 %v706_v42, %v565_v13  ;;  %v743_v17 = vadd.f32 %v742_v14, %v741_v8 }
 0x105   : > { %v594_v19 = vadd.f32 %v707_v46, %v579_v15  ;;  %v597_v20 = vadd.f32 %v707_v46, %v582_v16  ;;  %v557_v21 = vadd.f32 %v743_v17, %v556_v18 }
 0x107   : > { %603 = vst.msk [vmem:[%s956_s16 + $0x20] sm:$0xff] %vm598_vm1, %v594_v19  ;;  %606 = vst.msk [vmem:[%s956_s16 + $0x38] sm:$0xff] %vm598_vm1, %v597_v20  ;;  %v580_v22 = vmul.f32 %v706_v42, %v557_v21 }
 0x109   : > { %v595_v23 = vadd.f32 %v707_v46, %v580_v22 }
 0x10b   : > { %604 = vst.msk [vmem:[%s956_s16 + $0x28] sm:$0xff] %vm598_vm1, %v595_v23 }
 0x10c PF: > { %s14_s15 = sadd.s32 1, %s833_s15  }
 0x10d   : > { %p11_p4 = scmp.ge.s32.totalorder %s14_s15, 4  }
 0x10f   :  { %13 = sbr.rel (!%p11_p4) target bundleno = 1 (0x1), region = 66 }

// kernel: hybrid_convnet_forward.15
= control target key start
LH: loop header
LB: loop body
LE: loop exit
PB: predicated region body
PF: predicated region fallthrough
CT: control target
= control target key end

     0   :  { %s868_s15 = smov 0   ;;  %s985_s0 = inlined_call_operand.vmem [shape: bf16[128,288], index: 0, kind: input, shape index: {}]   ;;  %s986_s1 = inlined_call_operand.vmem [shape: bf16[288,64], index: 1, kind: input, shape index: {}]   ;;  %s987_s2 = inlined_call_operand.vmem [shape: f32[1,64], index: 2, kind: input, shape index: {}]   ;;  %s988_s3 = inlined_call_operand.vmem [shape: f32[1,64], index: 3, kind: input, shape index: {}]   ;;  %s989_s4 = inlined_call_operand.vmem [shape: f32[128,64], index: 4, kind: output, shape index: {}]  }
   0x1 LB: > { %s671_s16 = sadd.s32 4294967295, %s841_s15   ;;  %p675_p0 = scmp.ge.s32.totalorder %s841_s15, 1  ;;  %s841_s15 = sphi %s868_s15, %s14_s15  }
   0x2   : > { %p164_p1 = scmp.lt.s32.totalorder %s841_s15, 3 }
   0x4   : > { %p165_p2 = pnand %p675_p0, %p164_p1 }
   0x5   : > { %s676_s19 = sshll.u32 (!%p165_p2), %s671_s16, 3 }
   0x6   : > { %168 = sbr.rel (%p165_p2) target bundleno = 270 (0x10e), region = 36  ;;  %p192_p3 = scmp.lt.s32.totalorder (!%p165_p2), %s676_s19, 15 }
   0xb   : > { %v801_v0 = vld [vmem:[%s986_s1 + $0x78] sm:$0xff]   ;;  %v803_v2 = vld [vmem:[%s986_s1 + $0x70] sm:$0xff]   ;;  %v805_v4 = vld [vmem:[%s986_s1 + $0x68] sm:$0xff]   ;;  %s991_s19 = smov (!%p192_p3, %s676_s19), 15  ;;  %vm425_vm0 = vcmask 261120   ;;  %vm606_vm1 = vcmask 523264  }
   0xc   : > { %v802_v1 = vld [vmem:[%s986_s1 + $0x38] sm:$0xff]   ;;  %718 = vmatprep.subr.bf16.mxu0 %v801_v0  ;;  %776 = vmatprep.subr.bf16.mxu1 %v801_v0  ;;  %v804_v3 = vld [vmem:[%s986_s1 + $0x30] sm:$0xff]   ;;  %v806_v5 = vld [vmem:[%s986_s1 + $0x28] sm:$0xff]   ;;  %s792_s6 = smul.u32 12, %s991_s19  ;;  %s679_s12 = sshll.u32 %s991_s19, 3 }
   0xd   : > { %719 = vmatpush3.bf16.msra.mxu0 %v802_v1  ;;  %784 = vmatpush3.bf16.msra.mxu1 %v802_v1  ;;  %v807_v6 = vld [vmem:[%s986_s1 + $0x60] sm:$0xff]   ;;  %v809_v8 = vld [vmem:[%s986_s1 + $0x58] sm:$0xff]   ;;  %v811_v10 = vld [vmem:[%s986_s1 + $0x50] sm:$0xff]   ;;  %s964_s16 = scalar_lea.vmem %s989_s4, %s679_s12 }
   0xe   : > { %720 = vmatprep.subr.bf16.mxu0 %v803_v2  ;;  %777 = vmatprep.subr.bf16.mxu1 %v803_v2  ;;  %v808_v7 = vld [vmem:[%s986_s1 + $0x20] sm:$0xff]   ;;  %s909_s13 = scalar_lea.vmem %s985_s0, %s792_s6  ;;  %v810_v9 = vld [vmem:[%s986_s1 + $0x18] sm:$0xff]   ;;  %v812_v13 = vld [vmem:[%s986_s1 + $0x10] sm:$0xff]  }
   0xf   : > { %v819_v11 = vld [vmem:[%s909_s13 + $0x4] ss:$12 sps:$4 sm:$0xff]   ;;  %v822_v12 = vld [vmem:[%s909_s13 + $0x4c] ss:$12 sps:$4 sm:$0xff]   ;;  %v820_v20 = vld [vmem:[%s909_s13 + $0x48] ss:$12 sps:$4 sm:$0xff]  }
  0x10   : > { %v813_v14 = vld [vmem:[%s986_s1 + $0x48] sm:$0xff]   ;;  %470 = vmatprep.mubr.bf16.mxu0 %v819_v11  ;;  %494 = vmatprep.mubr.bf16.mxu1 %v822_v12  ;;  %v815_v16 = vld [vmem:[%s986_s1 + $0x40] sm:$0xff]   ;;  %v833_v28 = vld [vmem:[%s909_s13 + $0x30] ss:$12 sps:$4 sm:$0xff]  }
  0x11   : > { %721 = vmatpush3.bf16.msra.mxu0 %v804_v3  ;;  %785 = vmatpush3.bf16.msra.mxu1 %v804_v3  ;;  %v814_v15 = vld [vmem:[%s986_s1 + $0x8] sm:$0xff]   ;;  %v816_v17 = vld [vmem:[%s986_s1] sm:$0xff]   ;;  %v834_v29 = vld [vmem:[%s909_s13 + $0x50] ss:$12 sps:$4 sm:$0xff]  }
  0x12   : > { %722 = vmatprep.subr.bf16.mxu0 %v805_v4  ;;  %778 = vmatprep.subr.bf16.mxu1 %v805_v4  ;;  %v823_v18 = vld [vmem:[%s986_s1 + $0x88] sm:$0xff]   ;;  %v824_v22 = vld [vmem:[%s986_s1 + $0x80] sm:$0xff]  }
  0x13   : > { %v817_v19 = vld [vmem:[%s909_s13] ss:$12 sps:$4 sm:$0xff]   ;;  %v825_v21 = vld [vmem:[%s909_s13 + $0x1c] ss:$12 sps:$4 sm:$0xff]   ;;  %v828_v24 = vld [vmem:[%s909_s13 + $0x18] ss:$12 sps:$4 sm:$0xff]  }
  0x14   : > { %v827_v23 = vld [vmem:[%s909_s13 + $0x8] ss:$12 sps:$4 sm:$0xff]   ;;  %v829_v25 = vld [vmem:[%s909_s13 + $0x20] ss:$12 sps:$4 sm:$0xff]   ;;  %v832_v27 = vld [vmem:[%s909_s13 + $0x38] ss:$12 sps:$4 sm:$0xff]  }
  0x15   : > { %723 = vmatpush3.bf16.msra.mxu0 %v806_v5  ;;  %786 = vmatpush3.bf16.msra.mxu1 %v806_v5  ;;  %v830_v26 = vld [vmem:[%s909_s13 + $0x34] ss:$12 sps:$4 sm:$0xff]  }
  0x16   : > { %724 = vmatprep.subr.bf16.mxu0 %v807_v6  ;;  %779 = vmatprep.subr.bf16.mxu1 %v807_v6  ;;  %v714_v42 = vld [vmem:[%s987_s2] ss:$0 sm:$0xff] }
  0x17   : > { %v715_v46 = vld [vmem:[%s988_s3] ss:$0 sm:$0xff] }
  0x19   : > { %725 = vmatpush3.bf16.msra.mxu0 %v808_v7  ;;  %787 = vmatpush3.bf16.msra.mxu1 %v808_v7 }
  0x1a   : > { %726 = vmatprep.subr.bf16.mxu0 %v809_v8  ;;  %780 = vmatprep.subr.bf16.mxu1 %v809_v8 }
  0x1d   : > { %727 = vmatpush3.bf16.msra.mxu0 %v810_v9  ;;  %788 = vmatpush3.bf16.msra.mxu1 %v810_v9 }
  0x1e   : > { %728 = vmatprep.subr.bf16.mxu0 %v811_v10  ;;  %781 = vmatprep.subr.bf16.mxu1 %v811_v10 }
  0x21   : > { %729 = vmatpush3.bf16.msra.mxu0 %v812_v13  ;;  %789 = vmatpush3.bf16.msra.mxu1 %v812_v13 }
  0x22   : > { %730 = vmatprep.subr.bf16.mxu0 %v813_v14  ;;  %782 = vmatprep.subr.bf16.mxu1 %v813_v14 }
  0x25   : > { %731 = vmatpush3.bf16.msra.mxu0 %v814_v15  ;;  %790 = vmatpush3.bf16.msra.mxu1 %v814_v15 }
  0x26   : > { %732 = vmatprep.subr.bf16.mxu0 %v815_v16  ;;  %783 = vmatprep.subr.bf16.mxu1 %v815_v16 }
  0x29   : > { %733 = vmatpush3.bf16.msra.mxu0 %v816_v17  ;;  %791 = vmatpush3.bf16.msra.mxu1 %v816_v17 }
  0x2a   : > { %764 = vmatprep.subr.bf16.mxu1 %v823_v18 }
  0x2c   : > { %471 = vmatmul.mubr.bf16.vlgmr.msra.gmra.mxu0 %v817_v19  ;;  %495 = vmatmul.mubr.bf16.vlgmr.msra.gmra.mxu1 %v820_v20 }
  0x2d   : > { %765 = vmatpush3.bf16.msra.mxu1 %v823_v18  ;;  %478 = vmatprep.mubr.bf16.mxu0 %v825_v21 }
  0x2e   : > { %766 = vmatprep.subr.bf16.mxu1 %v824_v22  ;;  %768 = vmatprep.mubr.msk.bf16.mxu1 %vm425_vm0, %v827_v23 }
  0x31   : > { %767 = vmatpush3.bf16.msra.mxu1 %v824_v22 }
  0x34   : > { %479 = vmatmul.mubr.bf16.gmra.mxu0 %v828_v24  ;;  %769 = vmatmul.mubr.msk.bf16.vlgmr.msra.gmra.mxu1 %vm425_vm0, %v829_v25 }
  0x35   : > { %486 = vmatprep.mubr.bf16.mxu0 %v830_v26  ;;  %772 = vmatprep.mubr.msk.bf16.mxu1 %vm425_vm0, %v832_v27 }
  0x3c   : > { %487 = vmatmul.mubr.bf16.gmra.mxu0 %v833_v28  ;;  %773 = vmatmul.mubr.msk.bf16.gmra.mxu1 %vm425_vm0, %v834_v29 }
  0xec   : > { %v734_v30 = vpop.f32.mrf.mxu0  ;;  %v752_v31 = vpop.f32.mrf.mxu1 }
  0xee   : > { %v735_v32 = vpop.f32.mrf.mxu0  ;;  %v753_v33 = vpop.f32.mrf.mxu1 }
  0xef   : > { %v736_v40 = vadd.f32 %v735_v32, %v734_v30  ;;  %v754_v58 = vadd.f32 %v753_v33, %v752_v31 }
  0xf0   : > { %v737_v34 = vpop.f32.mrf.mxu0  ;;  %v755_v35 = vpop.f32.mrf.mxu1 }
  0xf2   : > { %v738_v36 = vpop.f32.mrf.mxu0  ;;  %v756_v37 = vpop.f32.mrf.mxu1 }
  0xf3   : > { %v739_v49 = vadd.f32 %v738_v36, %v737_v34  ;;  %v757_v1 = vadd.f32 %v756_v37, %v755_v35 }
  0xf4   : > { %v740_v38 = vpop.f32.mrf.mxu0  ;;  %v770_v39 = vpop.f32.mrf.mxu1 }
  0xf6   : > { %v741_v41 = vpop.f32.mrf.mxu0  ;;  %v537_v43 = vpop.f32.mrf.mxu1 }
  0xf7   : > { %v742_v44 = vadd.f32 %v741_v41, %v740_v38  ;;  %v538_v45 = vadd.f32 %v736_v40, %v537_v43 }
  0xf8   : > { %v743_v47 = vpop.f32.mrf.mxu0  ;;  %v771_v48 = vpop.f32.mrf.mxu1 }
  0xf9   : > { %v546_v50 = vadd.f32 %v770_v39, %v742_v44  ;;  %v575_v51 = vmul.f32 %v714_v42, %v538_v45 }
  0xfa   : > { %v744_v52 = vpop.f32.mrf.mxu0  ;;  %v540_v53 = vpop.f32.mrf.mxu1 }
  0xfb   : > { %v577_v54 = vmul.f32 %v714_v42, %v546_v50  ;;  %v590_v55 = vadd.f32 %v715_v46, %v575_v51  ;;  %v745_v56 = vadd.f32 %v744_v52, %v743_v47  ;;  %v541_v57 = vadd.f32 %v739_v49, %v540_v53 }
  0xfc   : > { %v746_v59 = vpop.f32.mrf.mxu0  ;;  %v774_v60 = vpop.f32.mrf.mxu1 }
  0xfd   : > { %v592_v61 = vadd.f32 %v715_v46, %v577_v54  ;;  %v598_v62 = vmax.f32 %v590_v55, 0.0  ;;  %v549_v63 = vadd.f32 %v771_v48, %v745_v56  ;;  %v576_v0 = vmul.f32 %v714_v42, %v541_v57 }
  0xfe   : > { %v562_v2 = vadd.f32 %v774_v60, %v754_v58  ;;  %v747_v3 = vpop.f32.mrf.mxu0  ;;  %v553_v4 = vpop.f32.mrf.mxu1 }
  0xff   : > { %v600_v5 = vmax.f32 %v592_v61, 0.0  ;;  %607 = vst.msk [vmem:[%s964_s16] sm:$0xff] %vm606_vm1, %v598_v62  ;;  %v578_v6 = vmul.f32 %v714_v42, %v549_v63  ;;  %v591_v7 = vadd.f32 %v715_v46, %v576_v0  ;;  %v748_v8 = vadd.f32 %v747_v3, %v746_v59 }
 0x100   : > { %v581_v9 = vmul.f32 %v714_v42, %v562_v2  ;;  %v749_v10 = vpop.f32.mrf.mxu0  ;;  %v775_v11 = vpop.f32.mrf.mxu1 }
 0x101   : > { %609 = vst.msk [vmem:[%s964_s16 + $0x10] sm:$0xff] %vm606_vm1, %v600_v5  ;;  %v593_v12 = vadd.f32 %v715_v46, %v578_v6  ;;  %v599_v13 = vmax.f32 %v591_v7, 0.0  ;;  %v554_v14 = vadd.f32 %v748_v8, %v553_v4  ;;  %v565_v15 = vadd.f32 %v775_v11, %v757_v1 }
 0x102   : > { %v596_v16 = vadd.f32 %v715_v46, %v581_v9  ;;  %v750_v17 = vpop.f32.mrf.mxu0  ;;  %v556_v23 = vpop.f32.mrf.mxu1 }
 0x103   : > { %v601_v18 = vmax.f32 %v593_v12, 0.0  ;;  %608 = vst.msk [vmem:[%s964_s16 + $0x8] sm:$0xff] %vm606_vm1, %v599_v13  ;;  %v579_v19 = vmul.f32 %v714_v42, %v554_v14  ;;  %v582_v20 = vmul.f32 %v714_v42, %v565_v15  ;;  %v751_v21 = vadd.f32 %v750_v17, %v749_v10 }
 0x104   : > { %v604_v22 = vmax.f32 %v596_v16, 0.0 }
 0x105   : > { %610 = vst.msk [vmem:[%s964_s16 + $0x18] sm:$0xff] %vm606_vm1, %v601_v18  ;;  %v594_v24 = vadd.f32 %v715_v46, %v579_v19  ;;  %v597_v25 = vadd.f32 %v715_v46, %v582_v20  ;;  %v557_v26 = vadd.f32 %v751_v21, %v556_v23 }
 0x106   : > { %613 = vst.msk [vmem:[%s964_s16 + $0x30] sm:$0xff] %vm606_vm1, %v604_v22 }
 0x107   : > { %v602_v27 = vmax.f32 %v594_v24, 0.0  ;;  %v605_v28 = vmax.f32 %v597_v25, 0.0  ;;  %v580_v29 = vmul.f32 %v714_v42, %v557_v26 }
 0x109   : > { %611 = vst.msk [vmem:[%s964_s16 + $0x20] sm:$0xff] %vm606_vm1, %v602_v27  ;;  %614 = vst.msk [vmem:[%s964_s16 + $0x38] sm:$0xff] %vm606_vm1, %v605_v28  ;;  %v595_v30 = vadd.f32 %v715_v46, %v580_v29 }
 0x10b   : > { %v603_v31 = vmax.f32 %v595_v30, 0.0 }
 0x10d   : > { %612 = vst.msk [vmem:[%s964_s16 + $0x28] sm:$0xff] %vm606_vm1, %v603_v31 }
 0x10e PF: > { %s14_s15 = sadd.s32 1, %s841_s15  }
 0x10f   : > { %p11_p4 = scmp.ge.s32.totalorder %s14_s15, 4  }
 0x111   :  { %13 = sbr.rel (!%p11_p4) target bundleno = 1 (0x1), region = 66 }

// kernel: hybrid_convnet_forward.16
= control target key start
LH: loop header
LB: loop body
LE: loop exit
PB: predicated region body
PF: predicated region fallthrough
CT: control target
= control target key end

     0   :  { %s933_s15 = smov 0   ;;  %s1070_s0 = inlined_call_operand.vmem [shape: bf16[32,576], index: 0, kind: input, shape index: {}]   ;;  %s1071_s1 = inlined_call_operand.vmem [shape: bf16[576,27], index: 1, kind: input, shape index: {}]   ;;  %s1072_s2 = inlined_call_operand.vmem [shape: f32[1,27], index: 2, kind: input, shape index: {}]   ;;  %s1073_s3 = inlined_call_operand.vmem [shape: f32[1,27], index: 3, kind: input, shape index: {}]   ;;  %s1074_s4 = inlined_call_operand.vmem [shape: f32[32,27], index: 4, kind: output, shape index: {}]  }
   0x1 LB: > { %s728_s16 = sadd.s32 4294967295, %s904_s15   ;;  %p732_p0 = scmp.ge.s32.totalorder %s904_s15, 1  ;;  %s904_s15 = sphi %s933_s15, %s14_s15  }
   0x2   : > { %p164_p1 = scmp.lt.s32.totalorder %s904_s15, 3 }
   0x4   : > { %p165_p2 = pnand %p732_p0, %p164_p1 }
   0x5   : > { %s733_s23 = sshll.u32 (!%p165_p2), %s728_s16, 1 }
   0x6   : > { %168 = sbr.rel (%p165_p2) target bundleno = 265 (0x109), region = 36  ;;  %p192_p3 = scmp.lt.s32.totalorder (!%p165_p2), %s733_s23, 3 }
   0xb   : > { %v855_v0 = vld [vmem:[%s1071_s1 + $0x78] sm:$0xff]   ;;  %v859_v4 = vld [vmem:[%s1071_s1 + $0x70] sm:$0xff]   ;;  %v863_v8 = vld [vmem:[%s1071_s1 + $0x68] sm:$0xff]   ;;  %s1076_s23 = smov (!%p192_p3, %s733_s23), 3  ;;  %v906_v34 = vmov 0.0   ;;  %vm907_vm0 = vmmov 0  }
   0xc   : > { %v856_v1 = vld [vmem:[%s1071_s1 + $0xf8] sm:$0xff]   ;;  %783 = vmatprep.subr.bf16.mxu0 %v855_v0  ;;  %v860_v5 = vld [vmem:[%s1071_s1 + $0xf0] sm:$0xff]   ;;  %v864_v9 = vld [vmem:[%s1071_s1 + $0xe8] sm:$0xff]   ;;  %s844_s21 = smul.u32 20, %s1076_s23  ;;  %vm524_vm1 = vcmask 523264   ;;  %s736_s24 = sshll.u32 %s1076_s23, 3 }
   0xd   : > { %v857_v2 = vld [vmem:[%s1071_s1 + $0x38] sm:$0xff]   ;;  %805 = vmatprep.subr.bf16.mxu1 %v856_v1  ;;  %v861_v6 = vld [vmem:[%s1071_s1 + $0x30] sm:$0xff]   ;;  %v865_v10 = vld [vmem:[%s1071_s1 + $0x28] sm:$0xff]   ;;  %s202_s29 = scalar_lea.vmem %s1074_s4, %s736_s24  ;;  %vm669_vm2 = vcmask 220160  }
   0xe   : > { %v858_v3 = vld [vmem:[%s1071_s1 + $0xb8] sm:$0xff]   ;;  %784 = vmatpush3.bf16.msra.mxu0 %v857_v2  ;;  %v862_v7 = vld [vmem:[%s1071_s1 + $0xb0] sm:$0xff]   ;;  %v866_v11 = vld [vmem:[%s1071_s1 + $0xa8] sm:$0xff]   ;;  %s196_s6 = scalar_lea.vmem %s1070_s0, %s844_s21 }
   0xf   : > { %806 = vmatpush3.bf16.msra.mxu1 %v858_v3  ;;  %785 = vmatprep.subr.bf16.mxu0 %v859_v4  ;;  %v867_v12 = vld [vmem:[%s1071_s1 + $0x60] sm:$0xff]   ;;  %v871_v16 = vld [vmem:[%s1071_s1 + $0x58] sm:$0xff]   ;;  %v875_v20 = vld [vmem:[%s1071_s1 + $0x50] sm:$0xff]  }
  0x10   : > { %807 = vmatprep.subr.bf16.mxu1 %v860_v5  ;;  %v868_v13 = vld [vmem:[%s1071_s1 + $0xe0] sm:$0xff]   ;;  %v872_v17 = vld [vmem:[%s1071_s1 + $0xd8] sm:$0xff]   ;;  %v876_v21 = vld [vmem:[%s1071_s1 + $0xd0] sm:$0xff]  }
  0x11   : > { %v869_v14 = vld [vmem:[%s1071_s1 + $0x20] sm:$0xff]   ;;  %v873_v18 = vld [vmem:[%s1071_s1 + $0x18] sm:$0xff]   ;;  %v877_v22 = vld [vmem:[%s1071_s1 + $0x10] sm:$0xff]  }
  0x12   : > { %786 = vmatpush3.bf16.msra.mxu0 %v861_v6  ;;  %v870_v15 = vld [vmem:[%s1071_s1 + $0xa0] sm:$0xff]   ;;  %v874_v19 = vld [vmem:[%s1071_s1 + $0x98] sm:$0xff]   ;;  %v878_v23 = vld [vmem:[%s1071_s1 + $0x90] sm:$0xff]  }
  0x13   : > { %808 = vmatpush3.bf16.msra.mxu1 %v862_v7  ;;  %787 = vmatprep.subr.bf16.mxu0 %v863_v8  ;;  %v879_v24 = vld [vmem:[%s1071_s1 + $0x48] sm:$0xff]   ;;  %v883_v28 = vld [vmem:[%s1071_s1 + $0x40] sm:$0xff]   ;;  %v893_v37 = vld [vmem:[%s1071_s1 + $0x118] sm:$0xff]  }
  0x14   : > { %809 = vmatprep.subr.bf16.mxu1 %v864_v9  ;;  %v880_v25 = vld [vmem:[%s1071_s1 + $0xc8] sm:$0xff]   ;;  %v884_v29 = vld [vmem:[%s1071_s1 + $0xc0] sm:$0xff]   ;;  %v894_v38 = vld [vmem:[%s1071_s1 + $0x110] sm:$0xff]  }
  0x15   : > { %v881_v26 = vld [vmem:[%s1071_s1 + $0x8] sm:$0xff]   ;;  %v885_v30 = vld [vmem:[%s1071_s1] sm:$0xff]  }
  0x16   : > { %788 = vmatpush3.bf16.msra.mxu0 %v865_v10  ;;  %v882_v27 = vld [vmem:[%s1071_s1 + $0x88] sm:$0xff]   ;;  %v886_v31 = vld [vmem:[%s1071_s1 + $0x80] sm:$0xff]  }
  0x17   : > { %810 = vmatpush3.bf16.msra.mxu1 %v866_v11  ;;  %789 = vmatprep.subr.bf16.mxu0 %v867_v12  ;;  %v887_v32 = vld [vmem:[%s196_s6] ss:$20 sps:$4 sm:$0xff]   ;;  %v889_v33 = vld [vmem:[%s196_s6 + $0x4] ss:$20 sps:$4 sm:$0xff]   ;;  %v890_v35 = vld [vmem:[%s196_s6 + $0x8] ss:$20 sps:$4 sm:$0xff]  }
  0x18   : > { %811 = vmatprep.subr.bf16.mxu1 %v868_v13  ;;  %v892_v36 = vld [vmem:[%s196_s6 + $0xc] ss:$20 sps:$4 sm:$0xff]   ;;  %560 = vmatprep.mubr.bf16.mxu0 %v889_v33  ;;  %v897_v41 = vld [vmem:[%s196_s6 + $0x10] ss:$20 sps:$4 sm:$0xff]  }
  0x19   : > { %601 = vmatprep.mubr.bf16.mxu1 %v892_v36  ;;  %v895_v39 = vld [vmem:[%s1071_s1 + $0x108] sm:$0xff]   ;;  %v896_v40 = vld [vmem:[%s1071_s1 + $0x100] sm:$0xff]  }
  0x1a   : > { %790 = vmatpush3.bf16.msra.mxu0 %v869_v14  ;;  %v779_v56 = vld [vmem:[%s1072_s2] ss:$0 sm:$0xff] }
  0x1b   : > { %812 = vmatpush3.bf16.msra.mxu1 %v870_v15  ;;  %791 = vmatprep.subr.bf16.mxu0 %v871_v16  ;;  %v780_v58 = vld [vmem:[%s1073_s3] ss:$0 sm:$0xff] }
  0x1c   : > { %813 = vmatprep.subr.bf16.mxu1 %v872_v17 }
  0x1e   : > { %792 = vmatpush3.bf16.msra.mxu0 %v873_v18 }
  0x1f   : > { %814 = vmatpush3.bf16.msra.mxu1 %v874_v19  ;;  %793 = vmatprep.subr.bf16.mxu0 %v875_v20 }
  0x20   : > { %815 = vmatprep.subr.bf16.mxu1 %v876_v21 }
  0x22   : > { %794 = vmatpush3.bf16.msra.mxu0 %v877_v22 }
  0x23   : > { %816 = vmatpush3.bf16.msra.mxu1 %v878_v23  ;;  %795 = vmatprep.subr.bf16.mxu0 %v879_v24 }
  0x24   : > { %817 = vmatprep.subr.bf16.mxu1 %v880_v25 }
  0x26   : > { %796 = vmatpush3.bf16.msra.mxu0 %v881_v26 }
  0x27   : > { %818 = vmatpush3.bf16.msra.mxu1 %v882_v27  ;;  %797 = vmatprep.subr.bf16.mxu0 %v883_v28 }
  0x28   : > { %819 = vmatprep.subr.bf16.mxu1 %v884_v29 }
  0x2a   : > { %798 = vmatpush3.bf16.msra.mxu0 %v885_v30 }
  0x2b   : > { %820 = vmatpush3.bf16.msra.mxu1 %v886_v31  ;;  %832 = vmatprep.subr.bf16.mxu0 %v906_v34 }
  0x2d   : > { %561 = vmatmul.mubr.bf16.vlgmr.msra.gmra.mxu0 %v887_v32 }
  0x2e   : > { %602 = vmatmul.mubr.bf16.vlgmr.msra.gmra.mxu1 %v890_v35  ;;  %833 = vmatpush3.bf16.msra.mxu0 %v893_v37 }
  0x2f   : > { %834 = vmatprep.subr.bf16.mxu0 %v906_v34  ;;  %840 = vmatprep.mubr.msk.bf16.mxu0 %vm907_vm0, %v906_v34 }
  0x32   : > { %835 = vmatpush3.bf16.msra.mxu0 %v894_v38 }
  0x33   : > { %836 = vmatprep.subr.bf16.mxu0 %v906_v34 }
  0x36   : > { %837 = vmatpush3.bf16.msra.mxu0 %v895_v39 }
  0x37   : > { %838 = vmatprep.subr.bf16.mxu0 %v906_v34 }
  0x3a   : > { %839 = vmatpush3.bf16.msra.mxu0 %v896_v40 }
  0x3d   : > { %841 = vmatmul.mubr.msk.bf16.vlgmr.msra.gmra.mxu0 %vm524_vm1, %v897_v41 }
  0xed   : > { %v799_v42 = vpop.f32.mrf.mxu0 }
  0xee   : > { %v821_v43 = vpop.f32.mrf.mxu1 }
  0xef   : > { %v800_v44 = vpop.f32.mrf.mxu0 }
  0xf0   : > { %v822_v45 = vpop.f32.mrf.mxu1  ;;  %v801_v48 = vadd.f32 %v800_v44, %v799_v42 }
  0xf1   : > { %v802_v46 = vpop.f32.mrf.mxu0  ;;  %v823_v49 = vadd.f32 %v822_v45, %v821_v43 }
  0xf2   : > { %v824_v47 = vpop.f32.mrf.mxu1 }
  0xf3   : > { %v803_v50 = vpop.f32.mrf.mxu0  ;;  %v604_v54 = vadd.f32 %v823_v49, %v801_v48 }
  0xf4   : > { %v825_v51 = vpop.f32.mrf.mxu1  ;;  %v804_v52 = vadd.f32 %v803_v50, %v802_v46 }
  0xf5   : > { %v826_v53 = vadd.f32 %v825_v51, %v824_v47 }
  0xf7   : > { %v607_v61 = vadd.f32 %v826_v53, %v804_v52 }
  0xfd   : > { %v644_v55 = vpop.f32.mrf.mxu0 }
  0xfe   : > { %v645_v57 = vadd.f32 %v644_v55, %v604_v54 }
  0xff   : > { %v842_v59 = vpop.f32.mrf.mxu0 }
 0x100   : > { %v658_v60 = vmul.f32 %v779_v56, %v645_v57 }
 0x101   : > { %v647_v62 = vpop.f32.mrf.mxu0 }
 0x102   : > { %v667_v63 = vadd.f32 %v780_v58, %v658_v60  ;;  %v648_v0 = vadd.f32 %v647_v62, %v607_v61 }
 0x103   : > { %v843_v1 = vpop.f32.mrf.mxu0 }
 0x104   : > { %670 = vst.msk [vmem:[%s202_s29] sm:$0xff] %vm669_vm2, %v667_v63  ;;  %v659_v2 = vmul.f32 %v779_v56, %v648_v0 }
 0x106   : > { %v668_v3 = vadd.f32 %v780_v58, %v659_v2 }
 0x108   : > { %671 = vst.msk [vmem:[%s202_s29 + $0x8] sm:$0xff] %vm669_vm2, %v668_v3 }
 0x109 PF: > { %s14_s15 = sadd.s32 1, %s904_s15  }
 0x10a   : > { %p11_p4 = scmp.ge.s32.totalorder %s14_s15, 4  }
 0x10c   :  { %13 = sbr.rel (!%p11_p4) target bundleno = 1 (0x1), region = 66 }

// kernel: hybrid_convnet_forward.17
= control target key start
LH: loop header
LB: loop body
LE: loop exit
PB: predicated region body
PF: predicated region fallthrough
CT: control target
= control target key end

     0   :  { %s934_s15 = smov 0   ;;  %s1071_s0 = inlined_call_operand.vmem [shape: bf16[32,576], index: 0, kind: input, shape index: {}]   ;;  %s1072_s1 = inlined_call_operand.vmem [shape: bf16[576,128], index: 1, kind: input, shape index: {}]   ;;  %s1073_s2 = inlined_call_operand.vmem [shape: f32[1,128], index: 2, kind: input, shape index: {}]   ;;  %s1074_s3 = inlined_call_operand.vmem [shape: f32[1,128], index: 3, kind: input, shape index: {}]   ;;  %s1075_s4 = inlined_call_operand.vmem [shape: f32[32,128], index: 4, kind: output, shape index: {}]  }
   0x1 LB: > { %s729_s16 = sadd.s32 4294967295, %s905_s15   ;;  %p733_p0 = scmp.ge.s32.totalorder %s905_s15, 1  ;;  %s905_s15 = sphi %s934_s15, %s14_s15  }
   0x2   : > { %p164_p1 = scmp.lt.s32.totalorder %s905_s15, 3 }
   0x4   : > { %p165_p2 = pnand %p733_p0, %p164_p1 }
   0x5   : > { %s734_s23 = sshll.u32 (!%p165_p2), %s729_s16, 1 }
   0x6   : > { %168 = sbr.rel (%p165_p2) target bundleno = 267 (0x10b), region = 36  ;;  %p192_p3 = scmp.lt.s32.totalorder (!%p165_p2), %s734_s23, 3 }
   0xb   : > { %v856_v0 = vld [vmem:[%s1072_s1 + $0x78] sm:$0xff]   ;;  %v860_v4 = vld [vmem:[%s1072_s1 + $0x70] sm:$0xff]   ;;  %v864_v8 = vld [vmem:[%s1072_s1 + $0x68] sm:$0xff]   ;;  %s1077_s23 = smov (!%p192_p3, %s734_s23), 3  ;;  %v907_v34 = vmov 0.0   ;;  %vm908_vm0 = vmmov 0  }
   0xc   : > { %v857_v1 = vld [vmem:[%s1072_s1 + $0xf8] sm:$0xff]   ;;  %784 = vmatprep.subr.bf16.mxu0 %v856_v0  ;;  %v861_v5 = vld [vmem:[%s1072_s1 + $0xf0] sm:$0xff]   ;;  %v865_v9 = vld [vmem:[%s1072_s1 + $0xe8] sm:$0xff]   ;;  %s845_s21 = smul.u32 20, %s1077_s23  ;;  %vm524_vm1 = vcmask 523264   ;;  %s737_s26 = sshll.u32 %s1077_s23, 3 }
   0xd   : > { %v858_v2 = vld [vmem:[%s1072_s1 + $0x38] sm:$0xff]   ;;  %806 = vmatprep.subr.bf16.mxu1 %v857_v1  ;;  %v862_v6 = vld [vmem:[%s1072_s1 + $0x30] sm:$0xff]   ;;  %v866_v10 = vld [vmem:[%s1072_s1 + $0x28] sm:$0xff]   ;;  %s202_s29 = scalar_lea.vmem %s1075_s4, %s737_s26 }
   0xe   : > { %v859_v3 = vld [vmem:[%s1072_s1 + $0xb8] sm:$0xff]   ;;  %785 = vmatpush3.bf16.msra.mxu0 %v858_v2  ;;  %v863_v7 = vld [vmem:[%s1072_s1 + $0xb0] sm:$0xff]   ;;  %v867_v11 = vld [vmem:[%s1072_s1 + $0xa8] sm:$0xff]   ;;  %s196_s6 = scalar_lea.vmem %s1071_s0, %s845_s21 }
   0xf   : > { %807 = vmatpush3.bf16.msra.mxu1 %v859_v3  ;;  %786 = vmatprep.subr.bf16.mxu0 %v860_v4  ;;  %v868_v12 = vld [vmem:[%s1072_s1 + $0x60] sm:$0xff]   ;;  %v872_v16 = vld [vmem:[%s1072_s1 + $0x58] sm:$0xff]   ;;  %v876_v20 = vld [vmem:[%s1072_s1 + $0x50] sm:$0xff]  }
  0x10   : > { %808 = vmatprep.subr.bf16.mxu1 %v861_v5  ;;  %v869_v13 = vld [vmem:[%s1072_s1 + $0xe0] sm:$0xff]   ;;  %v873_v17 = vld [vmem:[%s1072_s1 + $0xd8] sm:$0xff]   ;;  %v877_v21 = vld [vmem:[%s1072_s1 + $0xd0] sm:$0xff]  }
  0x11   : > { %v870_v14 = vld [vmem:[%s1072_s1 + $0x20] sm:$0xff]   ;;  %v874_v18 = vld [vmem:[%s1072_s1 + $0x18] sm:$0xff]   ;;  %v878_v22 = vld [vmem:[%s1072_s1 + $0x10] sm:$0xff]  }
  0x12   : > { %787 = vmatpush3.bf16.msra.mxu0 %v862_v6  ;;  %v871_v15 = vld [vmem:[%s1072_s1 + $0xa0] sm:$0xff]   ;;  %v875_v19 = vld [vmem:[%s1072_s1 + $0x98] sm:$0xff]   ;;  %v879_v23 = vld [vmem:[%s1072_s1 + $0x90] sm:$0xff]  }
  0x13   : > { %809 = vmatpush3.bf16.msra.mxu1 %v863_v7  ;;  %788 = vmatprep.subr.bf16.mxu0 %v864_v8  ;;  %v880_v24 = vld [vmem:[%s1072_s1 + $0x48] sm:$0xff]   ;;  %v884_v28 = vld [vmem:[%s1072_s1 + $0x40] sm:$0xff]   ;;  %v894_v37 = vld [vmem:[%s1072_s1 + $0x118] sm:$0xff]  }
  0x14   : > { %810 = vmatprep.subr.bf16.mxu1 %v865_v9  ;;  %v881_v25 = vld [vmem:[%s1072_s1 + $0xc8] sm:$0xff]   ;;  %v885_v29 = vld [vmem:[%s1072_s1 + $0xc0] sm:$0xff]   ;;  %v895_v38 = vld [vmem:[%s1072_s1 + $0x110] sm:$0xff]  }
  0x15   : > { %v882_v26 = vld [vmem:[%s1072_s1 + $0x8] sm:$0xff]   ;;  %v886_v30 = vld [vmem:[%s1072_s1] sm:$0xff]  }
  0x16   : > { %789 = vmatpush3.bf16.msra.mxu0 %v866_v10  ;;  %v883_v27 = vld [vmem:[%s1072_s1 + $0x88] sm:$0xff]   ;;  %v887_v31 = vld [vmem:[%s1072_s1 + $0x80] sm:$0xff]  }
  0x17   : > { %811 = vmatpush3.bf16.msra.mxu1 %v867_v11  ;;  %790 = vmatprep.subr.bf16.mxu0 %v868_v12  ;;  %v888_v32 = vld [vmem:[%s196_s6] ss:$20 sps:$4 sm:$0xff]   ;;  %v890_v33 = vld [vmem:[%s196_s6 + $0x4] ss:$20 sps:$4 sm:$0xff]   ;;  %v891_v35 = vld [vmem:[%s196_s6 + $0x8] ss:$20 sps:$4 sm:$0xff]  }
  0x18   : > { %812 = vmatprep.subr.bf16.mxu1 %v869_v13  ;;  %v893_v36 = vld [vmem:[%s196_s6 + $0xc] ss:$20 sps:$4 sm:$0xff]   ;;  %560 = vmatprep.mubr.bf16.mxu0 %v890_v33  ;;  %v898_v41 = vld [vmem:[%s196_s6 + $0x10] ss:$20 sps:$4 sm:$0xff]  }
  0x19   : > { %601 = vmatprep.mubr.bf16.mxu1 %v893_v36  ;;  %v896_v39 = vld [vmem:[%s1072_s1 + $0x108] sm:$0xff]   ;;  %v897_v40 = vld [vmem:[%s1072_s1 + $0x100] sm:$0xff]  }
  0x1a   : > { %791 = vmatpush3.bf16.msra.mxu0 %v870_v14  ;;  %v780_v56 = vld [vmem:[%s1073_s2] ss:$0 sm:$0xff] }
  0x1b   : > { %813 = vmatpush3.bf16.msra.mxu1 %v871_v15  ;;  %792 = vmatprep.subr.bf16.mxu0 %v872_v16  ;;  %v781_v58 = vld [vmem:[%s1074_s3] ss:$0 sm:$0xff] }
  0x1c   : > { %814 = vmatprep.subr.bf16.mxu1 %v873_v17 }
  0x1e   : > { %793 = vmatpush3.bf16.msra.mxu0 %v874_v18 }
  0x1f   : > { %815 = vmatpush3.bf16.msra.mxu1 %v875_v19  ;;  %794 = vmatprep.subr.bf16.mxu0 %v876_v20 }
  0x20   : > { %816 = vmatprep.subr.bf16.mxu1 %v877_v21 }
  0x22   : > { %795 = vmatpush3.bf16.msra.mxu0 %v878_v22 }
  0x23   : > { %817 = vmatpush3.bf16.msra.mxu1 %v879_v23  ;;  %796 = vmatprep.subr.bf16.mxu0 %v880_v24 }
  0x24   : > { %818 = vmatprep.subr.bf16.mxu1 %v881_v25 }
  0x26   : > { %797 = vmatpush3.bf16.msra.mxu0 %v882_v26 }
  0x27   : > { %819 = vmatpush3.bf16.msra.mxu1 %v883_v27  ;;  %798 = vmatprep.subr.bf16.mxu0 %v884_v28 }
  0x28   : > { %820 = vmatprep.subr.bf16.mxu1 %v885_v29 }
  0x2a   : > { %799 = vmatpush3.bf16.msra.mxu0 %v886_v30 }
  0x2b   : > { %821 = vmatpush3.bf16.msra.mxu1 %v887_v31  ;;  %833 = vmatprep.subr.bf16.mxu0 %v907_v34 }
  0x2d   : > { %561 = vmatmul.mubr.bf16.vlgmr.msra.gmra.mxu0 %v888_v32 }
  0x2e   : > { %602 = vmatmul.mubr.bf16.vlgmr.msra.gmra.mxu1 %v891_v35  ;;  %834 = vmatpush3.bf16.msra.mxu0 %v894_v37 }
  0x2f   : > { %835 = vmatprep.subr.bf16.mxu0 %v907_v34  ;;  %841 = vmatprep.mubr.msk.bf16.mxu0 %vm908_vm0, %v907_v34 }
  0x32   : > { %836 = vmatpush3.bf16.msra.mxu0 %v895_v38 }
  0x33   : > { %837 = vmatprep.subr.bf16.mxu0 %v907_v34 }
  0x36   : > { %838 = vmatpush3.bf16.msra.mxu0 %v896_v39 }
  0x37   : > { %839 = vmatprep.subr.bf16.mxu0 %v907_v34 }
  0x3a   : > { %840 = vmatpush3.bf16.msra.mxu0 %v897_v40 }
  0x3d   : > { %842 = vmatmul.mubr.msk.bf16.vlgmr.msra.gmra.mxu0 %vm524_vm1, %v898_v41 }
  0xed   : > { %v800_v42 = vpop.f32.mrf.mxu0 }
  0xee   : > { %v822_v43 = vpop.f32.mrf.mxu1 }
  0xef   : > { %v801_v44 = vpop.f32.mrf.mxu0 }
  0xf0   : > { %v823_v45 = vpop.f32.mrf.mxu1  ;;  %v802_v48 = vadd.f32 %v801_v44, %v800_v42 }
  0xf1   : > { %v803_v46 = vpop.f32.mrf.mxu0  ;;  %v824_v49 = vadd.f32 %v823_v45, %v822_v43 }
  0xf2   : > { %v825_v47 = vpop.f32.mrf.mxu1 }
  0xf3   : > { %v804_v50 = vpop.f32.mrf.mxu0  ;;  %v604_v54 = vadd.f32 %v824_v49, %v802_v48 }
  0xf4   : > { %v826_v51 = vpop.f32.mrf.mxu1  ;;  %v805_v52 = vadd.f32 %v804_v50, %v803_v46 }
  0xf5   : > { %v827_v53 = vadd.f32 %v826_v51, %v825_v47 }
  0xf7   : > { %v607_v61 = vadd.f32 %v827_v53, %v805_v52 }
  0xfd   : > { %v644_v55 = vpop.f32.mrf.mxu0 }
  0xfe   : > { %v645_v57 = vadd.f32 %v644_v55, %v604_v54 }
  0xff   : > { %v843_v59 = vpop.f32.mrf.mxu0 }
 0x100   : > { %v658_v60 = vmul.f32 %v780_v56, %v645_v57 }
 0x101   : > { %v647_v62 = vpop.f32.mrf.mxu0 }
 0x102   : > { %v667_v63 = vadd.f32 %v781_v58, %v658_v60  ;;  %v648_v0 = vadd.f32 %v647_v62, %v607_v61 }
 0x103   : > { %v844_v1 = vpop.f32.mrf.mxu0 }
 0x104   : > { %v669_v2 = vmax.f32 %v667_v63, 0.0  ;;  %v659_v3 = vmul.f32 %v780_v56, %v648_v0 }
 0x106   : > { %671 = vst [vmem:[%s202_s29] sm:$0xff] %v669_v2  ;;  %v668_v4 = vadd.f32 %v781_v58, %v659_v3 }
 0x108   : > { %v670_v5 = vmax.f32 %v668_v4, 0.0 }
 0x10a   : > { %672 = vst [vmem:[%s202_s29 + $0x8] sm:$0xff] %v670_v5 }
 0x10b PF: > { %s14_s15 = sadd.s32 1, %s905_s15  }
 0x10c   : > { %p11_p4 = scmp.ge.s32.totalorder %s14_s15, 4  }
 0x10e   :  { %13 = sbr.rel (!%p11_p4) target bundleno = 1 (0x1), region = 66 }

// kernel: hybrid_convnet_forward.18
= control target key start
LH: loop header
LB: loop body
LE: loop exit
PB: predicated region body
PF: predicated region fallthrough
CT: control target
= control target key end

     0   :  { %s1461_s15 = smov 0   ;;  %s1717_s0 = inlined_call_operand.vmem [shape: bf16[32,1152], index: 0, kind: input, shape index: {}]   ;;  %s1718_s1 = inlined_call_operand.vmem [shape: bf16[1152,6], index: 1, kind: input, shape index: {}]   ;;  %s1719_s2 = inlined_call_operand.vmem [shape: f32[1,6], index: 2, kind: input, shape index: {}]   ;;  %s1720_s3 = inlined_call_operand.vmem [shape: f32[1,6], index: 3, kind: input, shape index: {}]   ;;  %s1721_s4 = inlined_call_operand.vmem [shape: f32[32,6], index: 4, kind: output, shape index: {}]  }
   0x1 LB: > { %s1119_s16 = sadd.s32 4294967295, %s1432_s15   ;;  %p1123_p0 = scmp.ge.s32.totalorder %s1432_s15, 1  ;;  %s1432_s15 = sphi %s1461_s15, %s14_s15  }
   0x2   : > { %p164_p1 = scmp.lt.s32.totalorder %s1432_s15, 3 }
   0x4   : > { %p165_p2 = pnand %p1123_p0, %p164_p1 }
   0x5   : > { %s1124_s23 = sshll.u32 (!%p165_p2), %s1119_s16, 1 }
   0x6   : > { %168 = sbr.rel (%p165_p2) target bundleno = 313 (0x139), region = 36  ;;  %p192_p3 = scmp.lt.s32.totalorder (!%p165_p2), %s1124_s23, 3 }
   0xb   : > { %v1341_v0 = vld [vmem:[%s1718_s1 + $0x78] sm:$0xff]   ;;  %v1345_v4 = vld [vmem:[%s1718_s1 + $0x70] sm:$0xff]   ;;  %v1349_v8 = vld [vmem:[%s1718_s1 + $0x68] sm:$0xff]   ;;  %s1723_s23 = smov (!%p192_p3, %s1124_s23), 3  ;;  %vm1435_vm0 = vmmov 0   ;;  %vm1060_vm1 = vcmask 48128  }
   0xc   : > { %v1342_v1 = vld [vmem:[%s1718_s1 + $0xf8] sm:$0xff]   ;;  %1213 = vmatprep.subr.bf16.mxu0 %v1341_v0  ;;  %v1346_v5 = vld [vmem:[%s1718_s1 + $0xf0] sm:$0xff]   ;;  %v1350_v9 = vld [vmem:[%s1718_s1 + $0xe8] sm:$0xff]   ;;  %s1330_s21 = smul.u32 36, %s1723_s23  ;;  %s1127_s26 = sshll.u32 %s1723_s23, 3 }
   0xd   : > { %v1343_v2 = vld [vmem:[%s1718_s1 + $0x38] sm:$0xff]   ;;  %1235 = vmatprep.subr.bf16.mxu1 %v1342_v1  ;;  %v1347_v6 = vld [vmem:[%s1718_s1 + $0x30] sm:$0xff]   ;;  %v1351_v10 = vld [vmem:[%s1718_s1 + $0x28] sm:$0xff]   ;;  %s202_s5 = scalar_lea.vmem %s1721_s4, %s1127_s26 }
   0xe   : > { %v1344_v3 = vld [vmem:[%s1718_s1 + $0xb8] sm:$0xff]   ;;  %1214 = vmatpush3.bf16.msra.mxu0 %v1343_v2  ;;  %v1348_v7 = vld [vmem:[%s1718_s1 + $0xb0] sm:$0xff]   ;;  %v1352_v11 = vld [vmem:[%s1718_s1 + $0xa8] sm:$0xff]   ;;  %s1567_s6 = scalar_lea.vmem %s1717_s0, %s1330_s21 }
   0xf   : > { %1236 = vmatpush3.bf16.msra.mxu1 %v1344_v3  ;;  %1215 = vmatprep.subr.bf16.mxu0 %v1345_v4  ;;  %v1353_v12 = vld [vmem:[%s1718_s1 + $0x60] sm:$0xff]   ;;  %v1357_v16 = vld [vmem:[%s1718_s1 + $0x58] sm:$0xff]   ;;  %v1361_v20 = vld [vmem:[%s1718_s1 + $0x50] sm:$0xff]  }
  0x10   : > { %1237 = vmatprep.subr.bf16.mxu1 %v1346_v5  ;;  %v1354_v13 = vld [vmem:[%s1718_s1 + $0xe0] sm:$0xff]   ;;  %v1358_v17 = vld [vmem:[%s1718_s1 + $0xd8] sm:$0xff]   ;;  %v1362_v21 = vld [vmem:[%s1718_s1 + $0xd0] sm:$0xff]  }
  0x11   : > { %v1355_v14 = vld [vmem:[%s1718_s1 + $0x20] sm:$0xff]   ;;  %v1359_v18 = vld [vmem:[%s1718_s1 + $0x18] sm:$0xff]   ;;  %v1363_v22 = vld [vmem:[%s1718_s1 + $0x10] sm:$0xff]  }
  0x12   : > { %1216 = vmatpush3.bf16.msra.mxu0 %v1347_v6  ;;  %v1356_v15 = vld [vmem:[%s1718_s1 + $0xa0] sm:$0xff]   ;;  %v1360_v19 = vld [vmem:[%s1718_s1 + $0x98] sm:$0xff]   ;;  %v1364_v23 = vld [vmem:[%s1718_s1 + $0x90] sm:$0xff]   ;;  %v1434_v6 = vmov 0.0  }
  0x13   : > { %1238 = vmatpush3.bf16.msra.mxu1 %v1348_v7  ;;  %1217 = vmatprep.subr.bf16.mxu0 %v1349_v8  ;;  %v1365_v24 = vld [vmem:[%s1718_s1 + $0x48] sm:$0xff]   ;;  %v1369_v28 = vld [vmem:[%s1718_s1 + $0x40] sm:$0xff]   ;;  %v1379_v36 = vld [vmem:[%s1718_s1 + $0x178] sm:$0xff]  }
  0x14   : > { %1239 = vmatprep.subr.bf16.mxu1 %v1350_v9  ;;  %v1366_v25 = vld [vmem:[%s1718_s1 + $0xc8] sm:$0xff]   ;;  %v1370_v29 = vld [vmem:[%s1718_s1 + $0xc0] sm:$0xff]   ;;  %v1380_v37 = vld [vmem:[%s1718_s1 + $0x138] sm:$0xff]  }
  0x15   : > { %v1367_v26 = vld [vmem:[%s1718_s1 + $0x8] sm:$0xff]   ;;  %v1371_v30 = vld [vmem:[%s1718_s1] sm:$0xff]   ;;  %v1381_v38 = vld [vmem:[%s1718_s1 + $0x1f8] sm:$0xff]  }
  0x16   : > { %1218 = vmatpush3.bf16.msra.mxu0 %v1351_v10  ;;  %v1368_v27 = vld [vmem:[%s1718_s1 + $0x88] sm:$0xff]   ;;  %v1372_v31 = vld [vmem:[%s1718_s1 + $0x80] sm:$0xff]   ;;  %v1382_v39 = vld [vmem:[%s1718_s1 + $0x1b8] sm:$0xff]  }
  0x17   : > { %1240 = vmatpush3.bf16.msra.mxu1 %v1352_v11  ;;  %1219 = vmatprep.subr.bf16.mxu0 %v1353_v12  ;;  %v1373_v32 = vld [vmem:[%s1567_s6] ss:$36 sps:$4 sm:$0xff]   ;;  %v1376_v34 = vld [vmem:[%s1567_s6 + $0x8] ss:$36 sps:$4 sm:$0xff]   ;;  %v1383_v40 = vld [vmem:[%s1718_s1 + $0x170] sm:$0xff]  }
  0x18   : > { %1241 = vmatprep.subr.bf16.mxu1 %v1354_v13  ;;  %v1375_v33 = vld [vmem:[%s1567_s6 + $0x4] ss:$36 sps:$4 sm:$0xff]   ;;  %v1378_v35 = vld [vmem:[%s1567_s6 + $0xc] ss:$36 sps:$4 sm:$0xff]   ;;  %v1395_v52 = vld [vmem:[%s1718_s1 + $0x158] sm:$0xff]  }
  0x19   : > { %869 = vmatprep.mubr.bf16.mxu0 %v1375_v33  ;;  %910 = vmatprep.mubr.bf16.mxu1 %v1378_v35  ;;  %v1384_v41 = vld [vmem:[%s1718_s1 + $0x130] sm:$0xff]   ;;  %v1387_v44 = vld [vmem:[%s1718_s1 + $0x168] sm:$0xff]   ;;  %v1391_v48 = vld [vmem:[%s1718_s1 + $0x160] sm:$0xff]  }
  0x1a   : > { %1220 = vmatpush3.bf16.msra.mxu0 %v1355_v14  ;;  %v1385_v42 = vld [vmem:[%s1718_s1 + $0x1f0] sm:$0xff]   ;;  %v1388_v45 = vld [vmem:[%s1718_s1 + $0x128] sm:$0xff]   ;;  %v1392_v49 = vld [vmem:[%s1718_s1 + $0x120] sm:$0xff]  }
  0x1b   : > { %1242 = vmatpush3.bf16.msra.mxu1 %v1356_v15  ;;  %1221 = vmatprep.subr.bf16.mxu0 %v1357_v16  ;;  %v1386_v43 = vld [vmem:[%s1718_s1 + $0x1b0] sm:$0xff]   ;;  %v1389_v46 = vld [vmem:[%s1718_s1 + $0x1e8] sm:$0xff]   ;;  %v1393_v50 = vld [vmem:[%s1718_s1 + $0x1e0] sm:$0xff]  }
  0x1c   : > { %1243 = vmatprep.subr.bf16.mxu1 %v1358_v17  ;;  %v1390_v47 = vld [vmem:[%s1718_s1 + $0x1a8] sm:$0xff]   ;;  %v1394_v51 = vld [vmem:[%s1718_s1 + $0x1a0] sm:$0xff]   ;;  %v1396_v53 = vld [vmem:[%s1718_s1 + $0x118] sm:$0xff]  }
  0x1d   : > { %v1397_v54 = vld [vmem:[%s1718_s1 + $0x1d8] sm:$0xff]   ;;  %v1399_v56 = vld [vmem:[%s1718_s1 + $0x150] sm:$0xff]   ;;  %v1403_v60 = vld [vmem:[%s1718_s1 + $0x148] sm:$0xff]  }
  0x1e   : > { %1222 = vmatpush3.bf16.msra.mxu0 %v1359_v18  ;;  %v1398_v55 = vld [vmem:[%s1718_s1 + $0x198] sm:$0xff]   ;;  %v1400_v57 = vld [vmem:[%s1718_s1 + $0x110] sm:$0xff]   ;;  %v1404_v61 = vld [vmem:[%s1718_s1 + $0x108] sm:$0xff]  }
  0x1f   : > { %1244 = vmatpush3.bf16.msra.mxu1 %v1360_v19  ;;  %1223 = vmatprep.subr.bf16.mxu0 %v1361_v20  ;;  %v1401_v58 = vld [vmem:[%s1718_s1 + $0x1d0] sm:$0xff]   ;;  %v1405_v62 = vld [vmem:[%s1718_s1 + $0x1c8] sm:$0xff]   ;;  %v1407_v0 = vld [vmem:[%s1718_s1 + $0x140] sm:$0xff]  }
  0x20   : > { %1245 = vmatprep.subr.bf16.mxu1 %v1362_v21  ;;  %v1402_v59 = vld [vmem:[%s1718_s1 + $0x190] sm:$0xff]   ;;  %v1406_v63 = vld [vmem:[%s1718_s1 + $0x188] sm:$0xff]   ;;  %v1408_v1 = vld [vmem:[%s1718_s1 + $0x100] sm:$0xff]  }
  0x21   : > { %v1409_v2 = vld [vmem:[%s1718_s1 + $0x1c0] sm:$0xff]   ;;  %v1410_v3 = vld [vmem:[%s1567_s6 + $0x10] ss:$36 sps:$4 sm:$0xff]   ;;  %v1414_v7 = vld [vmem:[%s1567_s6 + $0x18] ss:$36 sps:$4 sm:$0xff]  }
  0x22   : > { %1224 = vmatpush3.bf16.msra.mxu0 %v1363_v22  ;;  %v1412_v4 = vld [vmem:[%s1567_s6 + $0x14] ss:$36 sps:$4 sm:$0xff]   ;;  %v1413_v5 = vld [vmem:[%s1718_s1 + $0x180] sm:$0xff]   ;;  %v1419_v11 = vld [vmem:[%s1718_s1 + $0x228] sm:$0xff]  }
  0x23   : > { %1246 = vmatpush3.bf16.msra.mxu1 %v1364_v23  ;;  %1225 = vmatprep.subr.bf16.mxu0 %v1365_v24  ;;  %v1416_v8 = vld [vmem:[%s1567_s6 + $0x1c] ss:$36 sps:$4 sm:$0xff]   ;;  %v1418_v10 = vld [vmem:[%s1718_s1 + $0x230] sm:$0xff]   ;;  %v1423_v15 = vld [vmem:[%s1718_s1 + $0x208] sm:$0xff]  }
  0x24   : > { %1247 = vmatprep.subr.bf16.mxu1 %v1366_v25  ;;  %v1417_v9 = vld [vmem:[%s1718_s1 + $0x238] sm:$0xff]   ;;  %v1420_v12 = vld [vmem:[%s1718_s1 + $0x220] sm:$0xff]   ;;  %v1422_v14 = vld [vmem:[%s1718_s1 + $0x210] sm:$0xff]  }
  0x25   : > { %v1421_v13 = vld [vmem:[%s1718_s1 + $0x218] sm:$0xff]   ;;  %v1424_v16 = vld [vmem:[%s1718_s1 + $0x200] sm:$0xff]  }
  0x26   : > { %1226 = vmatpush3.bf16.msra.mxu0 %v1367_v26  ;;  %v1425_v17 = vld [vmem:[%s1567_s6 + $0x20] ss:$36 sps:$4 sm:$0xff]  }
  0x27   : > { %1248 = vmatpush3.bf16.msra.mxu1 %v1368_v27  ;;  %1227 = vmatprep.subr.bf16.mxu0 %v1369_v28 }
  0x28   : > { %1249 = vmatprep.subr.bf16.mxu1 %v1370_v29 }
  0x2a   : > { %1228 = vmatpush3.bf16.msra.mxu0 %v1371_v30 }
  0x2b   : > { %1250 = vmatpush3.bf16.msra.mxu1 %v1372_v31  ;;  %1257 = vmatprep.subr.bf16.mxu0 %v1379_v36 }
  0x2c   : > { %1279 = vmatprep.subr.bf16.mxu1 %v1381_v38 }
  0x2d   : > { %870 = vmatmul.mubr.bf16.vlgmr.msra.gmra.mxu0 %v1373_v32 }
  0x2e   : > { %911 = vmatmul.mubr.bf16.vlgmr.msra.gmra.mxu1 %v1376_v34  ;;  %1258 = vmatpush3.bf16.msra.mxu0 %v1380_v37 }
  0x2f   : > { %1280 = vmatpush3.bf16.msra.mxu1 %v1382_v39  ;;  %1259 = vmatprep.subr.bf16.mxu0 %v1383_v40 }
  0x30   : > { %1281 = vmatprep.subr.bf16.mxu1 %v1385_v42  ;;  %951 = vmatprep.mubr.bf16.mxu0 %v1412_v4 }
  0x31   : > { %992 = vmatprep.mubr.bf16.mxu1 %v1416_v8 }
  0x32   : > { %1260 = vmatpush3.bf16.msra.mxu0 %v1384_v41 }
  0x33   : > { %1282 = vmatpush3.bf16.msra.mxu1 %v1386_v43  ;;  %1261 = vmatprep.subr.bf16.mxu0 %v1387_v44 }
  0x34   : > { %1283 = vmatprep.subr.bf16.mxu1 %v1389_v46 }
  0x36   : > { %1262 = vmatpush3.bf16.msra.mxu0 %v1388_v45 }
  0x37   : > { %1284 = vmatpush3.bf16.msra.mxu1 %v1390_v47  ;;  %1263 = vmatprep.subr.bf16.mxu0 %v1391_v48  ;;  %v1209_v48 = vld [vmem:[%s1719_s2] ss:$0 sm:$0xff] }
  0x38   : > { %1285 = vmatprep.subr.bf16.mxu1 %v1393_v50  ;;  %v1210_v50 = vld [vmem:[%s1720_s3] ss:$0 sm:$0xff] }
  0x3a   : > { %1264 = vmatpush3.bf16.msra.mxu0 %v1392_v49 }
  0x3b   : > { %1286 = vmatpush3.bf16.msra.mxu1 %v1394_v51  ;;  %1265 = vmatprep.subr.bf16.mxu0 %v1395_v52 }
  0x3c   : > { %1287 = vmatprep.subr.bf16.mxu1 %v1397_v54 }
  0x3e   : > { %1266 = vmatpush3.bf16.msra.mxu0 %v1396_v53 }
  0x3f   : > { %1288 = vmatpush3.bf16.msra.mxu1 %v1398_v55  ;;  %1267 = vmatprep.subr.bf16.mxu0 %v1399_v56 }
  0x40   : > { %1289 = vmatprep.subr.bf16.mxu1 %v1401_v58 }
  0x42   : > { %1268 = vmatpush3.bf16.msra.mxu0 %v1400_v57 }
  0x43   : > { %1290 = vmatpush3.bf16.msra.mxu1 %v1402_v59  ;;  %1269 = vmatprep.subr.bf16.mxu0 %v1403_v60 }
  0x44   : > { %1291 = vmatprep.subr.bf16.mxu1 %v1405_v62 }
  0x46   : > { %1270 = vmatpush3.bf16.msra.mxu0 %v1404_v61 }
  0x47   : > { %1292 = vmatpush3.bf16.msra.mxu1 %v1406_v63  ;;  %1271 = vmatprep.subr.bf16.mxu0 %v1407_v0 }
  0x48   : > { %1293 = vmatprep.subr.bf16.mxu1 %v1409_v2 }
  0x4a   : > { %1272 = vmatpush3.bf16.msra.mxu0 %v1408_v1 }
  0x4b   : > { %1310 = vmatprep.subr.bf16.mxu0 %v1434_v6  ;;  %1294 = vmatpush3.bf16.msra.mxu1 %v1413_v5 }
  0x4d   : > { %952 = vmatmul.mubr.bf16.vlgmr.msra.gmra.mxu0 %v1410_v3 }
  0x4e   : > { %1326 = vmatprep.mubr.msk.bf16.mxu0 %vm1435_vm0, %v1434_v6  ;;  %1311 = vmatpush3.bf16.msra.mxu0 %v1417_v9 }
  0x4f   : > { %993 = vmatmul.mubr.bf16.vlgmr.msra.gmra.mxu1 %v1414_v7  ;;  %1312 = vmatprep.subr.bf16.mxu0 %v1434_v6 }
  0x52   : > { %1313 = vmatpush3.bf16.msra.mxu0 %v1418_v10 }
  0x53   : > { %1314 = vmatprep.subr.bf16.mxu0 %v1434_v6 }
  0x56   : > { %1315 = vmatpush3.bf16.msra.mxu0 %v1419_v11 }
  0x57   : > { %1316 = vmatprep.subr.bf16.mxu0 %v1434_v6 }
  0x5a   : > { %1317 = vmatpush3.bf16.msra.mxu0 %v1420_v12 }
  0x5b   : > { %1318 = vmatprep.subr.bf16.mxu0 %v1434_v6 }
  0x5e   : > { %1319 = vmatpush3.bf16.msra.mxu0 %v1421_v13 }
  0x5f   : > { %1320 = vmatprep.subr.bf16.mxu0 %v1434_v6 }
  0x62   : > { %1321 = vmatpush3.bf16.msra.mxu0 %v1422_v14 }
  0x63   : > { %1322 = vmatprep.subr.bf16.mxu0 %v1434_v6 }
  0x66   : > { %1323 = vmatpush3.bf16.msra.mxu0 %v1423_v15 }
  0x67   : > { %1324 = vmatprep.subr.bf16.mxu0 %v1434_v6 }
  0x6a   : > { %1325 = vmatpush3.bf16.msra.mxu0 %v1424_v16 }
  0x6d   : > { %1327 = vmatmul.mubr.bf16.vlgmr.msra.gmra.mxu0 %v1425_v17 }
  0xed   : > { %v1229_v18 = vpop.f32.mrf.mxu0 }
  0xee   : > { %v1251_v19 = vpop.f32.mrf.mxu1 }
  0xef   : > { %v1230_v20 = vpop.f32.mrf.mxu0 }
  0xf0   : > { %v1252_v21 = vpop.f32.mrf.mxu1  ;;  %v1231_v31 = vadd.f32 %v1230_v20, %v1229_v18 }
  0xf1   : > { %v1232_v22 = vpop.f32.mrf.mxu0  ;;  %v1253_v32 = vadd.f32 %v1252_v21, %v1251_v19 }
  0xf2   : > { %v1254_v23 = vpop.f32.mrf.mxu1 }
  0xf3   : > { %v1233_v24 = vpop.f32.mrf.mxu0  ;;  %v913_v36 = vadd.f32 %v1253_v32, %v1231_v31 }
  0xf4   : > { %v1255_v26 = vpop.f32.mrf.mxu1  ;;  %v1234_v37 = vadd.f32 %v1233_v24, %v1232_v22 }
  0xf5   : > { %v1256_v38 = vadd.f32 %v1255_v26, %v1254_v23 }
  0xf7   : > { %v916_v43 = vadd.f32 %v1256_v38, %v1234_v37 }
 0x10d   : > { %v1273_v25 = vpop.f32.mrf.mxu0 }
 0x10f   : > { %v1274_v27 = vpop.f32.mrf.mxu0  ;;  %v1295_v28 = vpop.f32.mrf.mxu1 }
 0x110   : > { %v1275_v33 = vadd.f32 %v1274_v27, %v1273_v25 }
 0x111   : > { %v1276_v29 = vpop.f32.mrf.mxu0  ;;  %v1296_v30 = vpop.f32.mrf.mxu1 }
 0x112   : > { %v954_v39 = vadd.f32 %v1275_v33, %v913_v36  ;;  %v1297_v40 = vadd.f32 %v1296_v30, %v1295_v28 }
 0x113   : > { %v1277_v34 = vpop.f32.mrf.mxu0  ;;  %v1298_v35 = vpop.f32.mrf.mxu1 }
 0x114   : > { %v1278_v41 = vadd.f32 %v1277_v34, %v1276_v29  ;;  %v995_v46 = vadd.f32 %v1297_v40, %v954_v39 }
 0x115   : > { %v1299_v42 = vpop.f32.mrf.mxu1 }
 0x116   : > { %v957_v44 = vadd.f32 %v1278_v41, %v916_v43  ;;  %v1300_v45 = vadd.f32 %v1299_v42, %v1298_v35 }
 0x118   : > { %v998_v53 = vadd.f32 %v1300_v45, %v957_v44 }
 0x12d   : > { %v1035_v47 = vpop.f32.mrf.mxu0 }
 0x12e   : > { %v1036_v49 = vadd.f32 %v1035_v47, %v995_v46 }
 0x12f   : > { %v1328_v51 = vpop.f32.mrf.mxu0 }
 0x130   : > { %v1049_v52 = vmul.f32 %v1209_v48, %v1036_v49 }
 0x131   : > { %v1038_v54 = vpop.f32.mrf.mxu0 }
 0x132   : > { %v1058_v55 = vadd.f32 %v1210_v50, %v1049_v52  ;;  %v1039_v56 = vadd.f32 %v1038_v54, %v998_v53 }
 0x133   : > { %v1329_v57 = vpop.f32.mrf.mxu0 }
 0x134   : > { %1061 = vst.msk [vmem:[%s202_s5] sm:$0xff] %vm1060_vm1, %v1058_v55  ;;  %v1050_v58 = vmul.f32 %v1209_v48, %v1039_v56 }
 0x136   : > { %v1059_v59 = vadd.f32 %v1210_v50, %v1050_v58 }
 0x138   : > { %1062 = vst.msk [vmem:[%s202_s5 + $0x8] sm:$0xff] %vm1060_vm1, %v1059_v59 }
 0x139 PF: > { %s14_s15 = sadd.s32 1, %s1432_s15  }
 0x13a   : > { %p11_p4 = scmp.ge.s32.totalorder %s14_s15, 4  }
 0x13c   :  { %13 = sbr.rel (!%p11_p4) target bundleno = 1 (0x1), region = 66 }

// kernel: hybrid_convnet_forward.19
= control target key start
LH: loop header
LB: loop body
LE: loop exit
PB: predicated region body
PF: predicated region fallthrough
CT: control target
= control target key end

     0   :  { %s740_s15 = smov 0   ;;  %s839_s0 = inlined_call_operand.vmem [shape: bf16[32,384], index: 0, kind: input, shape index: {}]   ;;  %s840_s1 = inlined_call_operand.vmem [shape: bf16[384,128], index: 1, kind: input, shape index: {}]   ;;  %s841_s2 = inlined_call_operand.vmem [shape: f32[1,128], index: 2, kind: input, shape index: {}]   ;;  %s842_s3 = inlined_call_operand.vmem [shape: f32[1,128], index: 3, kind: input, shape index: {}]   ;;  %s843_s4 = inlined_call_operand.vmem [shape: f32[32,128], index: 4, kind: output, shape index: {}]  }
   0x1 LB: > { %s575_s16 = sadd.s32 4294967295, %s711_s15   ;;  %p579_p0 = scmp.ge.s32.totalorder %s711_s15, 1  ;;  %s711_s15 = sphi %s740_s15, %s14_s15  }
   0x2   : > { %p164_p1 = scmp.lt.s32.totalorder %s711_s15, 3 }
   0x4   : > { %p165_p2 = pnand %p579_p0, %p164_p1 }
   0x5   : > { %s580_s7 = sshll.u32 (!%p165_p2), %s575_s16, 1 }
   0x6   : > { %168 = sbr.rel (%p165_p2) target bundleno = 253 (0xfd), region = 36  ;;  %p192_p3 = scmp.lt.s32.totalorder (!%p165_p2), %s580_s7, 3 }
   0xb   : > { %v677_v0 = vld [vmem:[%s840_s1 + $0x78] sm:$0xff]   ;;  %v713_v1 = vmov 0.0   ;;  %vm714_vm0 = vmmov 0   ;;  %v680_v4 = vld [vmem:[%s840_s1 + $0x70] sm:$0xff]   ;;  %v683_v7 = vld [vmem:[%s840_s1 + $0x68] sm:$0xff]   ;;  %s845_s7 = smov (!%p192_p3, %s580_s7), 3 }
   0xc   : > { %646 = vmatprep.subr.bf16.mxu1 %v713_v1  ;;  %v678_v2 = vld [vmem:[%s840_s1 + $0xb8] sm:$0xff]   ;;  %615 = vmatprep.subr.bf16.mxu0 %v677_v0  ;;  %v681_v5 = vld [vmem:[%s840_s1 + $0xb0] sm:$0xff]   ;;  %v684_v8 = vld [vmem:[%s840_s1 + $0xa8] sm:$0xff]   ;;  %s666_s25 = smul.u32 12, %s845_s7  ;;  %s583_s23 = sshll.u32 %s845_s7, 3 }
   0xd   : > { %v679_v3 = vld [vmem:[%s840_s1 + $0x38] sm:$0xff]   ;;  %662 = vmatprep.mubr.msk.bf16.mxu1 %vm714_vm0, %v713_v1  ;;  %647 = vmatpush3.bf16.msra.mxu1 %v678_v2  ;;  %v682_v6 = vld [vmem:[%s840_s1 + $0x30] sm:$0xff]   ;;  %v685_v9 = vld [vmem:[%s840_s1 + $0x28] sm:$0xff]   ;;  %s202_s28 = scalar_lea.vmem %s843_s4, %s583_s23 }
   0xe   : > { %616 = vmatpush3.bf16.msra.mxu0 %v679_v3  ;;  %648 = vmatprep.subr.bf16.mxu1 %v713_v1  ;;  %v686_v10 = vld [vmem:[%s840_s1 + $0x60] sm:$0xff]   ;;  %v689_v13 = vld [vmem:[%s840_s1 + $0x58] sm:$0xff]   ;;  %v692_v16 = vld [vmem:[%s840_s1 + $0x50] sm:$0xff]   ;;  %s196_s11 = scalar_lea.vmem %s839_s0, %s666_s25 }
   0xf   : > { %617 = vmatprep.subr.bf16.mxu0 %v680_v4  ;;  %v687_v11 = vld [vmem:[%s840_s1 + $0xa0] sm:$0xff]   ;;  %v690_v14 = vld [vmem:[%s840_s1 + $0x98] sm:$0xff]   ;;  %v693_v17 = vld [vmem:[%s840_s1 + $0x90] sm:$0xff]  }
  0x10   : > { %v688_v12 = vld [vmem:[%s840_s1 + $0x20] sm:$0xff]   ;;  %v691_v15 = vld [vmem:[%s840_s1 + $0x18] sm:$0xff]   ;;  %v694_v18 = vld [vmem:[%s840_s1 + $0x10] sm:$0xff]  }
  0x11   : > { %649 = vmatpush3.bf16.msra.mxu1 %v681_v5  ;;  %v695_v19 = vld [vmem:[%s840_s1 + $0x48] sm:$0xff]   ;;  %v698_v22 = vld [vmem:[%s840_s1 + $0x40] sm:$0xff]  }
  0x12   : > { %618 = vmatpush3.bf16.msra.mxu0 %v682_v6  ;;  %650 = vmatprep.subr.bf16.mxu1 %v713_v1  ;;  %v696_v20 = vld [vmem:[%s840_s1 + $0x88] sm:$0xff]   ;;  %v703_v23 = vld [vmem:[%s196_s11 + $0x4] ss:$12 sps:$4 sm:$0xff]   ;;  %v611_v34 = vld [vmem:[%s841_s2] ss:$0 sm:$0xff] }
  0x13   : > { %619 = vmatprep.subr.bf16.mxu0 %v683_v7  ;;  %v697_v21 = vld [vmem:[%s840_s1 + $0x8] sm:$0xff]   ;;  %v699_v24 = vld [vmem:[%s840_s1 + $0x80] sm:$0xff]   ;;  %449 = vmatprep.mubr.bf16.mxu0 %v703_v23 }
  0x14   : > { %v700_v25 = vld [vmem:[%s840_s1] sm:$0xff]   ;;  %v704_v26 = vld [vmem:[%s196_s11 + $0x8] ss:$12 sps:$4 sm:$0xff]  }
  0x15   : > { %651 = vmatpush3.bf16.msra.mxu1 %v684_v8  ;;  %v701_v27 = vld [vmem:[%s196_s11] ss:$12 sps:$4 sm:$0xff]  }
  0x16   : > { %620 = vmatpush3.bf16.msra.mxu0 %v685_v9  ;;  %652 = vmatprep.subr.bf16.mxu1 %v713_v1  ;;  %v612_v38 = vld [vmem:[%s842_s3] ss:$0 sm:$0xff] }
  0x17   : > { %621 = vmatprep.subr.bf16.mxu0 %v686_v10 }
  0x19   : > { %653 = vmatpush3.bf16.msra.mxu1 %v687_v11 }
  0x1a   : > { %622 = vmatpush3.bf16.msra.mxu0 %v688_v12  ;;  %654 = vmatprep.subr.bf16.mxu1 %v713_v1 }
  0x1b   : > { %623 = vmatprep.subr.bf16.mxu0 %v689_v13 }
  0x1d   : > { %655 = vmatpush3.bf16.msra.mxu1 %v690_v14 }
  0x1e   : > { %624 = vmatpush3.bf16.msra.mxu0 %v691_v15  ;;  %656 = vmatprep.subr.bf16.mxu1 %v713_v1 }
  0x1f   : > { %625 = vmatprep.subr.bf16.mxu0 %v692_v16 }
  0x21   : > { %657 = vmatpush3.bf16.msra.mxu1 %v693_v17 }
  0x22   : > { %626 = vmatpush3.bf16.msra.mxu0 %v694_v18  ;;  %658 = vmatprep.subr.bf16.mxu1 %v713_v1 }
  0x23   : > { %627 = vmatprep.subr.bf16.mxu0 %v695_v19 }
  0x25   : > { %659 = vmatpush3.bf16.msra.mxu1 %v696_v20 }
  0x26   : > { %628 = vmatpush3.bf16.msra.mxu0 %v697_v21  ;;  %660 = vmatprep.subr.bf16.mxu1 %v713_v1 }
  0x27   : > { %629 = vmatprep.subr.bf16.mxu0 %v698_v22 }
  0x29   : > { %661 = vmatpush3.bf16.msra.mxu1 %v699_v24 }
  0x2a   : > { %630 = vmatpush3.bf16.msra.mxu0 %v700_v25 }
  0x2c   : > { %663 = vmatmul.mubr.bf16.vlgmr.msra.gmra.mxu1 %v704_v26 }
  0x2d   : > { %450 = vmatmul.mubr.bf16.vlgmr.msra.gmra.mxu0 %v701_v27 }
  0xec   : > { %v492_v28 = vpop.f32.mrf.mxu1 }
  0xed   : > { %v631_v29 = vpop.f32.mrf.mxu0 }
  0xee   : > { %v664_v30 = vpop.f32.mrf.mxu1 }
  0xef   : > { %v632_v31 = vpop.f32.mrf.mxu0 }
  0xf0   : > { %v633_v32 = vadd.f32 %v632_v31, %v631_v29  ;;  %v495_v33 = vpop.f32.mrf.mxu1 }
  0xf1   : > { %v634_v35 = vpop.f32.mrf.mxu0 }
  0xf2   : > { %v493_v36 = vadd.f32 %v633_v32, %v492_v28  ;;  %v665_v37 = vpop.f32.mrf.mxu1 }
  0xf3   : > { %v635_v39 = vpop.f32.mrf.mxu0 }
  0xf4   : > { %v506_v40 = vmul.f32 %v611_v34, %v493_v36  ;;  %v636_v41 = vadd.f32 %v635_v39, %v634_v35 }
  0xf6   : > { %v515_v42 = vadd.f32 %v612_v38, %v506_v40  ;;  %v496_v43 = vadd.f32 %v636_v41, %v495_v33 }
  0xf8   : > { %517 = vst [vmem:[%s202_s28] sm:$0xff] %v515_v42  ;;  %v507_v44 = vmul.f32 %v611_v34, %v496_v43 }
  0xfa   : > { %v516_v45 = vadd.f32 %v612_v38, %v507_v44 }
  0xfc   : > { %518 = vst [vmem:[%s202_s28 + $0x8] sm:$0xff] %v516_v45 }
  0xfd PF: > { %s14_s15 = sadd.s32 1, %s711_s15  }
  0xfe   : > { %p11_p4 = scmp.ge.s32.totalorder %s14_s15, 4  }
 0x100   :  { %13 = sbr.rel (!%p11_p4) target bundleno = 1 (0x1), region = 66 }

// kernel: hybrid_convnet_forward.21
= control target key start
LH: loop header
LB: loop body
LE: loop exit
PB: predicated region body
PF: predicated region fallthrough
CT: control target
= control target key end

     0   :  { %s879_s15 = smov 0   ;;  %s1055_s0 = inlined_call_operand.vmem [shape: bf16[32,384], index: 0, kind: input, shape index: {}]   ;;  %s1056_s1 = inlined_call_operand.vmem [shape: bf16[384,256], index: 1, kind: input, shape index: {}]   ;;  %s1057_s2 = inlined_call_operand.vmem [shape: f32[1,256], index: 2, kind: input, shape index: {}]   ;;  %s1058_s3 = inlined_call_operand.vmem [shape: f32[1,256], index: 3, kind: input, shape index: {}]   ;;  %s1059_s4 = inlined_call_operand.vmem [shape: f32[32,256], index: 4, kind: output, shape index: {}]  }
   0x1 LB: > { %s695_s16 = sadd.s32 4294967295, %s851_s15   ;;  %p699_p0 = scmp.ge.s32.totalorder %s851_s15, 1  ;;  %s851_s15 = sphi %s879_s15, %s14_s15  }
   0x2   : > { %p164_p1 = scmp.lt.s32.totalorder %s851_s15, 3 }
   0x4   : > { %p165_p2 = pnand %p699_p0, %p164_p1 }
   0x5   : > { %s700_s19 = sshll.u32 (!%p165_p2), %s695_s16, 1 }
   0x6   : > { %168 = sbr.rel (%p165_p2) target bundleno = 282 (0x11a), region = 36  ;;  %p193_p3 = scmp.lt.s32.totalorder (!%p165_p2), %s700_s19, 3 }
   0xb   : > { %v769_v0 = vld [vmem:[%s1056_s1 + $0x74] ss:$8 sps:$4 sm:$0xff]   ;;  %v771_v1 = vld [vmem:[%s1056_s1 + $0x70] ss:$8 sps:$4 sm:$0xff]   ;;  %v853_v2 = vmov 0   ;;  %s1061_s19 = smov (!%p193_p3, %s700_s19), 3  ;;  %v603_v52 = vlaneseq }
   0xc   : > { %590 = vmatprep.mubr.bf16.mxu1 %v853_v2  ;;  %515 = vmatprep.subr.bf16.mxu0 %v769_v0  ;;  %v772_v3 = vld [vmem:[%s1056_s1 + $0x64] ss:$8 sps:$4 sm:$0xff]   ;;  %v774_v4 = vld [vmem:[%s1056_s1 + $0x60] ss:$8 sps:$4 sm:$0xff]   ;;  %v775_v5 = vld [vmem:[%s1056_s1 + $0x54] ss:$8 sps:$4 sm:$0xff]  }
   0xd   : > { %516 = vmatpush1.bf16.msra.mxu0 %v771_v1  ;;  %v777_v6 = vld [vmem:[%s1056_s1 + $0x50] ss:$8 sps:$4 sm:$0xff]   ;;  %v778_v7 = vld [vmem:[%s1056_s1 + $0x44] ss:$8 sps:$4 sm:$0xff]   ;;  %v790_v8 = vld [vmem:[%s1056_s1 + $0x174] ss:$8 sps:$4 sm:$0xff]  }
   0xe   : > { %517 = vmatprep.subr.bf16.mxu0 %v772_v3  ;;  %v792_v9 = vld [vmem:[%s1056_s1 + $0x170] ss:$8 sps:$4 sm:$0xff]   ;;  %v780_v10 = vld [vmem:[%s1056_s1 + $0x40] ss:$8 sps:$4 sm:$0xff]   ;;  %v781_v11 = vld [vmem:[%s1056_s1 + $0x34] ss:$8 sps:$4 sm:$0xff]   ;;  %558 = vmatprep.subr.bf16.mxu1 %v790_v8 }
   0xf   : > { %v796_v12 = vld [vmem:[%s1056_s1 + $0x164] ss:$8 sps:$4 sm:$0xff]   ;;  %559 = vmatpush1.bf16.msra.mxu1 %v792_v9  ;;  %v798_v13 = vld [vmem:[%s1056_s1 + $0x160] ss:$8 sps:$4 sm:$0xff]   ;;  %v783_v14 = vld [vmem:[%s1056_s1 + $0x30] ss:$8 sps:$4 sm:$0xff]  }
  0x10   : > { %560 = vmatprep.subr.bf16.mxu1 %v796_v12  ;;  %v802_v15 = vld [vmem:[%s1056_s1 + $0x154] ss:$8 sps:$4 sm:$0xff]   ;;  %v784_v16 = vld [vmem:[%s1056_s1 + $0x24] ss:$8 sps:$4 sm:$0xff]   ;;  %v804_v17 = vld [vmem:[%s1056_s1 + $0x150] ss:$8 sps:$4 sm:$0xff]  }
  0x11   : > { %518 = vmatpush1.bf16.msra.mxu0 %v774_v4  ;;  %v808_v18 = vld [vmem:[%s1056_s1 + $0x144] ss:$8 sps:$4 sm:$0xff]   ;;  %v786_v19 = vld [vmem:[%s1056_s1 + $0x20] ss:$8 sps:$4 sm:$0xff]   ;;  %v787_v20 = vld [vmem:[%s1056_s1 + $0x14] ss:$8 sps:$4 sm:$0xff]  }
  0x12   : > { %519 = vmatprep.subr.bf16.mxu0 %v775_v5  ;;  %v810_v21 = vld [vmem:[%s1056_s1 + $0x140] ss:$8 sps:$4 sm:$0xff]   ;;  %v814_v22 = vld [vmem:[%s1056_s1 + $0x134] ss:$8 sps:$4 sm:$0xff]   ;;  %v789_v23 = vld [vmem:[%s1056_s1 + $0x10] ss:$8 sps:$4 sm:$0xff]  }
  0x13   : > { %561 = vmatpush1.bf16.msra.mxu1 %v798_v13  ;;  %v793_v24 = vld [vmem:[%s1056_s1 + $0x4] ss:$8 sps:$4 sm:$0xff]   ;;  %v816_v25 = vld [vmem:[%s1056_s1 + $0x130] ss:$8 sps:$4 sm:$0xff]   ;;  %s759_s20 = smul.u32 12, %s1061_s19  ;;  %v604_v53 = vshrl.u32 %v603_v52, 7 }
  0x14   : > { %562 = vmatprep.subr.bf16.mxu1 %v802_v15  ;;  %v820_v26 = vld [vmem:[%s1056_s1 + $0x124] ss:$8 sps:$4 sm:$0xff]   ;;  %v795_v27 = vld [vmem:[%s1056_s1] ss:$8 sps:$4 sm:$0xff]   ;;  %v799_v28 = vld [vmem:[%s1056_s1 + $0xf4] ss:$8 sps:$4 sm:$0xff]  }
  0x15   : > { %520 = vmatpush1.bf16.msra.mxu0 %v777_v6  ;;  %v822_v29 = vld [vmem:[%s1056_s1 + $0x120] ss:$8 sps:$4 sm:$0xff]   ;;  %s980_s30 = scalar_lea.vmem %s1055_s0, %s759_s20  ;;  %v826_v30 = vld [vmem:[%s1056_s1 + $0x114] ss:$8 sps:$4 sm:$0xff]   ;;  %v801_v31 = vld [vmem:[%s1056_s1 + $0xf0] ss:$8 sps:$4 sm:$0xff]  }
  0x16   : > { %521 = vmatprep.subr.bf16.mxu0 %v778_v7  ;;  %v805_v32 = vld [vmem:[%s1056_s1 + $0xe4] ss:$8 sps:$4 sm:$0xff]   ;;  %v828_v33 = vld [vmem:[%s1056_s1 + $0x110] ss:$8 sps:$4 sm:$0xff]   ;;  %v807_v36 = vld [vmem:[%s1056_s1 + $0xe0] ss:$8 sps:$4 sm:$0xff]  }
  0x17   : > { %563 = vmatpush1.bf16.msra.mxu1 %v804_v17  ;;  %v832_v34 = vld [vmem:[%s1056_s1 + $0x104] ss:$8 sps:$4 sm:$0xff]   ;;  %v811_v37 = vld [vmem:[%s1056_s1 + $0xd4] ss:$8 sps:$4 sm:$0xff]   ;;  %v834_v38 = vld [vmem:[%s1056_s1 + $0x100] ss:$8 sps:$4 sm:$0xff]  }
  0x18   : > { %564 = vmatprep.subr.bf16.mxu1 %v808_v18  ;;  %v844_v35 = vld [vmem:[%s980_s30 + $0x4] ss:$12 sps:$4 sm:$0xff]   ;;  %v838_v41 = vld [vmem:[%s980_s30 + $0x8] ss:$12 sps:$4 sm:$0xff]   ;;  %v842_v51 = vld [vmem:[%s980_s30] ss:$12 sps:$4 sm:$0xff]  }
  0x19   : > { %522 = vmatpush1.bf16.msra.mxu0 %v780_v10  ;;  %547 = vmatprep.mubr.bf16.mxu0 %v844_v35  ;;  %v813_v39 = vld [vmem:[%s1056_s1 + $0xd0] ss:$8 sps:$4 sm:$0xff]   ;;  %v817_v40 = vld [vmem:[%s1056_s1 + $0xc4] ss:$8 sps:$4 sm:$0xff]   ;;  %v819_v42 = vld [vmem:[%s1056_s1 + $0xc0] ss:$8 sps:$4 sm:$0xff]  }
  0x1a   : > { %523 = vmatprep.subr.bf16.mxu0 %v781_v11  ;;  %v823_v43 = vld [vmem:[%s1056_s1 + $0xb4] ss:$8 sps:$4 sm:$0xff]   ;;  %v825_v44 = vld [vmem:[%s1056_s1 + $0xb0] ss:$8 sps:$4 sm:$0xff]   ;;  %v829_v45 = vld [vmem:[%s1056_s1 + $0xa4] ss:$8 sps:$4 sm:$0xff]  }
  0x1b   : > { %565 = vmatpush1.bf16.msra.mxu1 %v810_v21  ;;  %v831_v46 = vld [vmem:[%s1056_s1 + $0xa0] ss:$8 sps:$4 sm:$0xff]   ;;  %v835_v47 = vld [vmem:[%s1056_s1 + $0x94] ss:$8 sps:$4 sm:$0xff]   ;;  %v837_v48 = vld [vmem:[%s1056_s1 + $0x90] ss:$8 sps:$4 sm:$0xff]  }
  0x1c   : > { %566 = vmatprep.subr.bf16.mxu1 %v814_v22  ;;  %v839_v49 = vld [vmem:[%s1056_s1 + $0x84] ss:$8 sps:$4 sm:$0xff]   ;;  %v841_v50 = vld [vmem:[%s1056_s1 + $0x80] ss:$8 sps:$4 sm:$0xff]   ;;  %v605_v55 = vsub.s32 0, %v604_v53  ;;  %v609_v57 = vsub.s32 1, %v604_v53 }
  0x1d   : > { %524 = vmatpush1.bf16.msra.mxu0 %v783_v14  ;;  %v601_v56 = vld [vmem:[%s1057_s2] sm:$0x3]  ;;  %s758_s27 = sshll.u32 %s1061_s19, 4 }
  0x1e   : > { %525 = vmatprep.subr.bf16.mxu0 %v784_v16  ;;  %v617_v59 = vld [vmem:[%s1058_s3] sm:$0x3]  ;;  %v606_v60 = vrot.slane %v601_v56, %v605_v55  ;;  %v610_v0 = vrot.slane %v601_v56, %v609_v57  ;;  %s204_s28 = scalar_lea.vmem %s1059_s4, %s758_s27 }
  0x1f   : > { %567 = vmatpush1.bf16.msra.mxu1 %v816_v25  ;;  %v622_v63 = vrot.slane %v617_v59, %v605_v55  ;;  %v626_v5 = vrot.slane %v617_v59, %v609_v57 }
  0x20   : > { %568 = vmatprep.subr.bf16.mxu1 %v820_v26 }
  0x21   : > { %526 = vmatpush1.bf16.msra.mxu0 %v786_v19 }
  0x22   : > { %527 = vmatprep.subr.bf16.mxu0 %v787_v20 }
  0x23   : > { %569 = vmatpush1.bf16.msra.mxu1 %v822_v29 }
  0x24   : > { %570 = vmatprep.subr.bf16.mxu1 %v826_v30 }
  0x25   : > { %528 = vmatpush1.bf16.msra.mxu0 %v789_v23 }
  0x26   : > { %529 = vmatprep.subr.bf16.mxu0 %v793_v24 }
  0x27   : > { %571 = vmatpush1.bf16.msra.mxu1 %v828_v33 }
  0x28   : > { %572 = vmatprep.subr.bf16.mxu1 %v832_v34 }
  0x29   : > { %530 = vmatpush1.bf16.msra.mxu0 %v795_v27 }
  0x2a   : > { %531 = vmatprep.subr.bf16.mxu0 %v799_v28 }
  0x2b   : > { %573 = vmatpush1.bf16.msra.mxu1 %v834_v38 }
  0x2d   : > { %532 = vmatpush2.bf16.msra.mxu0 %v801_v31 }
  0x2e   : > { %533 = vmatprep.subr.bf16.mxu0 %v805_v32  ;;  %591 = vmatmul.mubr.bf16.vlgmr.msra.gmra.mxu1 %v838_v41 }
  0x31   : > { %534 = vmatpush2.bf16.msra.mxu0 %v807_v36 }
  0x32   : > { %535 = vmatprep.subr.bf16.mxu0 %v811_v37 }
  0x35   : > { %536 = vmatpush2.bf16.msra.mxu0 %v813_v39 }
  0x36   : > { %537 = vmatprep.subr.bf16.mxu0 %v817_v40 }
  0x39   : > { %538 = vmatpush2.bf16.msra.mxu0 %v819_v42 }
  0x3a   : > { %539 = vmatprep.subr.bf16.mxu0 %v823_v43 }
  0x3d   : > { %540 = vmatpush2.bf16.msra.mxu0 %v825_v44 }
  0x3e   : > { %541 = vmatprep.subr.bf16.mxu0 %v829_v45 }
  0x41   : > { %542 = vmatpush2.bf16.msra.mxu0 %v831_v46 }
  0x42   : > { %543 = vmatprep.subr.bf16.mxu0 %v835_v47 }
  0x45   : > { %544 = vmatpush2.bf16.msra.mxu0 %v837_v48 }
  0x46   : > { %545 = vmatprep.subr.bf16.mxu0 %v839_v49 }
  0x49   : > { %546 = vmatpush2.bf16.msra.mxu0 %v841_v50 }
  0x4c   : > { %548 = vmatmul.mubr.bf16.vlgmr.msra.gmra.mxu0 %v842_v51 }
  0xee   : > { %v592_v54 = vpop.f32.mrf.mxu1 }
  0xf0   : > { %v594_v58 = vpop.f32.mrf.mxu1 }
  0xf2   : > { %v596_v1 = vpop.f32.mrf.mxu1 }
  0xf4   : > { %v598_v10 = vpop.f32.mrf.mxu1 }
 0x10c   : > { %v549_v61 = vpop.f32.mrf.mxu0 }
 0x10d   : > { %v593_v62 = vadd.f32 %v592_v54, %v549_v61 }
 0x10e   : > { %v551_v2 = vpop.f32.mrf.mxu0 }
 0x10f   : > { %v613_v3 = vmul.f32 %v606_v60, %v593_v62  ;;  %v595_v4 = vadd.f32 %v594_v58, %v551_v2 }
 0x110   : > { %v553_v6 = vpop.f32.mrf.mxu0 }
 0x111   : > { %v629_v7 = vadd.f32 %v622_v63, %v613_v3  ;;  %v614_v8 = vmul.f32 %v610_v0, %v595_v4  ;;  %v597_v9 = vadd.f32 %v596_v1, %v553_v6 }
 0x112   : > { %v555_v11 = vpop.f32.mrf.mxu0 }
 0x113   : > { %633 = vst [vmem:[%s204_s28] sm:$0xff] %v629_v7  ;;  %v630_v12 = vadd.f32 %v626_v5, %v614_v8  ;;  %v615_v13 = vmul.f32 %v606_v60, %v597_v9  ;;  %v599_v14 = vadd.f32 %v598_v10, %v555_v11 }
 0x115   : > { %634 = vst [vmem:[%s204_s28 + $0x8] sm:$0xff] %v630_v12  ;;  %v631_v15 = vadd.f32 %v622_v63, %v615_v13  ;;  %v616_v16 = vmul.f32 %v610_v0, %v599_v14 }
 0x117   : > { %635 = vst [vmem:[%s204_s28 + $0x10] sm:$0xff] %v631_v15  ;;  %v632_v17 = vadd.f32 %v626_v5, %v616_v16 }
 0x119   : > { %636 = vst [vmem:[%s204_s28 + $0x18] sm:$0xff] %v632_v17 }
 0x11a PF: > { %s14_s15 = sadd.s32 1, %s851_s15  }
 0x11b   : > { %p11_p4 = scmp.ge.s32.totalorder %s14_s15, 4  }
 0x11d   :  { %13 = sbr.rel (!%p11_p4) target bundleno = 1 (0x1), region = 66 }

// kernel: hybrid_convnet_forward.22
= control target key start
LH: loop header
LB: loop body
LE: loop exit
PB: predicated region body
PF: predicated region fallthrough
CT: control target
= control target key end

     0   :  { %s2497_s15 = smov 0   ;;  %s2978_s0 = inlined_call_operand.vmem [shape: bf16[32,2304], index: 0, kind: input, shape index: {}]   ;;  %s2979_s1 = inlined_call_operand.vmem [shape: bf16[2304,6], index: 1, kind: input, shape index: {}]   ;;  %s2980_s2 = inlined_call_operand.vmem [shape: f32[1,6], index: 2, kind: input, shape index: {}]   ;;  %s2981_s3 = inlined_call_operand.vmem [shape: f32[1,6], index: 3, kind: input, shape index: {}]   ;;  %s2982_s4 = inlined_call_operand.vmem [shape: f32[32,6], index: 4, kind: output, shape index: {}]  }
   0x1 LB: > { %s1911_s16 = sadd.s32 4294967295, %s2470_s15   ;;  %p1915_p0 = scmp.ge.s32.totalorder %s2470_s15, 1  ;;  %s2470_s15 = sphi %s2497_s15, %s14_s15  }
   0x2   : > { %p164_p1 = scmp.lt.s32.totalorder %s2470_s15, 3 }
   0x4   : > { %p165_p2 = pnand %p1915_p0, %p164_p1 }
   0x5   : > { %s1916_s23 = sshll.u32 (!%p165_p2), %s1911_s16, 1 }
   0x6   : > { %168 = sbr.rel (%p165_p2) target bundleno = 381 (0x17d), region = 36  ;;  %p192_p3 = scmp.lt.s32.totalorder (!%p165_p2), %s1916_s23, 3 }
   0xb   : > { %v2293_v0 = vld [vmem:[%s2979_s1 + $0x78] sm:$0xff]   ;;  %v2297_v4 = vld [vmem:[%s2979_s1 + $0x70] sm:$0xff]   ;;  %v2301_v8 = vld [vmem:[%s2979_s1 + $0x68] sm:$0xff]   ;;  %s2984_s23 = smov (!%p192_p3, %s1916_s23), 3  ;;  %vm1852_vm0 = vcmask 48128  }
   0xc   : > { %v2294_v1 = vld [vmem:[%s2979_s1 + $0xf8] sm:$0xff]   ;;  %2086 = vmatprep.subr.bf16.mxu0 %v2293_v0  ;;  %v2298_v5 = vld [vmem:[%s2979_s1 + $0xf0] sm:$0xff]   ;;  %v2302_v9 = vld [vmem:[%s2979_s1 + $0xe8] sm:$0xff]   ;;  %s2284_s21 = smul.u32 72, %s2984_s23  ;;  %s1919_s16 = sshll.u32 %s2984_s23, 3 }
   0xd   : > { %v2295_v2 = vld [vmem:[%s2979_s1 + $0x38] sm:$0xff]   ;;  %2108 = vmatprep.subr.bf16.mxu1 %v2294_v1  ;;  %v2299_v6 = vld [vmem:[%s2979_s1 + $0x30] sm:$0xff]   ;;  %v2303_v10 = vld [vmem:[%s2979_s1 + $0x28] sm:$0xff]   ;;  %s202_s11 = scalar_lea.vmem %s2982_s4, %s1919_s16 }
   0xe   : > { %v2296_v3 = vld [vmem:[%s2979_s1 + $0xb8] sm:$0xff]   ;;  %2087 = vmatpush3.bf16.msra.mxu0 %v2295_v2  ;;  %v2300_v7 = vld [vmem:[%s2979_s1 + $0xb0] sm:$0xff]   ;;  %v2304_v11 = vld [vmem:[%s2979_s1 + $0xa8] sm:$0xff]   ;;  %s2603_s6 = scalar_lea.vmem %s2978_s0, %s2284_s21 }
   0xf   : > { %2109 = vmatpush3.bf16.msra.mxu1 %v2296_v3  ;;  %2088 = vmatprep.subr.bf16.mxu0 %v2297_v4  ;;  %v2305_v12 = vld [vmem:[%s2979_s1 + $0x60] sm:$0xff]   ;;  %v2309_v16 = vld [vmem:[%s2979_s1 + $0x58] sm:$0xff]   ;;  %v2313_v20 = vld [vmem:[%s2979_s1 + $0x50] sm:$0xff]  }
  0x10   : > { %2110 = vmatprep.subr.bf16.mxu1 %v2298_v5  ;;  %v2306_v13 = vld [vmem:[%s2979_s1 + $0xe0] sm:$0xff]   ;;  %v2310_v17 = vld [vmem:[%s2979_s1 + $0xd8] sm:$0xff]   ;;  %v2314_v21 = vld [vmem:[%s2979_s1 + $0xd0] sm:$0xff]  }
  0x11   : > { %v2307_v14 = vld [vmem:[%s2979_s1 + $0x20] sm:$0xff]   ;;  %v2311_v18 = vld [vmem:[%s2979_s1 + $0x18] sm:$0xff]   ;;  %v2315_v22 = vld [vmem:[%s2979_s1 + $0x10] sm:$0xff]  }
  0x12   : > { %2089 = vmatpush3.bf16.msra.mxu0 %v2299_v6  ;;  %v2308_v15 = vld [vmem:[%s2979_s1 + $0xa0] sm:$0xff]   ;;  %v2312_v19 = vld [vmem:[%s2979_s1 + $0x98] sm:$0xff]   ;;  %v2316_v23 = vld [vmem:[%s2979_s1 + $0x90] sm:$0xff]  }
  0x13   : > { %2111 = vmatpush3.bf16.msra.mxu1 %v2300_v7  ;;  %2090 = vmatprep.subr.bf16.mxu0 %v2301_v8  ;;  %v2317_v24 = vld [vmem:[%s2979_s1 + $0x48] sm:$0xff]   ;;  %v2321_v28 = vld [vmem:[%s2979_s1 + $0x40] sm:$0xff]   ;;  %v2331_v36 = vld [vmem:[%s2979_s1 + $0x178] sm:$0xff]  }
  0x14   : > { %2112 = vmatprep.subr.bf16.mxu1 %v2302_v9  ;;  %v2318_v25 = vld [vmem:[%s2979_s1 + $0xc8] sm:$0xff]   ;;  %v2322_v29 = vld [vmem:[%s2979_s1 + $0xc0] sm:$0xff]   ;;  %v2332_v37 = vld [vmem:[%s2979_s1 + $0x138] sm:$0xff]  }
  0x15   : > { %v2319_v26 = vld [vmem:[%s2979_s1 + $0x8] sm:$0xff]   ;;  %v2323_v30 = vld [vmem:[%s2979_s1] sm:$0xff]   ;;  %v2333_v38 = vld [vmem:[%s2979_s1 + $0x1f8] sm:$0xff]  }
  0x16   : > { %2091 = vmatpush3.bf16.msra.mxu0 %v2303_v10  ;;  %v2320_v27 = vld [vmem:[%s2979_s1 + $0x88] sm:$0xff]   ;;  %v2324_v31 = vld [vmem:[%s2979_s1 + $0x80] sm:$0xff]   ;;  %v2334_v39 = vld [vmem:[%s2979_s1 + $0x1b8] sm:$0xff]  }
  0x17   : > { %2113 = vmatpush3.bf16.msra.mxu1 %v2304_v11  ;;  %2092 = vmatprep.subr.bf16.mxu0 %v2305_v12  ;;  %v2325_v32 = vld [vmem:[%s2603_s6] ss:$72 sps:$4 sm:$0xff]   ;;  %v2327_v33 = vld [vmem:[%s2603_s6 + $0x4] ss:$72 sps:$4 sm:$0xff]   ;;  %v2335_v40 = vld [vmem:[%s2979_s1 + $0x170] sm:$0xff]  }
  0x18   : > { %2114 = vmatprep.subr.bf16.mxu1 %v2306_v13  ;;  %v2328_v34 = vld [vmem:[%s2603_s6 + $0x8] ss:$72 sps:$4 sm:$0xff]   ;;  %v2330_v35 = vld [vmem:[%s2603_s6 + $0xc] ss:$72 sps:$4 sm:$0xff]   ;;  %1497 = vmatprep.mubr.bf16.mxu0 %v2327_v33  ;;  %v2343_v48 = vld [vmem:[%s2979_s1 + $0x160] sm:$0xff]  }
  0x19   : > { %1538 = vmatprep.mubr.bf16.mxu1 %v2330_v35  ;;  %v2336_v41 = vld [vmem:[%s2979_s1 + $0x130] sm:$0xff]   ;;  %v2339_v44 = vld [vmem:[%s2979_s1 + $0x168] sm:$0xff]   ;;  %v2344_v49 = vld [vmem:[%s2979_s1 + $0x120] sm:$0xff]  }
  0x1a   : > { %2093 = vmatpush3.bf16.msra.mxu0 %v2307_v14  ;;  %v2337_v42 = vld [vmem:[%s2979_s1 + $0x1f0] sm:$0xff]   ;;  %v2340_v45 = vld [vmem:[%s2979_s1 + $0x128] sm:$0xff]   ;;  %v2345_v50 = vld [vmem:[%s2979_s1 + $0x1e0] sm:$0xff]  }
  0x1b   : > { %2115 = vmatpush3.bf16.msra.mxu1 %v2308_v15  ;;  %2094 = vmatprep.subr.bf16.mxu0 %v2309_v16  ;;  %v2338_v43 = vld [vmem:[%s2979_s1 + $0x1b0] sm:$0xff]   ;;  %v2341_v46 = vld [vmem:[%s2979_s1 + $0x1e8] sm:$0xff]   ;;  %v2346_v51 = vld [vmem:[%s2979_s1 + $0x1a0] sm:$0xff]  }
  0x1c   : > { %2116 = vmatprep.subr.bf16.mxu1 %v2310_v17  ;;  %v2342_v47 = vld [vmem:[%s2979_s1 + $0x1a8] sm:$0xff]   ;;  %v2347_v52 = vld [vmem:[%s2979_s1 + $0x158] sm:$0xff]   ;;  %v2351_v56 = vld [vmem:[%s2979_s1 + $0x150] sm:$0xff]  }
  0x1d   : > { %v2348_v53 = vld [vmem:[%s2979_s1 + $0x118] sm:$0xff]   ;;  %v2352_v57 = vld [vmem:[%s2979_s1 + $0x110] sm:$0xff]   ;;  %v2355_v60 = vld [vmem:[%s2979_s1 + $0x148] sm:$0xff]  }
  0x1e   : > { %2095 = vmatpush3.bf16.msra.mxu0 %v2311_v18  ;;  %v2349_v54 = vld [vmem:[%s2979_s1 + $0x1d8] sm:$0xff]   ;;  %v2353_v58 = vld [vmem:[%s2979_s1 + $0x1d0] sm:$0xff]   ;;  %v2356_v61 = vld [vmem:[%s2979_s1 + $0x108] sm:$0xff]  }
  0x1f   : > { %2117 = vmatpush3.bf16.msra.mxu1 %v2312_v19  ;;  %2096 = vmatprep.subr.bf16.mxu0 %v2313_v20  ;;  %v2350_v55 = vld [vmem:[%s2979_s1 + $0x198] sm:$0xff]   ;;  %v2354_v59 = vld [vmem:[%s2979_s1 + $0x190] sm:$0xff]   ;;  %v2357_v62 = vld [vmem:[%s2979_s1 + $0x1c8] sm:$0xff]  }
  0x20   : > { %2118 = vmatprep.subr.bf16.mxu1 %v2314_v21  ;;  %v2358_v63 = vld [vmem:[%s2979_s1 + $0x188] sm:$0xff]   ;;  %v2359_v0 = vld [vmem:[%s2979_s1 + $0x140] sm:$0xff]   ;;  %v2362_v3 = vld [vmem:[%s2603_s6 + $0x10] ss:$72 sps:$4 sm:$0xff]  }
  0x21   : > { %v2360_v1 = vld [vmem:[%s2979_s1 + $0x100] sm:$0xff]   ;;  %v2364_v4 = vld [vmem:[%s2603_s6 + $0x14] ss:$72 sps:$4 sm:$0xff]   ;;  %v2377_v16 = vld [vmem:[%s2979_s1 + $0x268] sm:$0xff]  }
  0x22   : > { %2097 = vmatpush3.bf16.msra.mxu0 %v2315_v22  ;;  %v2361_v2 = vld [vmem:[%s2979_s1 + $0x1c0] sm:$0xff]   ;;  %v2366_v6 = vld [vmem:[%s2979_s1 + $0x278] sm:$0xff]   ;;  %v2373_v12 = vld [vmem:[%s2979_s1 + $0x270] sm:$0xff]  }
  0x23   : > { %2119 = vmatpush3.bf16.msra.mxu1 %v2316_v23  ;;  %2098 = vmatprep.subr.bf16.mxu0 %v2317_v24  ;;  %v2365_v5 = vld [vmem:[%s2979_s1 + $0x180] sm:$0xff]   ;;  %v2370_v9 = vld [vmem:[%s2979_s1 + $0x238] sm:$0xff]   ;;  %v2374_v13 = vld [vmem:[%s2979_s1 + $0x230] sm:$0xff]  }
  0x24   : > { %2120 = vmatprep.subr.bf16.mxu1 %v2318_v25  ;;  %v2367_v7 = vld [vmem:[%s2603_s6 + $0x18] ss:$72 sps:$4 sm:$0xff]   ;;  %v2369_v8 = vld [vmem:[%s2603_s6 + $0x1c] ss:$72 sps:$4 sm:$0xff]   ;;  %v2375_v14 = vld [vmem:[%s2979_s1 + $0x2f0] sm:$0xff]  }
  0x25   : > { %v2371_v10 = vld [vmem:[%s2979_s1 + $0x2f8] sm:$0xff]   ;;  %v2376_v15 = vld [vmem:[%s2979_s1 + $0x2b0] sm:$0xff]   ;;  %v2378_v17 = vld [vmem:[%s2979_s1 + $0x228] sm:$0xff]  }
  0x26   : > { %2099 = vmatpush3.bf16.msra.mxu0 %v2319_v26  ;;  %v2372_v11 = vld [vmem:[%s2979_s1 + $0x2b8] sm:$0xff]   ;;  %v2379_v18 = vld [vmem:[%s2979_s1 + $0x2e8] sm:$0xff]   ;;  %v2381_v20 = vld [vmem:[%s2979_s1 + $0x260] sm:$0xff]  }
  0x27   : > { %2121 = vmatpush3.bf16.msra.mxu1 %v2320_v27  ;;  %2100 = vmatprep.subr.bf16.mxu0 %v2321_v28  ;;  %v2380_v19 = vld [vmem:[%s2979_s1 + $0x2a8] sm:$0xff]   ;;  %v2382_v21 = vld [vmem:[%s2979_s1 + $0x220] sm:$0xff]   ;;  %v2385_v24 = vld [vmem:[%s2979_s1 + $0x258] sm:$0xff]  }
  0x28   : > { %2122 = vmatprep.subr.bf16.mxu1 %v2322_v29  ;;  %v2383_v22 = vld [vmem:[%s2979_s1 + $0x2e0] sm:$0xff]   ;;  %v2386_v25 = vld [vmem:[%s2979_s1 + $0x218] sm:$0xff]   ;;  %v2389_v28 = vld [vmem:[%s2979_s1 + $0x250] sm:$0xff]  }
  0x29   : > { %v2384_v23 = vld [vmem:[%s2979_s1 + $0x2a0] sm:$0xff]   ;;  %v2387_v26 = vld [vmem:[%s2979_s1 + $0x2d8] sm:$0xff]   ;;  %v2390_v29 = vld [vmem:[%s2979_s1 + $0x210] sm:$0xff]  }
  0x2a   : > { %2101 = vmatpush3.bf16.msra.mxu0 %v2323_v30  ;;  %v2388_v27 = vld [vmem:[%s2979_s1 + $0x298] sm:$0xff]   ;;  %v2391_v30 = vld [vmem:[%s2979_s1 + $0x2d0] sm:$0xff]   ;;  %v2394_v33 = vld [vmem:[%s2979_s1 + $0x208] sm:$0xff]  }
  0x2b   : > { %2123 = vmatpush3.bf16.msra.mxu1 %v2324_v31  ;;  %2130 = vmatprep.subr.bf16.mxu0 %v2331_v36  ;;  %v2392_v31 = vld [vmem:[%s2979_s1 + $0x290] sm:$0xff]   ;;  %v2396_v35 = vld [vmem:[%s2979_s1 + $0x288] sm:$0xff]   ;;  %v2397_v36 = vld [vmem:[%s2979_s1 + $0x240] sm:$0xff]  }
  0x2c   : > { %2152 = vmatprep.subr.bf16.mxu1 %v2333_v38  ;;  %v2399_v38 = vld [vmem:[%s2979_s1 + $0x2c0] sm:$0xff]  }
  0x2d   : > { %1498 = vmatmul.mubr.bf16.vlgmr.msra.gmra.mxu0 %v2325_v32  ;;  %v2393_v32 = vld [vmem:[%s2979_s1 + $0x248] sm:$0xff]  }
  0x2e   : > { %1539 = vmatmul.mubr.bf16.vlgmr.msra.gmra.mxu1 %v2328_v34  ;;  %2131 = vmatpush3.bf16.msra.mxu0 %v2332_v37  ;;  %v2395_v34 = vld [vmem:[%s2979_s1 + $0x2c8] sm:$0xff]   ;;  %v2398_v37 = vld [vmem:[%s2979_s1 + $0x200] sm:$0xff]  }
  0x2f   : > { %2153 = vmatpush3.bf16.msra.mxu1 %v2334_v39  ;;  %2132 = vmatprep.subr.bf16.mxu0 %v2335_v40  ;;  %v2400_v39 = vld [vmem:[%s2603_s6 + $0x20] ss:$72 sps:$4 sm:$0xff]   ;;  %v2402_v40 = vld [vmem:[%s2603_s6 + $0x24] ss:$72 sps:$4 sm:$0xff]  }
  0x30   : > { %2154 = vmatprep.subr.bf16.mxu1 %v2337_v42  ;;  %1579 = vmatprep.mubr.bf16.mxu0 %v2364_v4  ;;  %v2404_v42 = vld [vmem:[%s2979_s1 + $0x378] sm:$0xff]   ;;  %v2431_v4 = vld [vmem:[%s2979_s1 + $0x348] sm:$0xff]  }
  0x31   : > { %1620 = vmatprep.mubr.bf16.mxu1 %v2369_v8  ;;  %v2435_v8 = vld [vmem:[%s2979_s1 + $0x340] sm:$0xff]  }
  0x32   : > { %2133 = vmatpush3.bf16.msra.mxu0 %v2336_v41  ;;  %v2403_v41 = vld [vmem:[%s2979_s1 + $0x280] sm:$0xff]  }
  0x33   : > { %2155 = vmatpush3.bf16.msra.mxu1 %v2338_v43  ;;  %2134 = vmatprep.subr.bf16.mxu0 %v2339_v44  ;;  %v2405_v43 = vld [vmem:[%s2603_s6 + $0x28] ss:$72 sps:$4 sm:$0xff]   ;;  %v2407_v44 = vld [vmem:[%s2603_s6 + $0x2c] ss:$72 sps:$4 sm:$0xff]  }
  0x34   : > { %2156 = vmatprep.subr.bf16.mxu1 %v2341_v46  ;;  %v2409_v46 = vld [vmem:[%s2979_s1 + $0x3f8] sm:$0xff]  }
  0x36   : > { %2135 = vmatpush3.bf16.msra.mxu0 %v2340_v45  ;;  %v2408_v45 = vld [vmem:[%s2979_s1 + $0x338] sm:$0xff]  }
  0x37   : > { %2157 = vmatpush3.bf16.msra.mxu1 %v2342_v47  ;;  %2136 = vmatprep.subr.bf16.mxu0 %v2343_v48  ;;  %v2410_v47 = vld [vmem:[%s2979_s1 + $0x3b8] sm:$0xff]   ;;  %v2411_v48 = vld [vmem:[%s2979_s1 + $0x370] sm:$0xff]  }
  0x38   : > { %2158 = vmatprep.subr.bf16.mxu1 %v2345_v50  ;;  %v2413_v50 = vld [vmem:[%s2979_s1 + $0x3f0] sm:$0xff]  }
  0x3a   : > { %2137 = vmatpush3.bf16.msra.mxu0 %v2344_v49  ;;  %v2412_v49 = vld [vmem:[%s2979_s1 + $0x330] sm:$0xff]  }
  0x3b   : > { %2159 = vmatpush3.bf16.msra.mxu1 %v2346_v51  ;;  %2138 = vmatprep.subr.bf16.mxu0 %v2347_v52  ;;  %v2414_v51 = vld [vmem:[%s2979_s1 + $0x3b0] sm:$0xff]   ;;  %v2415_v52 = vld [vmem:[%s2979_s1 + $0x368] sm:$0xff]  }
  0x3c   : > { %2160 = vmatprep.subr.bf16.mxu1 %v2349_v54  ;;  %v2417_v54 = vld [vmem:[%s2979_s1 + $0x3e8] sm:$0xff]  }
  0x3e   : > { %2139 = vmatpush3.bf16.msra.mxu0 %v2348_v53  ;;  %v2416_v53 = vld [vmem:[%s2979_s1 + $0x328] sm:$0xff]  }
  0x3f   : > { %2161 = vmatpush3.bf16.msra.mxu1 %v2350_v55  ;;  %2140 = vmatprep.subr.bf16.mxu0 %v2351_v56  ;;  %v2418_v55 = vld [vmem:[%s2979_s1 + $0x3a8] sm:$0xff]   ;;  %v2419_v56 = vld [vmem:[%s2979_s1 + $0x360] sm:$0xff]  }
  0x40   : > { %2162 = vmatprep.subr.bf16.mxu1 %v2353_v58  ;;  %v2421_v58 = vld [vmem:[%s2979_s1 + $0x3e0] sm:$0xff]  }
  0x42   : > { %2141 = vmatpush3.bf16.msra.mxu0 %v2352_v57  ;;  %v2420_v57 = vld [vmem:[%s2979_s1 + $0x320] sm:$0xff]  }
  0x43   : > { %2163 = vmatpush3.bf16.msra.mxu1 %v2354_v59  ;;  %2142 = vmatprep.subr.bf16.mxu0 %v2355_v60  ;;  %v2422_v59 = vld [vmem:[%s2979_s1 + $0x3a0] sm:$0xff]   ;;  %v2423_v60 = vld [vmem:[%s2979_s1 + $0x358] sm:$0xff]  }
  0x44   : > { %2164 = vmatprep.subr.bf16.mxu1 %v2357_v62  ;;  %v2425_v62 = vld [vmem:[%s2979_s1 + $0x3d8] sm:$0xff]  }
  0x46   : > { %2143 = vmatpush3.bf16.msra.mxu0 %v2356_v61  ;;  %v2424_v61 = vld [vmem:[%s2979_s1 + $0x318] sm:$0xff]  }
  0x47   : > { %2165 = vmatpush3.bf16.msra.mxu1 %v2358_v63  ;;  %2144 = vmatprep.subr.bf16.mxu0 %v2359_v0  ;;  %v2426_v63 = vld [vmem:[%s2979_s1 + $0x398] sm:$0xff]   ;;  %v2427_v0 = vld [vmem:[%s2979_s1 + $0x350] sm:$0xff]  }
  0x48   : > { %2166 = vmatprep.subr.bf16.mxu1 %v2361_v2  ;;  %v2429_v2 = vld [vmem:[%s2979_s1 + $0x3d0] sm:$0xff]  }
  0x4a   : > { %2145 = vmatpush3.bf16.msra.mxu0 %v2360_v1  ;;  %v2428_v1 = vld [vmem:[%s2979_s1 + $0x310] sm:$0xff]  }
  0x4b   : > { %2167 = vmatpush3.bf16.msra.mxu1 %v2365_v5  ;;  %2174 = vmatprep.subr.bf16.mxu0 %v2366_v6  ;;  %v2432_v5 = vld [vmem:[%s2979_s1 + $0x308] sm:$0xff]  }
  0x4c   : > { %2196 = vmatprep.subr.bf16.mxu1 %v2371_v10  ;;  %v2433_v6 = vld [vmem:[%s2979_s1 + $0x3c8] sm:$0xff]   ;;  %v2437_v10 = vld [vmem:[%s2979_s1 + $0x3c0] sm:$0xff]  }
  0x4d   : > { %1580 = vmatmul.mubr.bf16.vlgmr.msra.gmra.mxu0 %v2362_v3  ;;  %v2430_v3 = vld [vmem:[%s2979_s1 + $0x390] sm:$0xff]  }
  0x4e   : > { %2175 = vmatpush3.bf16.msra.mxu0 %v2370_v9  ;;  %1621 = vmatmul.mubr.bf16.vlgmr.msra.gmra.mxu1 %v2367_v7  ;;  %v2434_v7 = vld [vmem:[%s2979_s1 + $0x388] sm:$0xff]   ;;  %v2436_v9 = vld [vmem:[%s2979_s1 + $0x300] sm:$0xff]  }
  0x4f   : > { %2197 = vmatpush3.bf16.msra.mxu1 %v2372_v11  ;;  %2176 = vmatprep.subr.bf16.mxu0 %v2373_v12  ;;  %v2438_v11 = vld [vmem:[%s2603_s6 + $0x30] ss:$72 sps:$4 sm:$0xff]   ;;  %v2440_v12 = vld [vmem:[%s2603_s6 + $0x34] ss:$72 sps:$4 sm:$0xff]  }
  0x50   : > { %2198 = vmatprep.subr.bf16.mxu1 %v2375_v14  ;;  %1661 = vmatprep.mubr.bf16.mxu0 %v2402_v40  ;;  %v2442_v14 = vld [vmem:[%s2979_s1 + $0x478] sm:$0xff]  }
  0x51   : > { %1702 = vmatprep.mubr.bf16.mxu1 %v2407_v44 }
  0x52   : > { %2177 = vmatpush3.bf16.msra.mxu0 %v2374_v13  ;;  %v2441_v13 = vld [vmem:[%s2979_s1 + $0x380] sm:$0xff]  }
  0x53   : > { %2199 = vmatpush3.bf16.msra.mxu1 %v2376_v15  ;;  %2178 = vmatprep.subr.bf16.mxu0 %v2377_v16  ;;  %v2443_v15 = vld [vmem:[%s2603_s6 + $0x38] ss:$72 sps:$4 sm:$0xff]   ;;  %v2445_v16 = vld [vmem:[%s2603_s6 + $0x3c] ss:$72 sps:$4 sm:$0xff]  }
  0x54   : > { %2200 = vmatprep.subr.bf16.mxu1 %v2379_v18  ;;  %v2447_v18 = vld [vmem:[%s2979_s1 + $0x470] sm:$0xff]  }
  0x56   : > { %2179 = vmatpush3.bf16.msra.mxu0 %v2378_v17  ;;  %v2446_v17 = vld [vmem:[%s2979_s1 + $0x438] sm:$0xff]  }
  0x57   : > { %2201 = vmatpush3.bf16.msra.mxu1 %v2380_v19  ;;  %2180 = vmatprep.subr.bf16.mxu0 %v2381_v20  ;;  %v2448_v19 = vld [vmem:[%s2979_s1 + $0x430] sm:$0xff]   ;;  %v2449_v20 = vld [vmem:[%s2979_s1 + $0x468] sm:$0xff]  }
  0x58   : > { %2202 = vmatprep.subr.bf16.mxu1 %v2383_v22  ;;  %v2451_v22 = vld [vmem:[%s2979_s1 + $0x460] sm:$0xff]  }
  0x5a   : > { %2181 = vmatpush3.bf16.msra.mxu0 %v2382_v21  ;;  %v2450_v21 = vld [vmem:[%s2979_s1 + $0x428] sm:$0xff]  }
  0x5b   : > { %2203 = vmatpush3.bf16.msra.mxu1 %v2384_v23  ;;  %2182 = vmatprep.subr.bf16.mxu0 %v2385_v24  ;;  %v2452_v23 = vld [vmem:[%s2979_s1 + $0x420] sm:$0xff]   ;;  %v2453_v24 = vld [vmem:[%s2979_s1 + $0x458] sm:$0xff]  }
  0x5c   : > { %2204 = vmatprep.subr.bf16.mxu1 %v2387_v26  ;;  %v2455_v26 = vld [vmem:[%s2979_s1 + $0x450] sm:$0xff]  }
  0x5e   : > { %2183 = vmatpush3.bf16.msra.mxu0 %v2386_v25  ;;  %v2454_v25 = vld [vmem:[%s2979_s1 + $0x418] sm:$0xff]  }
  0x5f   : > { %2205 = vmatpush3.bf16.msra.mxu1 %v2388_v27  ;;  %2184 = vmatprep.subr.bf16.mxu0 %v2389_v28  ;;  %v2463_v27 = vld [vmem:[%s2603_s6 + $0x44] ss:$72 sps:$4 sm:$0xff]   ;;  %v2456_v28 = vld [vmem:[%s2979_s1 + $0x410] sm:$0xff]  }
  0x60   : > { %2206 = vmatprep.subr.bf16.mxu1 %v2391_v30  ;;  %v2458_v30 = vld [vmem:[%s2979_s1 + $0x408] sm:$0xff]  }
  0x62   : > { %2185 = vmatpush3.bf16.msra.mxu0 %v2390_v29  ;;  %v2457_v29 = vld [vmem:[%s2979_s1 + $0x448] sm:$0xff]  }
  0x63   : > { %2207 = vmatpush3.bf16.msra.mxu1 %v2392_v31  ;;  %2186 = vmatprep.subr.bf16.mxu0 %v2393_v32  ;;  %v2459_v31 = vld [vmem:[%s2979_s1 + $0x440] sm:$0xff]  }
  0x64   : > { %2208 = vmatprep.subr.bf16.mxu1 %v2395_v34  ;;  %v2460_v32 = vld [vmem:[%s2979_s1 + $0x400] sm:$0xff]  }
  0x66   : > { %2187 = vmatpush3.bf16.msra.mxu0 %v2394_v33  ;;  %v2461_v33 = vld [vmem:[%s2603_s6 + $0x40] ss:$72 sps:$4 sm:$0xff]  }
  0x67   : > { %2209 = vmatpush3.bf16.msra.mxu1 %v2396_v35  ;;  %2188 = vmatprep.subr.bf16.mxu0 %v2397_v36 }
  0x68   : > { %2210 = vmatprep.subr.bf16.mxu1 %v2399_v38 }
  0x6a   : > { %2189 = vmatpush3.bf16.msra.mxu0 %v2398_v37 }
  0x6b   : > { %2211 = vmatpush3.bf16.msra.mxu1 %v2403_v41  ;;  %2218 = vmatprep.subr.bf16.mxu0 %v2404_v42 }
  0x6c   : > { %2240 = vmatprep.subr.bf16.mxu1 %v2409_v46 }
  0x6d   : > { %1662 = vmatmul.mubr.bf16.vlgmr.msra.gmra.mxu0 %v2400_v39 }
  0x6e   : > { %2219 = vmatpush3.bf16.msra.mxu0 %v2408_v45  ;;  %1703 = vmatmul.mubr.bf16.vlgmr.msra.gmra.mxu1 %v2405_v43 }
  0x6f   : > { %2241 = vmatpush3.bf16.msra.mxu1 %v2410_v47  ;;  %2220 = vmatprep.subr.bf16.mxu0 %v2411_v48 }
  0x70   : > { %2242 = vmatprep.subr.bf16.mxu1 %v2413_v50  ;;  %1743 = vmatprep.mubr.bf16.mxu0 %v2440_v12 }
  0x71   : > { %1784 = vmatprep.mubr.bf16.mxu1 %v2445_v16 }
  0x72   : > { %2221 = vmatpush3.bf16.msra.mxu0 %v2412_v49 }
  0x73   : > { %2243 = vmatpush3.bf16.msra.mxu1 %v2414_v51  ;;  %2222 = vmatprep.subr.bf16.mxu0 %v2415_v52 }
  0x74   : > { %2244 = vmatprep.subr.bf16.mxu1 %v2417_v54 }
  0x76   : > { %2223 = vmatpush3.bf16.msra.mxu0 %v2416_v53 }
  0x77   : > { %2245 = vmatpush3.bf16.msra.mxu1 %v2418_v55  ;;  %2224 = vmatprep.subr.bf16.mxu0 %v2419_v56 }
  0x78   : > { %2246 = vmatprep.subr.bf16.mxu1 %v2421_v58 }
  0x7a   : > { %2225 = vmatpush3.bf16.msra.mxu0 %v2420_v57 }
  0x7b   : > { %2247 = vmatpush3.bf16.msra.mxu1 %v2422_v59  ;;  %2226 = vmatprep.subr.bf16.mxu0 %v2423_v60 }
  0x7c   : > { %2248 = vmatprep.subr.bf16.mxu1 %v2425_v62 }
  0x7e   : > { %2227 = vmatpush3.bf16.msra.mxu0 %v2424_v61 }
  0x7f   : > { %2249 = vmatpush3.bf16.msra.mxu1 %v2426_v63  ;;  %2228 = vmatprep.subr.bf16.mxu0 %v2427_v0 }
  0x80   : > { %2250 = vmatprep.subr.bf16.mxu1 %v2429_v2 }
  0x82   : > { %2229 = vmatpush3.bf16.msra.mxu0 %v2428_v1 }
  0x83   : > { %2251 = vmatpush3.bf16.msra.mxu1 %v2430_v3  ;;  %2230 = vmatprep.subr.bf16.mxu0 %v2431_v4 }
  0x84   : > { %2252 = vmatprep.subr.bf16.mxu1 %v2433_v6 }
  0x86   : > { %2231 = vmatpush3.bf16.msra.mxu0 %v2432_v5 }
  0x87   : > { %2253 = vmatpush3.bf16.msra.mxu1 %v2434_v7  ;;  %2232 = vmatprep.subr.bf16.mxu0 %v2435_v8 }
  0x88   : > { %2254 = vmatprep.subr.bf16.mxu1 %v2437_v10 }
  0x8a   : > { %2233 = vmatpush3.bf16.msra.mxu0 %v2436_v9 }
  0x8b   : > { %2255 = vmatpush3.bf16.msra.mxu1 %v2441_v13  ;;  %2262 = vmatprep.subr.bf16.mxu0 %v2442_v14 }
  0x8d   : > { %1744 = vmatmul.mubr.bf16.vlgmr.msra.gmra.mxu0 %v2438_v11 }
  0x8e   : > { %2263 = vmatpush3.bf16.msra.mxu0 %v2446_v17  ;;  %1785 = vmatmul.mubr.bf16.vlgmr.msra.gmra.mxu1 %v2443_v15 }
  0x8f   : > { %2264 = vmatprep.subr.bf16.mxu0 %v2447_v18  ;;  %1825 = vmatprep.mubr.bf16.mxu0 %v2463_v27 }
  0x92   : > { %2265 = vmatpush3.bf16.msra.mxu0 %v2448_v19 }
  0x93   : > { %2266 = vmatprep.subr.bf16.mxu0 %v2449_v20 }
  0x96   : > { %2267 = vmatpush3.bf16.msra.mxu0 %v2450_v21 }
  0x97   : > { %2268 = vmatprep.subr.bf16.mxu0 %v2451_v22 }
  0x9a   : > { %2269 = vmatpush3.bf16.msra.mxu0 %v2452_v23 }
  0x9b   : > { %2270 = vmatprep.subr.bf16.mxu0 %v2453_v24 }
  0x9e   : > { %2271 = vmatpush3.bf16.msra.mxu0 %v2454_v25 }
  0x9f   : > { %2272 = vmatprep.subr.bf16.mxu0 %v2455_v26 }
  0xa2   : > { %2273 = vmatpush3.bf16.msra.mxu0 %v2456_v28 }
  0xa3   : > { %2274 = vmatprep.subr.bf16.mxu0 %v2457_v29 }
  0xa6   : > { %2275 = vmatpush3.bf16.msra.mxu0 %v2458_v30 }
  0xa7   : > { %2276 = vmatprep.subr.bf16.mxu0 %v2459_v31 }
  0xaa   : > { %2277 = vmatpush3.bf16.msra.mxu0 %v2460_v32 }
  0xad   : > { %1826 = vmatmul.mubr.bf16.vlgmr.msra.gmra.mxu0 %v2461_v33 }
  0xed   : > { %v2102_v34 = vpop.f32.mrf.mxu0 }
  0xee   : > { %v2124_v35 = vpop.f32.mrf.mxu1 }
  0xef   : > { %v2103_v36 = vpop.f32.mrf.mxu0 }
  0xf0   : > { %v2125_v37 = vpop.f32.mrf.mxu1  ;;  %v2104_v55 = vadd.f32 %v2103_v36, %v2102_v34  ;;  %v2082_v34 = vld [vmem:[%s2980_s2] ss:$0 sm:$0xff] }
  0xf1   : > { %v2105_v38 = vpop.f32.mrf.mxu0  ;;  %v2126_v56 = vadd.f32 %v2125_v37, %v2124_v35  ;;  %v2083_v37 = vld [vmem:[%s2981_s3] ss:$0 sm:$0xff] }
  0xf2   : > { %v2127_v39 = vpop.f32.mrf.mxu1 }
  0xf3   : > { %v2106_v40 = vpop.f32.mrf.mxu0  ;;  %v1541_v61 = vadd.f32 %v2126_v56, %v2104_v55 }
  0xf4   : > { %v2128_v42 = vpop.f32.mrf.mxu1  ;;  %v2107_v62 = vadd.f32 %v2106_v40, %v2105_v38 }
  0xf5   : > { %v2129_v63 = vadd.f32 %v2128_v42, %v2127_v39 }
  0xf7   : > { %v1544_v6 = vadd.f32 %v2129_v63, %v2107_v62 }
 0x10d   : > { %v2146_v41 = vpop.f32.mrf.mxu0 }
 0x10e   : > { %v2168_v44 = vpop.f32.mrf.mxu1 }
 0x10f   : > { %v2147_v43 = vpop.f32.mrf.mxu0 }
 0x110   : > { %v2169_v46 = vpop.f32.mrf.mxu1  ;;  %v2148_v59 = vadd.f32 %v2147_v43, %v2146_v41 }
 0x111   : > { %v2149_v45 = vpop.f32.mrf.mxu0  ;;  %v2170_v2 = vadd.f32 %v2169_v46, %v2168_v44 }
 0x112   : > { %v2171_v48 = vpop.f32.mrf.mxu1  ;;  %v1582_v1 = vadd.f32 %v2148_v59, %v1541_v61 }
 0x113   : > { %v2150_v47 = vpop.f32.mrf.mxu0 }
 0x114   : > { %v2172_v50 = vpop.f32.mrf.mxu1  ;;  %v2151_v3 = vadd.f32 %v2150_v47, %v2149_v45  ;;  %v1623_v8 = vadd.f32 %v2170_v2, %v1582_v1 }
 0x115   : > { %v2173_v10 = vadd.f32 %v2172_v50, %v2171_v48 }
 0x116   : > { %v1585_v9 = vadd.f32 %v2151_v3, %v1544_v6 }
 0x118   : > { %v1626_v16 = vadd.f32 %v2173_v10, %v1585_v9 }
 0x12d   : > { %v2190_v49 = vpop.f32.mrf.mxu0 }
 0x12e   : > { %v2212_v52 = vpop.f32.mrf.mxu1 }
 0x12f   : > { %v2191_v51 = vpop.f32.mrf.mxu0 }
 0x130   : > { %v2213_v54 = vpop.f32.mrf.mxu1  ;;  %v2192_v7 = vadd.f32 %v2191_v51, %v2190_v49 }
 0x131   : > { %v2193_v53 = vpop.f32.mrf.mxu0  ;;  %v2214_v14 = vadd.f32 %v2213_v54, %v2212_v52 }
 0x132   : > { %v2215_v58 = vpop.f32.mrf.mxu1  ;;  %v1664_v13 = vadd.f32 %v2192_v7, %v1623_v8 }
 0x133   : > { %v2194_v57 = vpop.f32.mrf.mxu0 }
 0x134   : > { %v2216_v0 = vpop.f32.mrf.mxu1  ;;  %v2195_v15 = vadd.f32 %v2194_v57, %v2193_v53  ;;  %v1705_v20 = vadd.f32 %v2214_v14, %v1664_v13 }
 0x135   : > { %v2217_v22 = vadd.f32 %v2216_v0, %v2215_v58 }
 0x136   : > { %v1667_v21 = vadd.f32 %v2195_v15, %v1626_v16 }
 0x138   : > { %v1708_v28 = vadd.f32 %v2217_v22, %v1667_v21 }
 0x14d   : > { %v2234_v60 = vpop.f32.mrf.mxu0 }
 0x14e   : > { %v2256_v5 = vpop.f32.mrf.mxu1 }
 0x14f   : > { %v2235_v4 = vpop.f32.mrf.mxu0 }
 0x150   : > { %v2257_v12 = vpop.f32.mrf.mxu1  ;;  %v2236_v17 = vadd.f32 %v2235_v4, %v2234_v60 }
 0x151   : > { %v2237_v11 = vpop.f32.mrf.mxu0  ;;  %v2258_v24 = vadd.f32 %v2257_v12, %v2256_v5 }
 0x152   : > { %v2259_v19 = vpop.f32.mrf.mxu1  ;;  %v1746_v23 = vadd.f32 %v2236_v17, %v1705_v20 }
 0x153   : > { %v2238_v18 = vpop.f32.mrf.mxu0 }
 0x154   : > { %v2239_v25 = vadd.f32 %v2238_v18, %v2237_v11  ;;  %v2260_v26 = vpop.f32.mrf.mxu1  ;;  %v1787_v30 = vadd.f32 %v2258_v24, %v1746_v23 }
 0x155   : > { %v2261_v32 = vadd.f32 %v2260_v26, %v2259_v19 }
 0x156   : > { %v1749_v31 = vadd.f32 %v2239_v25, %v1708_v28 }
 0x158   : > { %v1790_v39 = vadd.f32 %v2261_v32, %v1749_v31 }
 0x16d   : > { %v2278_v27 = vpop.f32.mrf.mxu0 }
 0x16f   : > { %v2279_v29 = vpop.f32.mrf.mxu0 }
 0x170   : > { %v2280_v33 = vadd.f32 %v2279_v29, %v2278_v27 }
 0x171   : > { %v2281_v35 = vpop.f32.mrf.mxu0 }
 0x172   : > { %v1828_v36 = vadd.f32 %v2280_v33, %v1787_v30 }
 0x173   : > { %v2282_v38 = vpop.f32.mrf.mxu0 }
 0x174   : > { %v1841_v40 = vmul.f32 %v2082_v34, %v1828_v36  ;;  %v2283_v41 = vadd.f32 %v2282_v38, %v2281_v35 }
 0x176   : > { %v1850_v42 = vadd.f32 %v2083_v37, %v1841_v40  ;;  %v1831_v43 = vadd.f32 %v2283_v41, %v1790_v39 }
 0x178   : > { %1853 = vst.msk [vmem:[%s202_s11] sm:$0xff] %vm1852_vm0, %v1850_v42  ;;  %v1842_v44 = vmul.f32 %v2082_v34, %v1831_v43 }
 0x17a   : > { %v1851_v45 = vadd.f32 %v2083_v37, %v1842_v44 }
 0x17c   : > { %1854 = vst.msk [vmem:[%s202_s11 + $0x8] sm:$0xff] %vm1852_vm0, %v1851_v45 }
 0x17d PF: > { %s14_s15 = sadd.s32 1, %s2470_s15  }
 0x17e   : > { %p11_p4 = scmp.ge.s32.totalorder %s14_s15, 4  }
 0x180   :  { %13 = sbr.rel (!%p11_p4) target bundleno = 1 (0x1), region = 66 }

// kernel: hybrid_convnet_forward.23
= control target key start
LH: loop header
LB: loop body
LE: loop exit
PB: predicated region body
PF: predicated region fallthrough
CT: control target
= control target key end

     0   :  { %s1351_s15 = smov 0   ;;  %s1676_s0 = inlined_call_operand.vmem [shape: bf16[32,768], index: 0, kind: input, shape index: {}]   ;;  %s1677_s1 = inlined_call_operand.vmem [shape: bf16[768,256], index: 1, kind: input, shape index: {}]   ;;  %s1678_s2 = inlined_call_operand.vmem [shape: f32[1,256], index: 2, kind: input, shape index: {}]   ;;  %s1679_s3 = inlined_call_operand.vmem [shape: f32[1,256], index: 3, kind: input, shape index: {}]   ;;  %s1680_s4 = inlined_call_operand.vmem [shape: f32[32,256], index: 4, kind: output, shape index: {}]  }
   0x1 LB: > { %s1041_s16 = sadd.s32 4294967295, %s1324_s15   ;;  %p1045_p0 = scmp.ge.s32.totalorder %s1324_s15, 1  ;;  %s1324_s15 = sphi %s1351_s15, %s14_s15  }
   0x2   : > { %p164_p1 = scmp.lt.s32.totalorder %s1324_s15, 3 }
   0x4   : > { %p165_p2 = pnand %p1045_p0, %p164_p1 }
   0x5   : > { %s1046_s29 = sshll.u32 (!%p165_p2), %s1041_s16, 1 }
   0x6   : > { %168 = sbr.rel (%p165_p2) target bundleno = 346 (0x15a), region = 36  ;;  %p193_p3 = scmp.lt.s32.totalorder (!%p165_p2), %s1046_s29, 3 }
   0xb   : > { %v1165_v0 = vld [vmem:[%s1677_s1 + $0x74] ss:$8 sps:$4 sm:$0xff]   ;;  %v1169_v2 = vld [vmem:[%s1677_s1 + $0x70] ss:$8 sps:$4 sm:$0xff]   ;;  %v1171_v4 = vld [vmem:[%s1677_s1 + $0x64] ss:$8 sps:$4 sm:$0xff]  }
   0xc   : > { %v1167_v1 = vld [vmem:[%s1677_s1 + $0x174] ss:$8 sps:$4 sm:$0xff]   ;;  %818 = vmatprep.subr.bf16.mxu0 %v1165_v0  ;;  %v1170_v3 = vld [vmem:[%s1677_s1 + $0x170] ss:$8 sps:$4 sm:$0xff]   ;;  %v1173_v5 = vld [vmem:[%s1677_s1 + $0x164] ss:$8 sps:$4 sm:$0xff]  }
   0xd   : > { %861 = vmatprep.subr.bf16.mxu1 %v1167_v1  ;;  %819 = vmatpush1.bf16.msra.mxu0 %v1169_v2  ;;  %v1175_v6 = vld [vmem:[%s1677_s1 + $0x60] ss:$8 sps:$4 sm:$0xff]   ;;  %v1177_v8 = vld [vmem:[%s1677_s1 + $0x54] ss:$8 sps:$4 sm:$0xff]   ;;  %v1181_v10 = vld [vmem:[%s1677_s1 + $0x50] ss:$8 sps:$4 sm:$0xff]  }
   0xe   : > { %862 = vmatpush1.bf16.msra.mxu1 %v1170_v3  ;;  %820 = vmatprep.subr.bf16.mxu0 %v1171_v4  ;;  %v1176_v7 = vld [vmem:[%s1677_s1 + $0x160] ss:$8 sps:$4 sm:$0xff]   ;;  %v1179_v9 = vld [vmem:[%s1677_s1 + $0x154] ss:$8 sps:$4 sm:$0xff]   ;;  %v1182_v11 = vld [vmem:[%s1677_s1 + $0x150] ss:$8 sps:$4 sm:$0xff]  }
   0xf   : > { %863 = vmatprep.subr.bf16.mxu1 %v1173_v5  ;;  %v1183_v12 = vld [vmem:[%s1677_s1 + $0x44] ss:$8 sps:$4 sm:$0xff]   ;;  %v1187_v14 = vld [vmem:[%s1677_s1 + $0x40] ss:$8 sps:$4 sm:$0xff]   ;;  %v1189_v16 = vld [vmem:[%s1677_s1 + $0x34] ss:$8 sps:$4 sm:$0xff]  }
  0x10   : > { %v1185_v13 = vld [vmem:[%s1677_s1 + $0x144] ss:$8 sps:$4 sm:$0xff]   ;;  %v1188_v15 = vld [vmem:[%s1677_s1 + $0x140] ss:$8 sps:$4 sm:$0xff]   ;;  %v1191_v17 = vld [vmem:[%s1677_s1 + $0x134] ss:$8 sps:$4 sm:$0xff]  }
  0x11   : > { %821 = vmatpush1.bf16.msra.mxu0 %v1175_v6  ;;  %v1193_v18 = vld [vmem:[%s1677_s1 + $0x30] ss:$8 sps:$4 sm:$0xff]   ;;  %v1195_v20 = vld [vmem:[%s1677_s1 + $0x24] ss:$8 sps:$4 sm:$0xff]   ;;  %v1199_v22 = vld [vmem:[%s1677_s1 + $0x20] ss:$8 sps:$4 sm:$0xff]  }
  0x12   : > { %864 = vmatpush1.bf16.msra.mxu1 %v1176_v7  ;;  %822 = vmatprep.subr.bf16.mxu0 %v1177_v8  ;;  %v1194_v19 = vld [vmem:[%s1677_s1 + $0x130] ss:$8 sps:$4 sm:$0xff]   ;;  %v1197_v21 = vld [vmem:[%s1677_s1 + $0x124] ss:$8 sps:$4 sm:$0xff]   ;;  %v1200_v23 = vld [vmem:[%s1677_s1 + $0x120] ss:$8 sps:$4 sm:$0xff]  }
  0x13   : > { %865 = vmatprep.subr.bf16.mxu1 %v1179_v9  ;;  %v1201_v24 = vld [vmem:[%s1677_s1 + $0x14] ss:$8 sps:$4 sm:$0xff]   ;;  %v1205_v26 = vld [vmem:[%s1677_s1 + $0x10] ss:$8 sps:$4 sm:$0xff]   ;;  %v1207_v28 = vld [vmem:[%s1677_s1 + $0x4] ss:$8 sps:$4 sm:$0xff]  }
  0x14   : > { %v1203_v25 = vld [vmem:[%s1677_s1 + $0x114] ss:$8 sps:$4 sm:$0xff]   ;;  %v1206_v27 = vld [vmem:[%s1677_s1 + $0x110] ss:$8 sps:$4 sm:$0xff]   ;;  %v1209_v29 = vld [vmem:[%s1677_s1 + $0x104] ss:$8 sps:$4 sm:$0xff]  }
  0x15   : > { %823 = vmatpush1.bf16.msra.mxu0 %v1181_v10  ;;  %v1211_v30 = vld [vmem:[%s1677_s1] ss:$8 sps:$4 sm:$0xff]   ;;  %v1213_v32 = vld [vmem:[%s1677_s1 + $0xf4] ss:$8 sps:$4 sm:$0xff]   ;;  %v1217_v34 = vld [vmem:[%s1677_s1 + $0xf0] ss:$8 sps:$4 sm:$0xff]  }
  0x16   : > { %866 = vmatpush1.bf16.msra.mxu1 %v1182_v11  ;;  %824 = vmatprep.subr.bf16.mxu0 %v1183_v12  ;;  %v1212_v31 = vld [vmem:[%s1677_s1 + $0x100] ss:$8 sps:$4 sm:$0xff]   ;;  %v1215_v33 = vld [vmem:[%s1677_s1 + $0x1f4] ss:$8 sps:$4 sm:$0xff]   ;;  %v1218_v35 = vld [vmem:[%s1677_s1 + $0x1f0] ss:$8 sps:$4 sm:$0xff]  }
  0x17   : > { %867 = vmatprep.subr.bf16.mxu1 %v1185_v13  ;;  %v1219_v36 = vld [vmem:[%s1677_s1 + $0xe4] ss:$8 sps:$4 sm:$0xff]   ;;  %s1682_s29 = smov (!%p193_p3, %s1046_s29), 3  ;;  %v1223_v38 = vld [vmem:[%s1677_s1 + $0xe0] ss:$8 sps:$4 sm:$0xff]  }
  0x18   : > { %v1221_v37 = vld [vmem:[%s1677_s1 + $0x1e4] ss:$8 sps:$4 sm:$0xff]   ;;  %v1224_v39 = vld [vmem:[%s1677_s1 + $0x1e0] ss:$8 sps:$4 sm:$0xff]   ;;  %v1225_v40 = vld [vmem:[%s1677_s1 + $0xd4] ss:$8 sps:$4 sm:$0xff]  }
  0x19   : > { %825 = vmatpush1.bf16.msra.mxu0 %v1187_v14  ;;  %s1156_s27 = smul.u32 24, %s1682_s29  ;;  %v1227_v41 = vld [vmem:[%s1677_s1 + $0x1d4] ss:$8 sps:$4 sm:$0xff]   ;;  %v1229_v42 = vld [vmem:[%s1677_s1 + $0xd0] ss:$8 sps:$4 sm:$0xff]   ;;  %s1155_s28 = sshll.u32 %s1682_s29, 4 }
  0x1a   : > { %868 = vmatpush1.bf16.msra.mxu1 %v1188_v15  ;;  %826 = vmatprep.subr.bf16.mxu0 %v1189_v16  ;;  %v1230_v43 = vld [vmem:[%s1677_s1 + $0x1d0] ss:$8 sps:$4 sm:$0xff]   ;;  %v1231_v44 = vld [vmem:[%s1677_s1 + $0xc4] ss:$8 sps:$4 sm:$0xff]   ;;  %v1235_v46 = vld [vmem:[%s1677_s1 + $0xc0] ss:$8 sps:$4 sm:$0xff]   ;;  %s204_s6 = scalar_lea.vmem %s1680_s4, %s1155_s28 }
  0x1b   : > { %869 = vmatprep.subr.bf16.mxu1 %v1191_v17  ;;  %s1502_s12 = scalar_lea.vmem %s1676_s0, %s1156_s27  ;;  %v1233_v45 = vld [vmem:[%s1677_s1 + $0x1c4] ss:$8 sps:$4 sm:$0xff]   ;;  %v1236_v47 = vld [vmem:[%s1677_s1 + $0x1c0] ss:$8 sps:$4 sm:$0xff]   ;;  %v1237_v48 = vld [vmem:[%s1677_s1 + $0xb4] ss:$8 sps:$4 sm:$0xff]  }
  0x1c   : > { %v1263_v49 = vld [vmem:[%s1502_s12 + $0x4] ss:$24 sps:$4 sm:$0xff]   ;;  %v1241_v52 = vld [vmem:[%s1677_s1 + $0xb0] ss:$8 sps:$4 sm:$0xff]   ;;  %v1247_v56 = vld [vmem:[%s1677_s1 + $0xa0] ss:$8 sps:$4 sm:$0xff]  }
  0x1d   : > { %827 = vmatpush1.bf16.msra.mxu0 %v1193_v18  ;;  %v1239_v50 = vld [vmem:[%s1677_s1 + $0x1b4] ss:$8 sps:$4 sm:$0xff]   ;;  %v1266_v51 = vld [vmem:[%s1502_s12 + $0xc] ss:$24 sps:$4 sm:$0xff]   ;;  %850 = vmatprep.mubr.bf16.mxu0 %v1263_v49  ;;  %v1242_v53 = vld [vmem:[%s1677_s1 + $0x1b0] ss:$8 sps:$4 sm:$0xff]  }
  0x1e   : > { %870 = vmatpush1.bf16.msra.mxu1 %v1194_v19  ;;  %828 = vmatprep.subr.bf16.mxu0 %v1195_v20  ;;  %v1243_v54 = vld [vmem:[%s1677_s1 + $0xa4] ss:$8 sps:$4 sm:$0xff]   ;;  %v1248_v57 = vld [vmem:[%s1677_s1 + $0x1a0] ss:$8 sps:$4 sm:$0xff]   ;;  %v1249_v58 = vld [vmem:[%s1677_s1 + $0x94] ss:$8 sps:$4 sm:$0xff]  }
  0x1f   : > { %871 = vmatprep.subr.bf16.mxu1 %v1197_v21  ;;  %893 = vmatprep.mubr.bf16.mxu1 %v1266_v51  ;;  %v1245_v55 = vld [vmem:[%s1677_s1 + $0x1a4] ss:$8 sps:$4 sm:$0xff]   ;;  %v1251_v59 = vld [vmem:[%s1677_s1 + $0x194] ss:$8 sps:$4 sm:$0xff]   ;;  %v1253_v60 = vld [vmem:[%s1677_s1 + $0x90] ss:$8 sps:$4 sm:$0xff]  }
  0x20   : > { %v1254_v61 = vld [vmem:[%s1677_s1 + $0x190] ss:$8 sps:$4 sm:$0xff]   ;;  %v1255_v62 = vld [vmem:[%s1677_s1 + $0x84] ss:$8 sps:$4 sm:$0xff]   ;;  %v1259_v0 = vld [vmem:[%s1677_s1 + $0x80] ss:$8 sps:$4 sm:$0xff]  }
  0x21   : > { %829 = vmatpush1.bf16.msra.mxu0 %v1199_v22  ;;  %v1257_v63 = vld [vmem:[%s1677_s1 + $0x184] ss:$8 sps:$4 sm:$0xff]   ;;  %v1260_v1 = vld [vmem:[%s1677_s1 + $0x180] ss:$8 sps:$4 sm:$0xff]   ;;  %v1269_v2 = vld [vmem:[%s1677_s1 + $0x274] ss:$8 sps:$4 sm:$0xff]  }
  0x22   : > { %872 = vmatpush1.bf16.msra.mxu1 %v1200_v23  ;;  %830 = vmatprep.subr.bf16.mxu0 %v1201_v24  ;;  %v1261_v3 = vld [vmem:[%s1502_s12] ss:$24 sps:$4 sm:$0xff]   ;;  %v1272_v6 = vld [vmem:[%s1677_s1 + $0x264] ss:$8 sps:$4 sm:$0xff]   ;;  %v1275_v9 = vld [vmem:[%s1677_s1 + $0x254] ss:$8 sps:$4 sm:$0xff]  }
  0x23   : > { %873 = vmatprep.subr.bf16.mxu1 %v1203_v25  ;;  %v1264_v4 = vld [vmem:[%s1502_s12 + $0x8] ss:$24 sps:$4 sm:$0xff]   ;;  %v1267_v5 = vld [vmem:[%s1677_s1 + $0x270] ss:$8 sps:$4 sm:$0xff]   ;;  %v1317_v7 = vld [vmem:[%s1502_s12 + $0x14] ss:$24 sps:$4 sm:$0xff]  }
  0x24   : > { %v1270_v8 = vld [vmem:[%s1677_s1 + $0x260] ss:$8 sps:$4 sm:$0xff]   ;;  %v1273_v10 = vld [vmem:[%s1677_s1 + $0x250] ss:$8 sps:$4 sm:$0xff]   ;;  %v1278_v11 = vld [vmem:[%s1677_s1 + $0x244] ss:$8 sps:$4 sm:$0xff]  }
  0x25   : > { %831 = vmatpush1.bf16.msra.mxu0 %v1205_v26  ;;  %v1276_v12 = vld [vmem:[%s1677_s1 + $0x240] ss:$8 sps:$4 sm:$0xff]   ;;  %v1281_v13 = vld [vmem:[%s1677_s1 + $0x234] ss:$8 sps:$4 sm:$0xff]   ;;  %v1279_v14 = vld [vmem:[%s1677_s1 + $0x230] ss:$8 sps:$4 sm:$0xff]  }
  0x26   : > { %874 = vmatpush1.bf16.msra.mxu1 %v1206_v27  ;;  %832 = vmatprep.subr.bf16.mxu0 %v1207_v28  ;;  %v1284_v15 = vld [vmem:[%s1677_s1 + $0x224] ss:$8 sps:$4 sm:$0xff]   ;;  %v1282_v16 = vld [vmem:[%s1677_s1 + $0x220] ss:$8 sps:$4 sm:$0xff]   ;;  %v1287_v17 = vld [vmem:[%s1677_s1 + $0x214] ss:$8 sps:$4 sm:$0xff]  }
  0x27   : > { %875 = vmatprep.subr.bf16.mxu1 %v1209_v29  ;;  %v1285_v18 = vld [vmem:[%s1677_s1 + $0x210] ss:$8 sps:$4 sm:$0xff]   ;;  %v1290_v19 = vld [vmem:[%s1677_s1 + $0x204] ss:$8 sps:$4 sm:$0xff]   ;;  %v1288_v20 = vld [vmem:[%s1677_s1 + $0x200] ss:$8 sps:$4 sm:$0xff]  }
  0x28   : > { %v1293_v21 = vld [vmem:[%s1677_s1 + $0x2f4] ss:$8 sps:$4 sm:$0xff]   ;;  %v1291_v22 = vld [vmem:[%s1677_s1 + $0x2f0] ss:$8 sps:$4 sm:$0xff]   ;;  %v1296_v23 = vld [vmem:[%s1677_s1 + $0x2e4] ss:$8 sps:$4 sm:$0xff]  }
  0x29   : > { %833 = vmatpush1.bf16.msra.mxu0 %v1211_v30  ;;  %v1294_v24 = vld [vmem:[%s1677_s1 + $0x2e0] ss:$8 sps:$4 sm:$0xff]   ;;  %v1299_v25 = vld [vmem:[%s1677_s1 + $0x2d4] ss:$8 sps:$4 sm:$0xff]   ;;  %v1297_v26 = vld [vmem:[%s1677_s1 + $0x2d0] ss:$8 sps:$4 sm:$0xff]  }
  0x2a   : > { %876 = vmatpush1.bf16.msra.mxu1 %v1212_v31  ;;  %834 = vmatprep.subr.bf16.mxu0 %v1213_v32  ;;  %v1302_v27 = vld [vmem:[%s1677_s1 + $0x2c4] ss:$8 sps:$4 sm:$0xff]   ;;  %v1300_v28 = vld [vmem:[%s1677_s1 + $0x2c0] ss:$8 sps:$4 sm:$0xff]   ;;  %v1305_v29 = vld [vmem:[%s1677_s1 + $0x2b4] ss:$8 sps:$4 sm:$0xff]  }
  0x2b   : > { %877 = vmatprep.subr.bf16.mxu1 %v1215_v33  ;;  %v1303_v30 = vld [vmem:[%s1677_s1 + $0x2b0] ss:$8 sps:$4 sm:$0xff]   ;;  %v1308_v31 = vld [vmem:[%s1677_s1 + $0x2a4] ss:$8 sps:$4 sm:$0xff]   ;;  %v1306_v32 = vld [vmem:[%s1677_s1 + $0x2a0] ss:$8 sps:$4 sm:$0xff]  }
  0x2c   : > { %v1311_v33 = vld [vmem:[%s1677_s1 + $0x294] ss:$8 sps:$4 sm:$0xff]  }
  0x2d   : > { %835 = vmatpush2.bf16.msra.mxu0 %v1217_v34  ;;  %v1309_v34 = vld [vmem:[%s1677_s1 + $0x290] ss:$8 sps:$4 sm:$0xff]  }
  0x2e   : > { %878 = vmatpush2.bf16.msra.mxu1 %v1218_v35  ;;  %836 = vmatprep.subr.bf16.mxu0 %v1219_v36  ;;  %v1314_v35 = vld [vmem:[%s1677_s1 + $0x284] ss:$8 sps:$4 sm:$0xff]   ;;  %v1312_v36 = vld [vmem:[%s1677_s1 + $0x280] ss:$8 sps:$4 sm:$0xff]  }
  0x2f   : > { %879 = vmatprep.subr.bf16.mxu1 %v1221_v37  ;;  %v1315_v37 = vld [vmem:[%s1502_s12 + $0x10] ss:$24 sps:$4 sm:$0xff]  }
  0x31   : > { %837 = vmatpush2.bf16.msra.mxu0 %v1223_v38 }
  0x32   : > { %880 = vmatpush2.bf16.msra.mxu1 %v1224_v39  ;;  %838 = vmatprep.subr.bf16.mxu0 %v1225_v40  ;;  %v949_v39 = vlaneseq }
  0x33   : > { %881 = vmatprep.subr.bf16.mxu1 %v1227_v41 }
  0x35   : > { %839 = vmatpush2.bf16.msra.mxu0 %v1229_v42  ;;  %v950_v42 = vshrl.u32 %v949_v39, 7 }
  0x36   : > { %882 = vmatpush2.bf16.msra.mxu1 %v1230_v43  ;;  %840 = vmatprep.subr.bf16.mxu0 %v1231_v44 }
  0x37   : > { %883 = vmatprep.subr.bf16.mxu1 %v1233_v45  ;;  %v951_v45 = vsub.s32 0, %v950_v42 }
  0x39   : > { %841 = vmatpush2.bf16.msra.mxu0 %v1235_v46  ;;  %v947_v46 = vld [vmem:[%s1678_s2] sm:$0x3] }
  0x3a   : > { %884 = vmatpush2.bf16.msra.mxu1 %v1236_v47  ;;  %842 = vmatprep.subr.bf16.mxu0 %v1237_v48  ;;  %v955_v47 = vsub.s32 1, %v950_v42 }
  0x3b   : > { %885 = vmatprep.subr.bf16.mxu1 %v1239_v50  ;;  %v963_v50 = vld [vmem:[%s1679_s3] sm:$0x3] }
  0x3d   : > { %843 = vmatpush2.bf16.msra.mxu0 %v1241_v52  ;;  %v952_v52 = vrot.slane %v947_v46, %v951_v45 }
  0x3e   : > { %886 = vmatpush2.bf16.msra.mxu1 %v1242_v53  ;;  %844 = vmatprep.subr.bf16.mxu0 %v1243_v54 }
  0x3f   : > { %887 = vmatprep.subr.bf16.mxu1 %v1245_v55 }
  0x41   : > { %845 = vmatpush2.bf16.msra.mxu0 %v1247_v56  ;;  %v968_v56 = vrot.slane %v963_v50, %v951_v45 }
  0x42   : > { %888 = vmatpush2.bf16.msra.mxu1 %v1248_v57  ;;  %846 = vmatprep.subr.bf16.mxu0 %v1249_v58  ;;  %v956_v57 = vrot.slane %v947_v46, %v955_v47 }
  0x43   : > { %889 = vmatprep.subr.bf16.mxu1 %v1251_v59 }
  0x45   : > { %847 = vmatpush2.bf16.msra.mxu0 %v1253_v60 }
  0x46   : > { %890 = vmatpush2.bf16.msra.mxu1 %v1254_v61  ;;  %848 = vmatprep.subr.bf16.mxu0 %v1255_v62 }
  0x47   : > { %891 = vmatprep.subr.bf16.mxu1 %v1257_v63  ;;  %v972_v63 = vrot.slane %v963_v50, %v955_v47 }
  0x49   : > { %849 = vmatpush2.bf16.msra.mxu0 %v1259_v0 }
  0x4a   : > { %892 = vmatpush2.bf16.msra.mxu1 %v1260_v1  ;;  %904 = vmatprep.subr.bf16.mxu0 %v1269_v2 }
  0x4c   : > { %851 = vmatmul.mubr.bf16.vlgmr.msra.gmra.mxu0 %v1261_v3 }
  0x4d   : > { %894 = vmatmul.mubr.bf16.vlgmr.msra.gmra.mxu1 %v1264_v4  ;;  %905 = vmatpush1.bf16.msra.mxu0 %v1267_v5 }
  0x4e   : > { %906 = vmatprep.subr.bf16.mxu0 %v1272_v6  ;;  %936 = vmatprep.mubr.bf16.mxu0 %v1317_v7 }
  0x51   : > { %907 = vmatpush1.bf16.msra.mxu0 %v1270_v8 }
  0x52   : > { %908 = vmatprep.subr.bf16.mxu0 %v1275_v9 }
  0x55   : > { %909 = vmatpush1.bf16.msra.mxu0 %v1273_v10 }
  0x56   : > { %910 = vmatprep.subr.bf16.mxu0 %v1278_v11 }
  0x59   : > { %911 = vmatpush1.bf16.msra.mxu0 %v1276_v12 }
  0x5a   : > { %912 = vmatprep.subr.bf16.mxu0 %v1281_v13 }
  0x5d   : > { %913 = vmatpush1.bf16.msra.mxu0 %v1279_v14 }
  0x5e   : > { %914 = vmatprep.subr.bf16.mxu0 %v1284_v15 }
  0x61   : > { %915 = vmatpush1.bf16.msra.mxu0 %v1282_v16 }
  0x62   : > { %916 = vmatprep.subr.bf16.mxu0 %v1287_v17 }
  0x65   : > { %917 = vmatpush1.bf16.msra.mxu0 %v1285_v18 }
  0x66   : > { %918 = vmatprep.subr.bf16.mxu0 %v1290_v19 }
  0x69   : > { %919 = vmatpush1.bf16.msra.mxu0 %v1288_v20 }
  0x6a   : > { %920 = vmatprep.subr.bf16.mxu0 %v1293_v21 }
  0x6d   : > { %921 = vmatpush2.bf16.msra.mxu0 %v1291_v22 }
  0x6e   : > { %922 = vmatprep.subr.bf16.mxu0 %v1296_v23 }
  0x71   : > { %923 = vmatpush2.bf16.msra.mxu0 %v1294_v24 }
  0x72   : > { %924 = vmatprep.subr.bf16.mxu0 %v1299_v25 }
  0x75   : > { %925 = vmatpush2.bf16.msra.mxu0 %v1297_v26 }
  0x76   : > { %926 = vmatprep.subr.bf16.mxu0 %v1302_v27 }
  0x79   : > { %927 = vmatpush2.bf16.msra.mxu0 %v1300_v28 }
  0x7a   : > { %928 = vmatprep.subr.bf16.mxu0 %v1305_v29 }
  0x7d   : > { %929 = vmatpush2.bf16.msra.mxu0 %v1303_v30 }
  0x7e   : > { %930 = vmatprep.subr.bf16.mxu0 %v1308_v31 }
  0x81   : > { %931 = vmatpush2.bf16.msra.mxu0 %v1306_v32 }
  0x82   : > { %932 = vmatprep.subr.bf16.mxu0 %v1311_v33 }
  0x85   : > { %933 = vmatpush2.bf16.msra.mxu0 %v1309_v34 }
  0x86   : > { %934 = vmatprep.subr.bf16.mxu0 %v1314_v35 }
  0x89   : > { %935 = vmatpush2.bf16.msra.mxu0 %v1312_v36 }
  0x8c   : > { %937 = vmatmul.mubr.bf16.vlgmr.msra.gmra.mxu0 %v1315_v37 }
 0x10c   : > { %v852_v38 = vpop.f32.mrf.mxu0 }
 0x10d   : > { %v895_v40 = vpop.f32.mrf.mxu1 }
 0x10e   : > { %v854_v41 = vpop.f32.mrf.mxu0  ;;  %v896_v51 = vadd.f32 %v895_v40, %v852_v38 }
 0x10f   : > { %v897_v43 = vpop.f32.mrf.mxu1 }
 0x110   : > { %v856_v44 = vpop.f32.mrf.mxu0  ;;  %v898_v54 = vadd.f32 %v897_v43, %v854_v41 }
 0x111   : > { %v899_v48 = vpop.f32.mrf.mxu1 }
 0x112   : > { %v858_v49 = vpop.f32.mrf.mxu0  ;;  %v900_v60 = vadd.f32 %v899_v48, %v856_v44 }
 0x113   : > { %v901_v58 = vpop.f32.mrf.mxu1 }
 0x114   : > { %v902_v1 = vadd.f32 %v901_v58, %v858_v49 }
 0x14c   : > { %v938_v53 = vpop.f32.mrf.mxu0 }
 0x14d   : > { %v939_v55 = vadd.f32 %v938_v53, %v896_v51 }
 0x14e   : > { %v940_v59 = vpop.f32.mrf.mxu0 }
 0x14f   : > { %v959_v61 = vmul.f32 %v952_v52, %v939_v55  ;;  %v941_v62 = vadd.f32 %v940_v59, %v898_v54 }
 0x150   : > { %v942_v0 = vpop.f32.mrf.mxu0 }
 0x151   : > { %v975_v2 = vadd.f32 %v968_v56, %v959_v61  ;;  %v960_v3 = vmul.f32 %v956_v57, %v941_v62  ;;  %v943_v4 = vadd.f32 %v942_v0, %v900_v60 }
 0x152   : > { %v944_v5 = vpop.f32.mrf.mxu0 }
 0x153   : > { %979 = vst [vmem:[%s204_s6] sm:$0xff] %v975_v2  ;;  %v976_v6 = vadd.f32 %v972_v63, %v960_v3  ;;  %v961_v7 = vmul.f32 %v952_v52, %v943_v4  ;;  %v945_v8 = vadd.f32 %v944_v5, %v902_v1 }
 0x155   : > { %980 = vst [vmem:[%s204_s6 + $0x8] sm:$0xff] %v976_v6  ;;  %v977_v9 = vadd.f32 %v968_v56, %v961_v7  ;;  %v962_v10 = vmul.f32 %v956_v57, %v945_v8 }
 0x157   : > { %981 = vst [vmem:[%s204_s6 + $0x10] sm:$0xff] %v977_v9  ;;  %v978_v11 = vadd.f32 %v972_v63, %v962_v10 }
 0x159   : > { %982 = vst [vmem:[%s204_s6 + $0x18] sm:$0xff] %v978_v11 }
 0x15a PF: > { %s14_s15 = sadd.s32 1, %s1324_s15  }
 0x15b   : > { %p11_p4 = scmp.ge.s32.totalorder %s14_s15, 4  }
 0x15d   :  { %13 = sbr.rel (!%p11_p4) target bundleno = 1 (0x1), region = 66 }

</bundles_post_ra>
